<compile_context>
chip_gen: v7x
topology: tpu7x:2x2x1
jax: 0.10.0
libtpu: 0.0.40
codegen_flags: <defaults>
</compile_context>

<pallas_src>
import functools

import jax
import jax.numpy as jnp
from jax.experimental import pallas as pl
from jax.experimental.pallas import tpu as pltpu  # noqa: F401  (kept for parity)


# ----------------------------------------------------------------------------
# Pallas kernels (all single full-array blocks; the forward is launch-bound).
# ----------------------------------------------------------------------------
def _row_relu(acc, relu_from):
    """ReLU applied to rows >= relu_from (static). None -> no relu, 0 -> all rows."""
    if relu_from is None:
        return acc
    if relu_from <= 0:
        return jnp.maximum(acc, 0.0)
    rows = jax.lax.broadcasted_iota(jnp.int32, acc.shape, 0)
    return jnp.where(rows >= relu_from, jnp.maximum(acc, 0.0), acc)


def _conv_mm_kernel(w_ref, x_ref, b_ref, o_ref, *, relu_from):
    # o = W @ x + b ; x is (K, M) with M = B*H*W lane-dense.
    acc = jnp.dot(w_ref[...], x_ref[...], preferred_element_type=jnp.float32)
    acc = acc + b_ref[...]
    o_ref[...] = _row_relu(acc, relu_from).astype(o_ref.dtype)


def _small_k_matmul(w, x):
    """(N, K) @ (K, M) with tiny K as an unrolled VPU broadcast-FMA."""
    acc = w[:, 0:1] * x[0:1, :]
    for k in range(1, w.shape[1]):
        acc = acc + w[:, k:k + 1] * x[k:k + 1, :]
    return acc


def _taps_kernel(w_ref, x_ref, o_ref):
    # conv-transpose taps: (Cout*k*k, Cin) @ (Cin, B*H*W), K = Cin is tiny.
    o_ref[...] = _small_k_matmul(w_ref[...], x_ref[...]).astype(o_ref.dtype)


def _dual_taps_kernel(w1_ref, x1_ref, w2_ref, x2_ref, o_ref):
    # convT1s and convT2d taps in one launch: two static row slabs of one
    # lane-dense (n1+n2, M) output.
    n1 = w1_ref.shape[0]
    n2 = w2_ref.shape[0]
    o_ref[0:n1, :] = _small_k_matmul(w1_ref[...], x1_ref[...]).astype(o_ref.dtype)
    o_ref[n1:n1 + n2, :] = _small_k_matmul(w2_ref[...], x2_ref[...]).astype(o_ref.dtype)


def _mlp_kernel(x_ref, w1_ref, b1_ref, w2t_ref, b2_ref, o_ref):
    # fused lin1 + linT1: relu(relu(x @ w1^T + b1) @ w2^T + b2).
    # w1 stays in its natural (latent, flat) lane-dense layout (contract last dims);
    # w2t is linT1's weight pre-transposed once to (latent, flat).
    h = jax.lax.dot_general(x_ref[...], w1_ref[...],
                            (((1,), (1,)), ((), ())),
                            preferred_element_type=jnp.float32)
    h = jnp.maximum(h + b1_ref[...], 0.0)
    o = jnp.dot(h, w2t_ref[...], preferred_element_type=jnp.float32)
    o_ref[...] = jnp.maximum(o + b2_ref[...], 0.0).astype(o_ref.dtype)


# ----------------------------------------------------------------------------
# Pallas wrappers (single block each -> one launch, no pipeline machinery)
# ----------------------------------------------------------------------------
def conv_matmul(w, x_t, bias, relu_from):
    N = w.shape[0]
    M = x_t.shape[1]
    return pl.pallas_call(
        functools.partial(_conv_mm_kernel, relu_from=relu_from),
        out_shape=jax.ShapeDtypeStruct((N, M), jnp.float32),
    )(w, x_t, bias)


def taps_matmul(wmat, x_t):
    N = wmat.shape[0]
    M = x_t.shape[1]
    return pl.pallas_call(
        _taps_kernel,
        out_shape=jax.ShapeDtypeStruct((N, M), jnp.float32),
    )(wmat, x_t)


def dual_taps_matmul(w1, x1_t, w2, x2_t):
    N = w1.shape[0] + w2.shape[0]
    M = x1_t.shape[1]
    return pl.pallas_call(
        _dual_taps_kernel,
        out_shape=jax.ShapeDtypeStruct((N, M), jnp.float32),
    )(w1, x1_t, w2, x2_t)


def mlp2(x, w1, b1, w2t, b2):
    B = x.shape[0]
    O = w2t.shape[1]
    return pl.pallas_call(
        _mlp_kernel,
        out_shape=jax.ShapeDtypeStruct((B, O), jnp.float32),
    )(x, w1, b1, w2t, b2)


# ----------------------------------------------------------------------------
# Plain-JAX glue: im2col / col2im in channel-major (C, B, H, W) layout
# ----------------------------------------------------------------------------
def _im2col_t(x_cbhw, k, stride, pad):
    """x: (C, B, H, W) -> transposed patches (C*k*k, B*Ho*Wo), rows in (C,kh,kw) order."""
    C, B, H, W = x_cbhw.shape
    xp = jnp.pad(x_cbhw, ((0, 0), (0, 0), (pad, pad), (pad, pad)))
    Ho = (H + 2 * pad - k) // stride + 1
    Wo = (W + 2 * pad - k) // stride + 1
    slices = [
        xp[:, :, di:di + stride * Ho:stride, dj:dj + stride * Wo:stride]
        for di in range(k) for dj in range(k)
    ]
    p = jnp.stack(slices, axis=1)                       # (C, k*k, B, Ho, Wo)
    return p.reshape(C * k * k, B * Ho * Wo), Ho, Wo


def _col2im_add_t(taps, B, H, W, k, stride, pad):
    """Overlap-add the conv-transpose taps.

    taps: (Cout*k*k, B*H*W) with row order (cout, kh, kw).  Returns (Cout, B, Ho, Wo).
    Expressed with lax.pad (interior dilation + shift) and adds -> no scatter.
    """
    CKK, _ = taps.shape
    Cout = CKK // (k * k)
    t = taps.reshape(Cout, k, k, B, H, W)
    Hp = (H - 1) * stride + k          # = Ho + 2*pad
    Wp = (W - 1) * stride + k
    zero = jnp.zeros((), taps.dtype)
    out = jnp.zeros((Cout, B, Hp, Wp), taps.dtype)
    for di in range(k):
        for dj in range(k):
            hi_h = Hp - di - ((H - 1) * stride + 1)
            hi_w = Wp - dj - ((W - 1) * stride + 1)
            out = out + jax.lax.pad(
                t[:, di, dj], zero,
                ((0, 0, 0), (0, 0, 0),
                 (di, hi_h, stride - 1), (dj, hi_w, stride - 1)))
    Ho = Hp - 2 * pad
    Wo = Wp - 2 * pad
    return out[:, :, pad:pad + Ho, pad:pad + Wo]


# ----------------------------------------------------------------------------
# Parameters: PyTorch-layout init + one-time kernel-friendly layout prep
# ----------------------------------------------------------------------------
def _uniform(key, shape, bound):
    return jax.random.uniform(key, shape, jnp.float32, -bound, bound)


def init_params(key, n_chan=1, hid_s=5, hid_d=5, latent_dim=20, k=4):
    keys = jax.random.split(key, 16)
    params = {}

    def conv_init(kw, kb, cout, cin):
        bound = 1.0 / jnp.sqrt(cin * k * k)
        return _uniform(kw, (cout, cin, k, k), bound), _uniform(kb, (cout,), bound)

    def convT_init(kw, kb, cin, cout):
        bound = 1.0 / jnp.sqrt(cin * k * k)
        return _uniform(kw, (cin, cout, k, k), bound), _uniform(kb, (cout,), bound)

    def lin_init(kw, kb, out_f, in_f):
        bound = 1.0 / jnp.sqrt(in_f)
        return _uniform(kw, (out_f, in_f), bound), _uniform(kb, (out_f,), bound)

    params["conv1s"] = conv_init(keys[0], keys[1], hid_s, n_chan)
    params["conv1d"] = conv_init(keys[2], keys[3], hid_d, n_chan)
    params["conv2d"] = conv_init(keys[4], keys[5], hid_d, hid_d)
    flat = hid_d * 16 * 16
    params["lin1"] = lin_init(keys[6], keys[7], latent_dim, flat)
    params["linT1"] = lin_init(keys[8], keys[9], flat, latent_dim)
    params["convT1s"] = convT_init(keys[10], keys[11], hid_s, n_chan)
    params["convT1d"] = convT_init(keys[12], keys[13], hid_d, hid_d)
    params["convT2d"] = convT_init(keys[14], keys[15], hid_d, n_chan)
    return params


def prepare_params(params):
    """One-time conversion of PyTorch-layout params into kernel-ready layouts.
    All reshapes / transposes / concats happen here (outside the jitted forward)."""
    w1s, b1s = params["conv1s"]
    w1d, b1d = params["conv1d"]
    hs, hd = w1s.shape[0], w1d.shape[0]
    k = w1s.shape[-1]
    w2d, b2d = params["conv2d"]
    wl1, bl1 = params["lin1"]
    wl2, bl2 = params["linT1"]
    wt1s, bt1s = params["convT1s"]
    wt1d, bt1d = params["convT1d"]
    wt2d, bt2d = params["convT2d"]

    def t_mat(w):   # ConvTranspose2d weight (Cin, Cout, k, k) -> (Cout*k*k, Cin)
        return jnp.transpose(w, (1, 2, 3, 0)).reshape(w.shape[1] * k * k, w.shape[0])

    return {
        "conv1_w": jnp.concatenate([w1s.reshape(hs, -1), w1d.reshape(hd, -1)], 0),
        "conv1_b": jnp.concatenate([b1s, b1d], 0).reshape(hs + hd, 1),
        "conv2_w": w2d.reshape(hd, -1),
        "conv2_b": b2d.reshape(hd, 1),
        "lin1_w": wl1,                       # natural (latent, flat) lane-dense
        "lin1_b": bl1.reshape(1, -1),
        "linT1_wt": wl2.T,                   # pre-transposed once: (latent, flat)
        "linT1_b": bl2.reshape(1, -1),
        "convT1s_w": t_mat(wt1s), "convT1s_b": bt1s,
        "convT1d_w": t_mat(wt1d), "convT1d_b": bt1d,
        "convT2d_w": t_mat(wt2d), "convT2d_b": bt2d,
    }


# ----------------------------------------------------------------------------
# AutoEncoderMix forward (5 pallas_calls total)
# ----------------------------------------------------------------------------
def autoencoder_mix_forward(prep, x):
    B, C, H, W = x.shape
    hs = prep["convT1s_w"].shape[1]
    hd = prep["convT1d_w"].shape[1]
    k = int(round((prep["conv1_w"].shape[1] // C) ** 0.5))

    x_c = jnp.transpose(x, (1, 0, 2, 3))                           # (C, B, H, W)

    # ---- encoder: conv1s + conv1d share one im2col and ONE kernel ----
    p1, H1, W1 = _im2col_t(x_c, k, 2, 1)                           # (C*k*k, B*H1*W1)
    y1 = conv_matmul(prep["conv1_w"], p1, prep["conv1_b"], relu_from=hs)
    lat1 = y1[:hs].reshape(hs, B, H1, W1)                          # conv1s out (no relu)
    h1 = y1[hs:].reshape(hd, B, H1, W1)                            # relu(conv1d(x))

    # ---- encoder_d: conv2d + relu ----
    p2, H2, W2 = _im2col_t(h1, k, 2, 1)                            # (hd*k*k, B*H2*W2)
    h2 = conv_matmul(prep["conv2_w"], p2, prep["conv2_b"], relu_from=0)
    h2 = h2.reshape(hd, B, H2, W2)

    # ---- lin1 + linT1 fused (PyTorch flatten order is (C, H, W) per batch) ----
    h_flat = h2.reshape(hd, B, H2 * W2).transpose(1, 0, 2).reshape(B, hd * H2 * W2)
    d_flat = mlp2(h_flat, prep["lin1_w"], prep["lin1_b"],
                  prep["linT1_wt"], prep["linT1_b"])               # (B, hd*H2*W2)
    d0 = d_flat.reshape(B, hd, H2, W2).transpose(1, 0, 2, 3)       # (hd, B, H2, W2)

    # ---- decoder_d stage 1: convT1d (taps kernel -> overlap-add -> bias + relu) ----
    taps_d = taps_matmul(prep["convT1d_w"], d0.reshape(hd, B * H2 * W2))
    d1 = _col2im_add_t(taps_d, B, H2, W2, k, 2, 1)                 # (hd, B, H1, W1)
    d1 = jnp.maximum(d1 + prep["convT1d_b"].reshape(hd, 1, 1, 1), 0.0)

    # ---- decoder tail: convT1s(lat1) and convT2d(d1) in ONE kernel + ONE col2im ----
    taps_sd = dual_taps_matmul(prep["convT1s_w"], lat1.reshape(hs, B * H1 * W1),
                               prep["convT2d_w"], d1.reshape(hd, B * H1 * W1))
    recs = _col2im_add_t(taps_sd, B, H1, W1, k, 2, 1)              # (2*C, B, H, W)
    rec1_c = recs[:C] + prep["convT1s_b"].reshape(C, 1, 1, 1)      # decoder_s (no relu)
    rec2_c = recs[C:] + prep["convT2d_b"].reshape(C, 1, 1, 1)      # decoder_d (no relu)
    total_c = rec1_c + rec2_c                                      # plain add -> fuses

    to_nchw = lambda a: jnp.transpose(a, (1, 0, 2, 3))
    return to_nchw(total_c), [to_nchw(rec1_c), to_nchw(rec2_c)]


if __name__ == "__main__":
    key = jax.random.PRNGKey(0)
    k_param, k_x = jax.random.split(key)

    # self.reshape hardcodes (hid_channels_d, 16, 16) -> input spatial must be 64x64
    B, C, H, W = 2, 1, 64, 64
    x = jax.random.normal(k_x, (B, C, H, W), jnp.float32)

    params = init_params(k_param, n_chan=C, hid_s=5, hid_d=5, latent_dim=20)
    prep = prepare_params(params)          # one-time layout prep, outside jit

    fwd = jax.jit(autoencoder_mix_forward)
    total, recs = fwd(prep, x)
    rec1, rec2 = recs
    jax.block_until_ready((total, rec1, rec2))

    assert total.shape == (B, C, H, W)
    assert rec1.shape == (B, C, H, W)
    assert rec2.shape == (B, C, H, W)
    print("KERNEL_OK")
</pallas_src>

<mosaic_0001>
module attributes {stable_mosaic.version = 11 : i64} {
  func.func @_conv_mm_kernel(%arg0: memref<10x16xf32, #tpu.memory_space<vmem>>, %arg1: memref<16x2048xf32, #tpu.memory_space<vmem>>, %arg2: memref<10x1xf32, #tpu.memory_space<vmem>>, %arg3: memref<10x2048xf32, #tpu.memory_space<vmem>>) attributes {dimension_semantics = [], scalar_prefetch = 0 : i64, scratch_operands = 0 : i64, tpu.core_type = #tpu.core_type<tc>} {
    %c0 = arith.constant 0 : index
    %c0_0 = arith.constant 0 : index
    %0 = vector.load %arg0[%c0, %c0_0] : memref<10x16xf32, #tpu.memory_space<vmem>>, vector<10x16xf32>
    %c0_1 = arith.constant 0 : index
    %c0_2 = arith.constant 0 : index
    %1 = vector.load %arg1[%c0_1, %c0_2] : memref<16x2048xf32, #tpu.memory_space<vmem>>, vector<16x2048xf32>
    %cst = arith.constant dense<0.000000e+00> : vector<10x2048xf32>
    %2 = tpu.matmul %0, %1, %cst {dimension_numbers = #tpu.dot_dimension_numbers<[1], [0], [0], [1], [0, 0, 1, 1], [], []>} : vector<10x16xf32>, vector<16x2048xf32>, vector<10x2048xf32> -> vector<10x2048xf32>
    %c0_3 = arith.constant 0 : index
    %c0_4 = arith.constant 0 : index
    %3 = vector.load %arg2[%c0_3, %c0_4] : memref<10x1xf32, #tpu.memory_space<vmem>>, vector<10x1xf32>
    %4 = vector.broadcast %3 : vector<10x1xf32> to vector<10x2048xf32>
    %5 = arith.addf %2, %4 : vector<10x2048xf32>
    %6 = tpu.iota {dimensions = array<i32: 0>} : vector<10x2048xi32>
    %c5_i32 = arith.constant 5 : i32
    %7 = vector.broadcast %c5_i32 : i32 to vector<10x2048xi32>
    %8 = arith.cmpi sge, %6, %7 : vector<10x2048xi32>
    %cst_5 = arith.constant 0.000000e+00 : f32
    %9 = vector.broadcast %cst_5 : f32 to vector<10x2048xf32>
    %10 = arith.maximumf %5, %9 : vector<10x2048xf32>
    %11 = arith.select %8, %10, %5 : vector<10x2048xi1>, vector<10x2048xf32>
    %c0_6 = arith.constant 0 : index
    %c0_7 = arith.constant 0 : index
    %12 = vector.load %arg3[%c0_6, %c0_7] : memref<10x2048xf32, #tpu.memory_space<vmem>>, vector<10x2048xf32>
    tpu.vector_store %arg3[%c0_6, %c0_7], %11 {strides = array<i32>} : memref<10x2048xf32, #tpu.memory_space<vmem>>, vector<10x2048xf32>,
    return
  }
}

module attributes {stable_mosaic.version = 11 : i64} {
  func.func @_mlp_kernel(%arg0: memref<2x1280xf32, #tpu.memory_space<vmem>>, %arg1: memref<20x1280xf32, #tpu.memory_space<vmem>>, %arg2: memref<1x20xf32, #tpu.memory_space<vmem>>, %arg3: memref<20x1280xf32, #tpu.memory_space<vmem>>, %arg4: memref<1x1280xf32, #tpu.memory_space<vmem>>, %arg5: memref<2x1280xf32, #tpu.memory_space<vmem>>) attributes {dimension_semantics = [], scalar_prefetch = 0 : i64, scratch_operands = 0 : i64, tpu.core_type = #tpu.core_type<tc>} {
    %c0 = arith.constant 0 : index
    %c0_0 = arith.constant 0 : index
    %0 = vector.load %arg0[%c0, %c0_0] : memref<2x1280xf32, #tpu.memory_space<vmem>>, vector<2x1280xf32>
    %c0_1 = arith.constant 0 : index
    %c0_2 = arith.constant 0 : index
    %1 = vector.load %arg1[%c0_1, %c0_2] : memref<20x1280xf32, #tpu.memory_space<vmem>>, vector<20x1280xf32>
    %cst = arith.constant dense<0.000000e+00> : vector<2x20xf32>
    %2 = tpu.matmul %0, %1, %cst {dimension_numbers = #tpu.dot_dimension_numbers<[1], [1], [0], [0], [0, 0, 1, 0], [], []>} : vector<2x1280xf32>, vector<20x1280xf32>, vector<2x20xf32> -> vector<2x20xf32>
    %c0_3 = arith.constant 0 : index
    %c0_4 = arith.constant 0 : index
    %3 = vector.load %arg2[%c0_3, %c0_4] : memref<1x20xf32, #tpu.memory_space<vmem>>, vector<1x20xf32>
    %4 = vector.broadcast %3 : vector<1x20xf32> to vector<2x20xf32>
    %5 = arith.addf %2, %4 : vector<2x20xf32>
    %cst_5 = arith.constant 0.000000e+00 : f32
    %6 = vector.broadcast %cst_5 : f32 to vector<2x20xf32>
    %7 = arith.maximumf %5, %6 : vector<2x20xf32>
    %c0_6 = arith.constant 0 : index
    %c0_7 = arith.constant 0 : index
    %8 = vector.load %arg3[%c0_6, %c0_7] : memref<20x1280xf32, #tpu.memory_space<vmem>>, vector<20x1280xf32>
    %cst_8 = arith.constant dense<0.000000e+00> : vector<2x1280xf32>
    %9 = tpu.matmul %7, %8, %cst_8 {dimension_numbers = #tpu.dot_dimension_numbers<[1], [0], [0], [1], [0, 0, 1, 1], [], []>} : vector<2x20xf32>, vector<20x1280xf32>, vector<2x1280xf32> -> vector<2x1280xf32>
    %c0_9 = arith.constant 0 : index
    %c0_10 = arith.constant 0 : index
    %10 = vector.load %arg4[%c0_9, %c0_10] : memref<1x1280xf32, #tpu.memory_space<vmem>>, vector<1x1280xf32>
    %11 = vector.broadcast %10 : vector<1x1280xf32> to vector<2x1280xf32>
    %12 = arith.addf %9, %11 : vector<2x1280xf32>
    %cst_11 = arith.constant 0.000000e+00 : f32
    %13 = vector.broadcast %cst_11 : f32 to vector<2x1280xf32>
    %14 = arith.maximumf %12, %13 : vector<2x1280xf32>
    %c0_12 = arith.constant 0 : index
    %c0_13 = arith.constant 0 : index
    %15 = vector.load %arg5[%c0_12, %c0_13] : memref<2x1280xf32, #tpu.memory_space<vmem>>, vector<2x1280xf32>
    tpu.vector_store %arg5[%c0_12, %c0_13], %14 {strides = array<i32>} : memref<2x1280xf32, #tpu.memory_space<vmem>>, vector<2x1280xf32>,
    return
  }
}

module attributes {stable_mosaic.version = 11 : i64} {
  func.func @_conv_mm_kernel(%arg0: memref<5x80xf32, #tpu.memory_space<vmem>>, %arg1: memref<80x512xf32, #tpu.memory_space<vmem>>, %arg2: memref<5x1xf32, #tpu.memory_space<vmem>>, %arg3: memref<5x512xf32, #tpu.memory_space<vmem>>) attributes {dimension_semantics = [], scalar_prefetch = 0 : i64, scratch_operands = 0 : i64, tpu.core_type = #tpu.core_type<tc>} {
    %c0 = arith.constant 0 : index
    %c0_0 = arith.constant 0 : index
    %0 = vector.load %arg0[%c0, %c0_0] : memref<5x80xf32, #tpu.memory_space<vmem>>, vector<5x80xf32>
    %c0_1 = arith.constant 0 : index
    %c0_2 = arith.constant 0 : index
    %1 = vector.load %arg1[%c0_1, %c0_2] : memref<80x512xf32, #tpu.memory_space<vmem>>, vector<80x512xf32>
    %cst = arith.constant dense<0.000000e+00> : vector<5x512xf32>
    %2 = tpu.matmul %0, %1, %cst {dimension_numbers = #tpu.dot_dimension_numbers<[1], [0], [0], [1], [0, 0, 1, 1], [], []>} : vector<5x80xf32>, vector<80x512xf32>, vector<5x512xf32> -> vector<5x512xf32>
    %c0_3 = arith.constant 0 : index
    %c0_4 = arith.constant 0 : index
    %3 = vector.load %arg2[%c0_3, %c0_4] : memref<5x1xf32, #tpu.memory_space<vmem>>, vector<5x1xf32>
    %4 = vector.broadcast %3 : vector<5x1xf32> to vector<5x512xf32>
    %5 = arith.addf %2, %4 : vector<5x512xf32>
    %cst_5 = arith.constant 0.000000e+00 : f32
    %6 = vector.broadcast %cst_5 : f32 to vector<5x512xf32>
    %7 = arith.maximumf %5, %6 : vector<5x512xf32>
    %c0_6 = arith.constant 0 : index
    %c0_7 = arith.constant 0 : index
    %8 = vector.load %arg3[%c0_6, %c0_7] : memref<5x512xf32, #tpu.memory_space<vmem>>, vector<5x512xf32>
    tpu.vector_store %arg3[%c0_6, %c0_7], %7 {strides = array<i32>} : memref<5x512xf32, #tpu.memory_space<vmem>>, vector<5x512xf32>,
    return
  }
}

module attributes {stable_mosaic.version = 11 : i64} {
  func.func @_taps_kernel(%arg0: memref<80x5xf32, #tpu.memory_space<vmem>>, %arg1: memref<5x512xf32, #tpu.memory_space<vmem>>, %arg2: memref<80x512xf32, #tpu.memory_space<vmem>>) attributes {dimension_semantics = [], scalar_prefetch = 0 : i64, scratch_operands = 0 : i64, tpu.core_type = #tpu.core_type<tc>} {
    %c0 = arith.constant 0 : index
    %c0_0 = arith.constant 0 : index
    %0 = vector.load %arg0[%c0, %c0_0] : memref<80x5xf32, #tpu.memory_space<vmem>>, vector<80x5xf32>
    %c0_1 = arith.constant 0 : index
    %c0_2 = arith.constant 0 : index
    %1 = vector.load %arg1[%c0_1, %c0_2] : memref<5x512xf32, #tpu.memory_space<vmem>>, vector<5x512xf32>
    %2 = vector.extract_strided_slice %0 {offsets = [0, 0], sizes = [80, 1], strides = [1, 1]} : vector<80x5xf32> to vector<80x1xf32>
    %3 = vector.extract_strided_slice %1 {offsets = [0, 0], sizes = [1, 512], strides = [1, 1]} : vector<5x512xf32> to vector<1x512xf32>
    %4 = vector.broadcast %2 : vector<80x1xf32> to vector<80x512xf32>
    %5 = vector.broadcast %3 : vector<1x512xf32> to vector<80x512xf32>
    %6 = arith.mulf %4, %5 : vector<80x512xf32>
    %7 = vector.extract_strided_slice %0 {offsets = [0, 1], sizes = [80, 1], strides = [1, 1]} : vector<80x5xf32> to vector<80x1xf32>
    %8 = vector.extract_strided_slice %1 {offsets = [1, 0], sizes = [1, 512], strides = [1, 1]} : vector<5x512xf32> to vector<1x512xf32>
    %9 = vector.broadcast %7 : vector<80x1xf32> to vector<80x512xf32>
    %10 = vector.broadcast %8 : vector<1x512xf32> to vector<80x512xf32>
    %11 = arith.mulf %9, %10 : vector<80x512xf32>
    %12 = arith.addf %6, %11 : vector<80x512xf32>
    %13 = vector.extract_strided_slice %0 {offsets = [0, 2], sizes = [80, 1], strides = [1, 1]} : vector<80x5xf32> to vector<80x1xf32>
    %14 = vector.extract_strided_slice %1 {offsets = [2, 0], sizes = [1, 512], strides = [1, 1]} : vector<5x512xf32> to vector<1x512xf32>
    %15 = vector.broadcast %13 : vector<80x1xf32> to vector<80x512xf32>
    %16 = vector.broadcast %14 : vector<1x512xf32> to vector<80x512xf32>
    %17 = arith.mulf %15, %16 : vector<80x512xf32>
    %18 = arith.addf %12, %17 : vector<80x512xf32>
    %19 = vector.extract_strided_slice %0 {offsets = [0, 3], sizes = [80, 1], strides = [1, 1]} : vector<80x5xf32> to vector<80x1xf32>
    %20 = vector.extract_strided_slice %1 {offsets = [3, 0], sizes = [1, 512], strides = [1, 1]} : vector<5x512xf32> to vector<1x512xf32>
    %21 = vector.broadcast %19 : vector<80x1xf32> to vector<80x512xf32>
    %22 = vector.broadcast %20 : vector<1x512xf32> to vector<80x512xf32>
    %23 = arith.mulf %21, %22 : vector<80x512xf32>
    %24 = arith.addf %18, %23 : vector<80x512xf32>
    %25 = vector.extract_strided_slice %0 {offsets = [0, 4], sizes = [80, 1], strides = [1, 1]} : vector<80x5xf32> to vector<80x1xf32>
    %26 = vector.extract_strided_slice %1 {offsets = [4, 0], sizes = [1, 512], strides = [1, 1]} : vector<5x512xf32> to vector<1x512xf32>
    %27 = vector.broadcast %25 : vector<80x1xf32> to vector<80x512xf32>
    %28 = vector.broadcast %26 : vector<1x512xf32> to vector<80x512xf32>
    %29 = arith.mulf %27, %28 : vector<80x512xf32>
    %30 = arith.addf %24, %29 : vector<80x512xf32>
    %c0_3 = arith.constant 0 : index
    %c0_4 = arith.constant 0 : index
    %31 = vector.load %arg2[%c0_3, %c0_4] : memref<80x512xf32, #tpu.memory_space<vmem>>, vector<80x512xf32>
    tpu.vector_store %arg2[%c0_3, %c0_4], %30 {strides = array<i32>} : memref<80x512xf32, #tpu.memory_space<vmem>>, vector<80x512xf32>,
    return
  }
}

module attributes {stable_mosaic.version = 11 : i64} {
  func.func @_dual_taps_kernel(%arg0: memref<16x5xf32, #tpu.memory_space<vmem>>, %arg1: memref<5x2048xf32, #tpu.memory_space<vmem>>, %arg2: memref<16x5xf32, #tpu.memory_space<vmem>>, %arg3: memref<5x2048xf32, #tpu.memory_space<vmem>>, %arg4: memref<32x2048xf32, #tpu.memory_space<vmem>>) attributes {dimension_semantics = [], scalar_prefetch = 0 : i64, scratch_operands = 0 : i64, tpu.core_type = #tpu.core_type<tc>} {
    %c0 = arith.constant 0 : index
    %c0_0 = arith.constant 0 : index
    %0 = vector.load %arg0[%c0, %c0_0] : memref<16x5xf32, #tpu.memory_space<vmem>>, vector<16x5xf32>
    %c0_1 = arith.constant 0 : index
    %c0_2 = arith.constant 0 : index
    %1 = vector.load %arg1[%c0_1, %c0_2] : memref<5x2048xf32, #tpu.memory_space<vmem>>, vector<5x2048xf32>
    %2 = vector.extract_strided_slice %0 {offsets = [0, 0], sizes = [16, 1], strides = [1, 1]} : vector<16x5xf32> to vector<16x1xf32>
    %3 = vector.extract_strided_slice %1 {offsets = [0, 0], sizes = [1, 2048], strides = [1, 1]} : vector<5x2048xf32> to vector<1x2048xf32>
    %4 = vector.broadcast %2 : vector<16x1xf32> to vector<16x2048xf32>
    %5 = vector.broadcast %3 : vector<1x2048xf32> to vector<16x2048xf32>
    %6 = arith.mulf %4, %5 : vector<16x2048xf32>
    %7 = vector.extract_strided_slice %0 {offsets = [0, 1], sizes = [16, 1], strides = [1, 1]} : vector<16x5xf32> to vector<16x1xf32>
    %8 = vector.extract_strided_slice %1 {offsets = [1, 0], sizes = [1, 2048], strides = [1, 1]} : vector<5x2048xf32> to vector<1x2048xf32>
    %9 = vector.broadcast %7 : vector<16x1xf32> to vector<16x2048xf32>
    %10 = vector.broadcast %8 : vector<1x2048xf32> to vector<16x2048xf32>
    %11 = arith.mulf %9, %10 : vector<16x2048xf32>
    %12 = arith.addf %6, %11 : vector<16x2048xf32>
    %13 = vector.extract_strided_slice %0 {offsets = [0, 2], sizes = [16, 1], strides = [1, 1]} : vector<16x5xf32> to vector<16x1xf32>
    %14 = vector.extract_strided_slice %1 {offsets = [2, 0], sizes = [1, 2048], strides = [1, 1]} : vector<5x2048xf32> to vector<1x2048xf32>
    %15 = vector.broadcast %13 : vector<16x1xf32> to vector<16x2048xf32>
    %16 = vector.broadcast %14 : vector<1x2048xf32> to vector<16x2048xf32>
    %17 = arith.mulf %15, %16 : vector<16x2048xf32>
    %18 = arith.addf %12, %17 : vector<16x2048xf32>
    %19 = vector.extract_strided_slice %0 {offsets = [0, 3], sizes = [16, 1], strides = [1, 1]} : vector<16x5xf32> to vector<16x1xf32>
    %20 = vector.extract_strided_slice %1 {offsets = [3, 0], sizes = [1, 2048], strides = [1, 1]} : vector<5x2048xf32> to vector<1x2048xf32>
    %21 = vector.broadcast %19 : vector<16x1xf32> to vector<16x2048xf32>
    %22 = vector.broadcast %20 : vector<1x2048xf32> to vector<16x2048xf32>
    %23 = arith.mulf %21, %22 : vector<16x2048xf32>
    %24 = arith.addf %18, %23 : vector<16x2048xf32>
    %25 = vector.extract_strided_slice %0 {offsets = [0, 4], sizes = [16, 1], strides = [1, 1]} : vector<16x5xf32> to vector<16x1xf32>
    %26 = vector.extract_strided_slice %1 {offsets = [4, 0], sizes = [1, 2048], strides = [1, 1]} : vector<5x2048xf32> to vector<1x2048xf32>
    %27 = vector.broadcast %25 : vector<16x1xf32> to vector<16x2048xf32>
    %28 = vector.broadcast %26 : vector<1x2048xf32> to vector<16x2048xf32>
    %29 = arith.mulf %27, %28 : vector<16x2048xf32>
    %30 = arith.addf %24, %29 : vector<16x2048xf32>
    %c0_3 = arith.constant 0 : index
    %c0_4 = arith.constant 0 : index
    %31 = vector.load %arg4[%c0_3, %c0_4] : memref<32x2048xf32, #tpu.memory_space<vmem>>, vector<16x2048xf32>
    tpu.vector_store %arg4[%c0_3, %c0_4], %30 {strides = array<i32>} : memref<32x2048xf32, #tpu.memory_space<vmem>>, vector<16x2048xf32>,
    %c0_5 = arith.constant 0 : index
    %c0_6 = arith.constant 0 : index
    %32 = vector.load %arg2[%c0_5, %c0_6] : memref<16x5xf32, #tpu.memory_space<vmem>>, vector<16x5xf32>
    %c0_7 = arith.constant 0 : index
    %c0_8 = arith.constant 0 : index
    %33 = vector.load %arg3[%c0_7, %c0_8] : memref<5x2048xf32, #tpu.memory_space<vmem>>, vector<5x2048xf32>
    %34 = vector.extract_strided_slice %32 {offsets = [0, 0], sizes = [16, 1], strides = [1, 1]} : vector<16x5xf32> to vector<16x1xf32>
    %35 = vector.extract_strided_slice %33 {offsets = [0, 0], sizes = [1, 2048], strides = [1, 1]} : vector<5x2048xf32> to vector<1x2048xf32>
    %36 = vector.broadcast %34 : vector<16x1xf32> to vector<16x2048xf32>
    %37 = vector.broadcast %35 : vector<1x2048xf32> to vector<16x2048xf32>
    %38 = arith.mulf %36, %37 : vector<16x2048xf32>
    %39 = vector.extract_strided_slice %32 {offsets = [0, 1], sizes = [16, 1], strides = [1, 1]} : vector<16x5xf32> to vector<16x1xf32>
    %40 = vector.extract_strided_slice %33 {offsets = [1, 0], sizes = [1, 2048], strides = [1, 1]} : vector<5x2048xf32> to vector<1x2048xf32>
    %41 = vector.broadcast %39 : vector<16x1xf32> to vector<16x2048xf32>
    %42 = vector.broadcast %40 : vector<1x2048xf32> to vector<16x2048xf32>
    %43 = arith.mulf %41, %42 : vector<16x2048xf32>
    %44 = arith.addf %38, %43 : vector<16x2048xf32>
    %45 = vector.extract_strided_slice %32 {offsets = [0, 2], sizes = [16, 1], strides = [1, 1]} : vector<16x5xf32> to vector<16x1xf32>
    %46 = vector.extract_strided_slice %33 {offsets = [2, 0], sizes = [1, 2048], strides = [1, 1]} : vector<5x2048xf32> to vector<1x2048xf32>
    %47 = vector.broadcast %45 : vector<16x1xf32> to vector<16x2048xf32>
    %48 = vector.broadcast %46 : vector<1x2048xf32> to vector<16x2048xf32>
    %49 = arith.mulf %47, %48 : vector<16x2048xf32>
    %50 = arith.addf %44, %49 : vector<16x2048xf32>
    %51 = vector.extract_strided_slice %32 {offsets = [0, 3], sizes = [16, 1], strides = [1, 1]} : vector<16x5xf32> to vector<16x1xf32>
    %52 = vector.extract_strided_slice %33 {offsets = [3, 0], sizes = [1, 2048], strides = [1, 1]} : vector<5x2048xf32> to vector<1x2048xf32>
    %53 = vector.broadcast %51 : vector<16x1xf32> to vector<16x2048xf32>
    %54 = vector.broadcast %52 : vector<1x2048xf32> to vector<16x2048xf32>
    %55 = arith.mulf %53, %54 : vector<16x2048xf32>
    %56 = arith.addf %50, %55 : vector<16x2048xf32>
    %57 = vector.extract_strided_slice %32 {offsets = [0, 4], sizes = [16, 1], strides = [1, 1]} : vector<16x5xf32> to vector<16x1xf32>
    %58 = vector.extract_strided_slice %33 {offsets = [4, 0], sizes = [1, 2048], strides = [1, 1]} : vector<5x2048xf32> to vector<1x2048xf32>
    %59 = vector.broadcast %57 : vector<16x1xf32> to vector<16x2048xf32>
    %60 = vector.broadcast %58 : vector<1x2048xf32> to vector<16x2048xf32>
    %61 = arith.mulf %59, %60 : vector<16x2048xf32>
    %62 = arith.addf %56, %61 : vector<16x2048xf32>
    %c16 = arith.constant 16 : index
    %c0_9 = arith.constant 0 : index
    %63 = vector.load %arg4[%c16, %c0_9] : memref<32x2048xf32, #tpu.memory_space<vmem>>, vector<16x2048xf32>
    tpu.vector_store %arg4[%c16, %c0_9], %62 {strides = array<i32>} : memref<32x2048xf32, #tpu.memory_space<vmem>>, vector<16x2048xf32>,
    return
  }
}

</mosaic_0001>

<bundles_post_ra>
// kernel: autoencoder_mix_forward.5
= control target key start
LH: loop header
LB: loop body
LE: loop exit
PB: predicated region body
PF: predicated region fallthrough
CT: control target
= control target key end

     0   :  { %v839_v3 = vmov 0.0   ;;  %v840_v8 = vmov 0   ;;  %vm60_vm0 = vcmask 130048   ;;  %v683_v54 = vlaneseq  ;;  %s1178_s1 = inlined_call_operand.vmem [shape: f32[16,2048], index: 1, kind: input, shape index: {}]   ;;  %s1179_s0 = inlined_call_operand.vmem [shape: f32[10,16], index: 0, kind: input, shape index: {}]   ;;  %s1180_s2 = inlined_call_operand.vmem [shape: f32[10,1], index: 2, kind: input, shape index: {}]   ;;  %s1181_s3 = inlined_call_operand.vmem [shape: f32[10,2048], index: 3, kind: output, shape index: {}]  }
   0x1   :  { %v17_v0 = vld [vmem:[%s1178_s1 + $0x8] sm:$0xff]  ;;  %v19_v2 = vld [vmem:[%s1178_s1 + $0x18] sm:$0xff]  ;;  %131 = vmatprep.mubr.f32.mxu0 %v839_v3  ;;  %208 = vmatprep.mubr.f32.mxu1 %v839_v3  ;;  %v16_v6 = vld [vmem:[%s1178_s1] sm:$0xff] }
   0x2   :  { %v33_v1 = vld [vmem:[%s1178_s1 + $0x88] sm:$0xff]  ;;  %v35_v5 = vld [vmem:[%s1178_s1 + $0x98] sm:$0xff]  ;;  %v32_v7 = vld [vmem:[%s1178_s1 + $0x80] sm:$0xff]  ;;  %838 = vset.pattern.permute.xlu0 %v840_v8  ;;  %v1013_v56 = vshrl.u32 %v683_v54, 7 }
   0x3   :  { %v804_v4 = vpack.c.bf16 %v33_v1, %v17_v0  ;;  %v808_v9 = vpack.c.bf16 %v35_v5, %v19_v2  ;;  %v806_v10 = vpack.c.bf16 %v32_v7, %v16_v6  ;;  %v18_v11 = vld [vmem:[%s1178_s1 + $0x10] sm:$0xff]  ;;  %v890_v13 = vld [vmem:[%s1179_s0] sm:$0xff]  ;;  %v21_v15 = vld [vmem:[%s1178_s1 + $0x28] sm:$0xff] }
   0x4   :  { %v34_v12 = vld [vmem:[%s1178_s1 + $0x90] sm:$0xff]  ;;  %v37_v16 = vld [vmem:[%s1178_s1 + $0xa8] sm:$0xff]  ;;  %v23_v17 = vld [vmem:[%s1178_s1 + $0x38] sm:$0xff]  ;;  %vm686_vm1 = vcmp.ge.s32.totalorder %v1013_v56, 5 }
   0x5   :  { %805 = vmatprep.subr.bf16.mxu0 %v804_v4  ;;  %v810_v14 = vpack.c.bf16 %v34_v12, %v18_v11  ;;  %809 = vmatprep.subr.bf16.mxu1 %v808_v9  ;;  %v812_v18 = vpack.c.bf16 %v37_v16, %v21_v15  ;;  %v39_v19 = vld [vmem:[%s1178_s1 + $0xb8] sm:$0xff]  ;;  %v20_v20 = vld [vmem:[%s1178_s1 + $0x20] sm:$0xff]  ;;  %v22_v24 = vld [vmem:[%s1178_s1 + $0x30] sm:$0xff] }
   0x6   :  { %807 = vmatpush1.bf16.msra.mxu0 %v806_v10  ;;  %v36_v21 = vld [vmem:[%s1178_s1 + $0xa0] sm:$0xff]  ;;  %v816_v22 = vpack.c.bf16 %v39_v19, %v23_v17  ;;  %v38_v25 = vld [vmem:[%s1178_s1 + $0xb0] sm:$0xff]  ;;  %v25_v27 = vld [vmem:[%s1178_s1 + $0x48] sm:$0xff] }
   0x7   :  { %811 = vmatpush1.bf16.msra.mxu1 %v810_v14  ;;  %v814_v23 = vpack.c.bf16 %v36_v21, %v20_v20  ;;  %813 = vmatprep.subr.bf16.mxu0 %v812_v18  ;;  %v818_v26 = vpack.c.bf16 %v38_v25, %v22_v24  ;;  %v41_v28 = vld [vmem:[%s1178_s1 + $0xc8] sm:$0xff]  ;;  %v27_v29 = vld [vmem:[%s1178_s1 + $0x58] sm:$0xff]  ;;  %v24_v34 = vld [vmem:[%s1178_s1 + $0x40] sm:$0xff] }
   0x8   :  { %817 = vmatprep.subr.bf16.mxu1 %v816_v22  ;;  %v820_v30 = vpack.c.bf16 %v41_v28, %v25_v27  ;;  %v43_v31 = vld [vmem:[%s1178_s1 + $0xd8] sm:$0xff]  ;;  %v15_v32 = vld [vmem:[%s1179_s0 + $0x8] sm:$0x3]  ;;  %v40_v35 = vld [vmem:[%s1178_s1 + $0xc0] sm:$0xff] }
   0x9   :  { %788 = vmatmul.mubr.msk.f32.vlgmr.msra.gmra.mrb[0].mxu0 %vm60_vm0, %v890_v13  ;;  %v824_v33 = vpack.c.bf16 %v43_v31, %v27_v29  ;;  %v26_v36 = vld [vmem:[%s1178_s1 + $0x50] sm:$0xff]  ;;  %v29_v38 = vld [vmem:[%s1178_s1 + $0x68] sm:$0xff]  ;;  %v48_v40 = vld [vmem:[%s1180_s2] sm:$0xff]  ;;  %v822_v41 = vpack.c.bf16 %v40_v35, %v24_v34 }
   0xa   :  { %790 = vmatmul.mubr.msk.f32.vlgmr.msra.gmra.mrb[0].mxu1 %vm60_vm0, %v890_v13  ;;  %815 = vmatpush1.bf16.msra.mxu0 %v814_v23  ;;  %v42_v37 = vld [vmem:[%s1178_s1 + $0xd0] sm:$0xff]  ;;  %v45_v39 = vld [vmem:[%s1178_s1 + $0xe8] sm:$0xff]  ;;  %v31_v42 = vld [vmem:[%s1178_s1 + $0x78] sm:$0xff] }
   0xb   :  { %819 = vmatpush1.bf16.msra.mxu1 %v818_v26  ;;  %137 = vmatprep.mubr.f32.mxu0 %v839_v3  ;;  %v47_v43 = vld [vmem:[%s1178_s1 + $0xf8] sm:$0xff]  ;;  %v826_v44 = vpack.c.bf16 %v42_v37, %v26_v36  ;;  %v828_v45 = vpack.c.bf16 %v45_v39, %v29_v38  ;;  %v28_v47 = vld [vmem:[%s1178_s1 + $0x60] sm:$0xff]  ;;  %v30_v49 = vld [vmem:[%s1178_s1 + $0x70] sm:$0xff] }
   0xc   :  { %214 = vmatprep.mubr.f32.mxu1 %v839_v3  ;;  %821 = vmatprep.subr.bf16.mxu0 %v820_v30  ;;  %v832_v46 = vpack.c.bf16 %v47_v43, %v31_v42  ;;  %v44_v48 = vld [vmem:[%s1178_s1 + $0xe0] sm:$0xff]  ;;  %v46_v50 = vld [vmem:[%s1178_s1 + $0xf0] sm:$0xff]  ;;  %v49_v51 = vld [vmem:[%s1180_s2 + $0x8] sm:$0x3] }
   0xd   :  { %789 = vmatmul.mubr.msk.f32.gmra.mrb[2].mxu0 %vm60_vm0, %v15_v32  ;;  %825 = vmatprep.subr.bf16.mxu1 %v824_v33  ;;  %v830_v52 = vpack.c.bf16 %v44_v48, %v28_v47  ;;  %v834_v53 = vpack.c.bf16 %v46_v50, %v30_v49 }
   0xe   :  { %791 = vmatmul.mubr.msk.f32.gmra.mrb[2].mxu1 %vm60_vm0, %v15_v32  ;;  %285 = vmatprep.mubr.f32.mxu0 %v839_v3 }
   0xf   :  { %362 = vmatprep.mubr.f32.mxu1 %v839_v3  ;;  %52 = vperm.xlu0 %838, %v48_v40  }
  0x11   :  { %792 = vmatmul.mubr.msk.f32.vlgmr.msra.gmra.mrb[4].mxu0 %vm60_vm0, %v890_v13 }
  0x12   :  { %794 = vmatmul.mubr.msk.f32.vlgmr.msra.gmra.mrb[4].mxu1 %vm60_vm0, %v890_v13  ;;  %823 = vmatpush1.bf16.msra.mxu0 %v822_v41 }
  0x13   :  { %827 = vmatpush1.bf16.msra.mxu1 %v826_v44  ;;  %291 = vmatprep.mubr.f32.mxu0 %v839_v3 }
  0x14   :  { %368 = vmatprep.mubr.f32.mxu1 %v839_v3  ;;  %829 = vmatprep.subr.bf16.mxu0 %v828_v45 }
  0x15   :  { %793 = vmatmul.mubr.msk.f32.gmra.mrb[6].mxu0 %vm60_vm0, %v15_v32  ;;  %833 = vmatprep.subr.bf16.mxu1 %v832_v46 }
  0x16   :  { %795 = vmatmul.mubr.msk.f32.gmra.mrb[6].mxu1 %vm60_vm0, %v15_v32  ;;  %439 = vmatprep.mubr.f32.mxu0 %v839_v3 }
  0x17   :  { %516 = vmatprep.mubr.f32.mxu1 %v839_v3  ;;  %57 = vperm.xlu0 %838, %v49_v51  }
  0x19   :  { %796 = vmatmul.mubr.msk.f32.vlgmr.msra.gmra.mrb[8].mxu0 %vm60_vm0, %v890_v13 }
  0x1a   :  { %798 = vmatmul.mubr.msk.f32.vlgmr.msra.gmra.mrb[8].mxu1 %vm60_vm0, %v890_v13  ;;  %831 = vmatpush1.bf16.msra.mxu0 %v830_v52 }
  0x1b   :  { %835 = vmatpush1.bf16.msra.mxu1 %v834_v53  ;;  %445 = vmatprep.mubr.f32.mxu0 %v839_v3 }
  0x1c   :  { %522 = vmatprep.mubr.f32.mxu1 %v839_v3 }
  0x1d   :  { %797 = vmatmul.mubr.msk.f32.gmra.mrb[10].mxu0 %vm60_vm0, %v15_v32 }
  0x1e   :  { %799 = vmatmul.mubr.msk.f32.gmra.mrb[10].mxu1 %vm60_vm0, %v15_v32  ;;  %593 = vmatprep.mubr.f32.mxu0 %v839_v3 }
  0x1f   :  { %670 = vmatprep.mubr.f32.mxu1 %v839_v3 }
  0x21   :  { %800 = vmatmul.mubr.msk.f32.vlgmr.msra.gmra.mrb[12].mxu0 %vm60_vm0, %v890_v13 }
  0x22   :  { %802 = vmatmul.mubr.msk.f32.vlgmr.msra.gmra.mrb[12].mxu1 %vm60_vm0, %v890_v13  ;;  %599 = vmatprep.mubr.f32.mxu0 %v839_v3 }
  0x23   :  { %676 = vmatprep.mubr.f32.mxu1 %v839_v3 }
  0x25   :  { %801 = vmatmul.mubr.msk.f32.gmra.mrb[14].mxu0 %vm60_vm0, %v15_v32 }
  0x26   :  { %803 = vmatmul.mubr.msk.f32.gmra.mrb[14].mxu1 %vm60_vm0, %v15_v32 }
  0x8e   :  { %v1011_v55 = vpop.permute.xlu0 %52 }
  0x96   :  { %v1019_v0 = vpop.permute.xlu0 %57 }
  0xdc   :  { %v133_v57 = vpop.f32.mrb[0].mxu0 }
  0xdd   :  { %v134_v58 = vadd.f32 %v133_v57, %v1011_v55  ;;  %v210_v59 = vpop.f32.mrb[0].mxu1  ;;  %v135_v60 = vpop.f32.mrb[1].mxu0 }
  0xde   :  { %v211_v61 = vadd.f32 %v210_v59, %v1011_v55  ;;  %v136_v62 = vadd.f32 %v135_v60, %v1011_v55  ;;  %v212_v63 = vpop.f32.mrb[1].mxu1 }
  0xdf   :  { %v688_v1 = vmax.f32 %v134_v58, 0.0  ;;  %v213_v2 = vadd.f32 %v212_v63, %v1011_v55 }
  0xe0   :  { %v690_v3 = vmax.f32 %v211_v61, 0.0  ;;  %v689_v4 = vmax.f32 %v136_v62, 0.0  ;;  %v139_v5 = vpop.f32.mrb[2].mxu0 }
  0xe1   :  { %v720_v6 = vsel %vm686_vm1, %v688_v1, %v134_v58  ;;  %v691_v7 = vmax.f32 %v213_v2, 0.0  ;;  %v216_v8 = vpop.f32.mrb[2].mxu1  ;;  %v140_v9 = vadd.f32 %v139_v5, %v1019_v0  ;;  %v141_v10 = vpop.f32.mrb[3].mxu0 }
  0xe2   :  { %752 = vst [vmem:[%s1181_s3] sm:$0xff] %v720_v6  ;;  %v722_v11 = vsel %vm686_vm1, %v690_v3, %v211_v61  ;;  %v721_v12 = vsel %vm686_vm1, %v689_v4, %v136_v62  ;;  %v217_v13 = vadd.f32 %v216_v8, %v1019_v0  ;;  %v142_v14 = vadd.f32 %v141_v10, %v1019_v0  ;;  %v218_v15 = vpop.f32.mrb[3].mxu1 }
  0xe3   :  { %754 = vst [vmem:[%s1181_s3 + $0x10] sm:$0xff] %v722_v11  ;;  %753 = vst [vmem:[%s1181_s3 + $0x8] sm:$0xff] %v721_v12  ;;  %v723_v16 = vsel %vm686_vm1, %v691_v7, %v213_v2  ;;  %v704_v17 = vmax.f32 %v140_v9, 0.0  ;;  %v219_v18 = vadd.f32 %v218_v15, %v1019_v0 }
  0xe4   :  { %755 = vst [vmem:[%s1181_s3 + $0x18] sm:$0xff] %v723_v16  ;;  %v706_v19 = vmax.f32 %v217_v13, 0.0  ;;  %v705_v20 = vmax.f32 %v142_v14, 0.0  ;;  %v287_v21 = vpop.f32.mrb[4].mxu0 }
  0xe5   :  { %768 = vst [vmem:[%s1181_s3 + $0x80] sm:$0x3] %v704_v17  ;;  %v707_v22 = vmax.f32 %v219_v18, 0.0  ;;  %v288_v23 = vadd.f32 %v287_v21, %v1011_v55  ;;  %v364_v24 = vpop.f32.mrb[4].mxu1  ;;  %v289_v25 = vpop.f32.mrb[5].mxu0 }
  0xe6   :  { %770 = vst [vmem:[%s1181_s3 + $0x90] sm:$0x3] %v706_v19  ;;  %769 = vst [vmem:[%s1181_s3 + $0x88] sm:$0x3] %v705_v20  ;;  %v365_v26 = vadd.f32 %v364_v24, %v1011_v55  ;;  %v290_v27 = vadd.f32 %v289_v25, %v1011_v55  ;;  %v366_v28 = vpop.f32.mrb[5].mxu1 }
  0xe7   :  { %771 = vst [vmem:[%s1181_s3 + $0x98] sm:$0x3] %v707_v22  ;;  %v692_v29 = vmax.f32 %v288_v23, 0.0  ;;  %v367_v30 = vadd.f32 %v366_v28, %v1011_v55 }
  0xe8   :  { %v694_v31 = vmax.f32 %v365_v26, 0.0  ;;  %v693_v32 = vmax.f32 %v290_v27, 0.0  ;;  %v293_v33 = vpop.f32.mrb[6].mxu0 }
  0xe9   :  { %v724_v34 = vsel %vm686_vm1, %v692_v29, %v288_v23  ;;  %v695_v35 = vmax.f32 %v367_v30, 0.0  ;;  %v294_v36 = vadd.f32 %v293_v33, %v1019_v0  ;;  %v370_v37 = vpop.f32.mrb[6].mxu1  ;;  %v295_v38 = vpop.f32.mrb[7].mxu0 }
  0xea   :  { %756 = vst [vmem:[%s1181_s3 + $0x20] sm:$0xff] %v724_v34  ;;  %v726_v39 = vsel %vm686_vm1, %v694_v31, %v365_v26  ;;  %v725_v40 = vsel %vm686_vm1, %v693_v32, %v290_v27  ;;  %v371_v41 = vadd.f32 %v370_v37, %v1019_v0  ;;  %v296_v42 = vadd.f32 %v295_v38, %v1019_v0  ;;  %v372_v43 = vpop.f32.mrb[7].mxu1 }
  0xeb   :  { %758 = vst [vmem:[%s1181_s3 + $0x30] sm:$0xff] %v726_v39  ;;  %757 = vst [vmem:[%s1181_s3 + $0x28] sm:$0xff] %v725_v40  ;;  %v727_v44 = vsel %vm686_vm1, %v695_v35, %v367_v30  ;;  %v708_v45 = vmax.f32 %v294_v36, 0.0  ;;  %v373_v46 = vadd.f32 %v372_v43, %v1019_v0 }
  0xec   :  { %759 = vst [vmem:[%s1181_s3 + $0x38] sm:$0xff] %v727_v44  ;;  %v710_v47 = vmax.f32 %v371_v41, 0.0  ;;  %v709_v48 = vmax.f32 %v296_v42, 0.0  ;;  %v441_v49 = vpop.f32.mrb[8].mxu0 }
  0xed   :  { %772 = vst [vmem:[%s1181_s3 + $0xa0] sm:$0x3] %v708_v45  ;;  %v711_v50 = vmax.f32 %v373_v46, 0.0  ;;  %v442_v51 = vadd.f32 %v441_v49, %v1011_v55  ;;  %v518_v52 = vpop.f32.mrb[8].mxu1  ;;  %v443_v53 = vpop.f32.mrb[9].mxu0 }
  0xee   :  { %774 = vst [vmem:[%s1181_s3 + $0xb0] sm:$0x3] %v710_v47  ;;  %773 = vst [vmem:[%s1181_s3 + $0xa8] sm:$0x3] %v709_v48  ;;  %v519_v54 = vadd.f32 %v518_v52, %v1011_v55  ;;  %v444_v57 = vadd.f32 %v443_v53, %v1011_v55  ;;  %v520_v58 = vpop.f32.mrb[9].mxu1 }
  0xef   :  { %775 = vst [vmem:[%s1181_s3 + $0xb8] sm:$0x3] %v711_v50  ;;  %v696_v59 = vmax.f32 %v442_v51, 0.0  ;;  %v521_v60 = vadd.f32 %v520_v58, %v1011_v55 }
  0xf0   :  { %v698_v61 = vmax.f32 %v519_v54, 0.0  ;;  %v697_v62 = vmax.f32 %v444_v57, 0.0  ;;  %v447_v63 = vpop.f32.mrb[10].mxu0 }
  0xf1   :  { %v728_v1 = vsel %vm686_vm1, %v696_v59, %v442_v51  ;;  %v699_v2 = vmax.f32 %v521_v60, 0.0  ;;  %v448_v3 = vadd.f32 %v447_v63, %v1019_v0  ;;  %v524_v4 = vpop.f32.mrb[10].mxu1  ;;  %v449_v5 = vpop.f32.mrb[11].mxu0 }
  0xf2   :  { %760 = vst [vmem:[%s1181_s3 + $0x40] sm:$0xff] %v728_v1  ;;  %v730_v6 = vsel %vm686_vm1, %v698_v61, %v519_v54  ;;  %v729_v7 = vsel %vm686_vm1, %v697_v62, %v444_v57  ;;  %v525_v8 = vadd.f32 %v524_v4, %v1019_v0  ;;  %v450_v9 = vadd.f32 %v449_v5, %v1019_v0  ;;  %v526_v10 = vpop.f32.mrb[11].mxu1 }
  0xf3   :  { %762 = vst [vmem:[%s1181_s3 + $0x50] sm:$0xff] %v730_v6  ;;  %761 = vst [vmem:[%s1181_s3 + $0x48] sm:$0xff] %v729_v7  ;;  %v731_v11 = vsel %vm686_vm1, %v699_v2, %v521_v60  ;;  %v712_v12 = vmax.f32 %v448_v3, 0.0  ;;  %v527_v13 = vadd.f32 %v526_v10, %v1019_v0 }
  0xf4   :  { %763 = vst [vmem:[%s1181_s3 + $0x58] sm:$0xff] %v731_v11  ;;  %v714_v14 = vmax.f32 %v525_v8, 0.0  ;;  %v713_v15 = vmax.f32 %v450_v9, 0.0  ;;  %v595_v16 = vpop.f32.mrb[12].mxu0 }
  0xf5   :  { %776 = vst [vmem:[%s1181_s3 + $0xc0] sm:$0x3] %v712_v12  ;;  %v715_v17 = vmax.f32 %v527_v13, 0.0  ;;  %v596_v18 = vadd.f32 %v595_v16, %v1011_v55  ;;  %v672_v19 = vpop.f32.mrb[12].mxu1  ;;  %v597_v20 = vpop.f32.mrb[13].mxu0 }
  0xf6   :  { %778 = vst [vmem:[%s1181_s3 + $0xd0] sm:$0x3] %v714_v14  ;;  %777 = vst [vmem:[%s1181_s3 + $0xc8] sm:$0x3] %v713_v15  ;;  %v673_v21 = vadd.f32 %v672_v19, %v1011_v55  ;;  %v598_v22 = vadd.f32 %v597_v20, %v1011_v55  ;;  %v674_v23 = vpop.f32.mrb[13].mxu1 }
  0xf7   :  { %779 = vst [vmem:[%s1181_s3 + $0xd8] sm:$0x3] %v715_v17  ;;  %v700_v24 = vmax.f32 %v596_v18, 0.0  ;;  %v675_v25 = vadd.f32 %v674_v23, %v1011_v55 }
  0xf8   :  { %v702_v26 = vmax.f32 %v673_v21, 0.0  ;;  %v701_v27 = vmax.f32 %v598_v22, 0.0  ;;  %v601_v28 = vpop.f32.mrb[14].mxu0 }
  0xf9   :  { %v732_v29 = vsel %vm686_vm1, %v700_v24, %v596_v18  ;;  %v703_v30 = vmax.f32 %v675_v25, 0.0  ;;  %v602_v31 = vadd.f32 %v601_v28, %v1019_v0  ;;  %v678_v32 = vpop.f32.mrb[14].mxu1  ;;  %v603_v33 = vpop.f32.mrb[15].mxu0 }
  0xfa   :  { %764 = vst [vmem:[%s1181_s3 + $0x60] sm:$0xff] %v732_v29  ;;  %v734_v34 = vsel %vm686_vm1, %v702_v26, %v673_v21  ;;  %v733_v55 = vsel %vm686_vm1, %v701_v27, %v598_v22  ;;  %v679_v35 = vadd.f32 %v678_v32, %v1019_v0  ;;  %v604_v36 = vadd.f32 %v603_v33, %v1019_v0  ;;  %v680_v37 = vpop.f32.mrb[15].mxu1 }
  0xfb   :  { %766 = vst [vmem:[%s1181_s3 + $0x70] sm:$0xff] %v734_v34  ;;  %765 = vst [vmem:[%s1181_s3 + $0x68] sm:$0xff] %v733_v55  ;;  %v735_v38 = vsel %vm686_vm1, %v703_v30, %v675_v25  ;;  %v716_v39 = vmax.f32 %v602_v31, 0.0  ;;  %v681_v40 = vadd.f32 %v680_v37, %v1019_v0 }
  0xfc   :  { %767 = vst [vmem:[%s1181_s3 + $0x78] sm:$0xff] %v735_v38  ;;  %v718_v41 = vmax.f32 %v679_v35, 0.0  ;;  %v717_v42 = vmax.f32 %v604_v36, 0.0 }
  0xfd   :  { %780 = vst [vmem:[%s1181_s3 + $0xe0] sm:$0x3] %v716_v39  ;;  %v719_v43 = vmax.f32 %v681_v40, 0.0 }
  0xfe   :  { %782 = vst [vmem:[%s1181_s3 + $0xf0] sm:$0x3] %v718_v41  ;;  %781 = vst [vmem:[%s1181_s3 + $0xe8] sm:$0x3] %v717_v42 }
  0xff   :  { %783 = vst [vmem:[%s1181_s3 + $0xf8] sm:$0x3] %v719_v43 }

// kernel: autoencoder_mix_forward.7
= control target key start
LH: loop header
LB: loop body
LE: loop exit
PB: predicated region body
PF: predicated region fallthrough
CT: control target
= control target key end

     0   :  { %v67_v0 = vlaneseq  ;;  %v1082_v4 = vmov 1983009808   ;;  %vm554_vm0 = vcmask 1043456   ;;  %vm550_vm1 = vcmask 162816   ;;  %s1357_s1 = inlined_call_operand.vmem [shape: f32[20,1280], index: 1, kind: input, shape index: {}]   ;;  %s1358_s0 = inlined_call_operand.vmem [shape: f32[2,1280], index: 0, kind: input, shape index: {}]   ;;  %s1359_s3 = inlined_call_operand.vmem [shape: f32[20,1280], index: 3, kind: input, shape index: {}]   ;;  %s1360_s2 = inlined_call_operand.vmem [shape: f32[1,20], index: 2, kind: input, shape index: {}]   ;;  %s1361_s4 = inlined_call_operand.vmem [shape: f32[1,1280], index: 4, kind: input, shape index: {}]   ;;  %s1362_s5 = inlined_call_operand.vmem [shape: f32[2,1280], index: 5, kind: output, shape index: {}]  }
   0x1   :  { %v26_v1 = vld [vmem:[%s1357_s1 + $0x18] sm:$0xff]  ;;  %v36_v2 = vld [vmem:[%s1357_s1 + $0x68] sm:$0xff]  ;;  %v25_v3 = vld [vmem:[%s1357_s1 + $0x10] sm:$0xff]  ;;  %v65_v5 = vunpack.c.l.s4 %v1082_v4 }
   0x2   :  { %v1034_v6 = vpack.c.bf16 %v36_v2, %v26_v1  ;;  %v35_v7 = vld [vmem:[%s1357_s1 + $0x60] sm:$0xff]  ;;  %v1126_v8 = vshrl.u32 %v67_v0, 7  ;;  %v46_v10 = vld [vmem:[%s1357_s1 + $0xb8] sm:$0xf]  ;;  %v28_v15 = vld [vmem:[%s1357_s1 + $0x28] sm:$0xff] }
   0x3   :  { %v1036_v9 = vpack.c.bf16 %v35_v7, %v25_v3  ;;  %v20_v11 = vld [vmem:[%s1358_s0] sm:$0xff]  ;;  %v66_v12 = vunpack.c.0.s8 %v65_v5  ;;  %v21_v16 = vld [vmem:[%s1358_s0 + $0x8] sm:$0xff]  ;;  %v38_v18 = vld [vmem:[%s1357_s1 + $0x78] sm:$0xff]  ;;  %v1083_v7 = vmov 0.0  }
   0x4   :  { %1035 = vmatprep.subr.bf16.mxu0 %v1034_v6  ;;  %v63_v13 = vcombine.high %v20_v11, %v20_v11  ;;  %v24_v19 = vld [vmem:[%s1357_s1 + $0x8] sm:$0xff]  ;;  %v34_v20 = vld [vmem:[%s1357_s1 + $0x58] sm:$0xff]  ;;  %v23_v22 = vld [vmem:[%s1357_s1] sm:$0xff]  ;;  %v1038_v29 = vpack.c.bf16 %v38_v18, %v28_v15  ;;  %v80_v38 = vcombine.high %v21_v16, %v21_v16 }
   0x5   :  { %1037 = vmatpush1.bf16.xpose.msra.mxu0 %v1036_v9  ;;  %v1135_v14 = vsub.s32 %v66_v12, %v1126_v8  ;;  %v1030_v21 = vpack.c.bf16 %v34_v20, %v24_v19  ;;  %v33_v23 = vld [vmem:[%s1357_s1 + $0x50] sm:$0xff]  ;;  %v27_v30 = vld [vmem:[%s1357_s1 + $0x20] sm:$0xff]  ;;  %v44_v32 = vld [vmem:[%s1357_s1 + $0xa8] sm:$0xf] }
   0x6   :  { %189 = vmatprep.subr.mxu0 %v46_v10  ;;  %v45_v25 = vld [vmem:[%s1357_s1 + $0xb0] sm:$0xf]  ;;  %v1032_v28 = vpack.c.bf16 %v33_v23, %v23_v22  ;;  %v48_v36 = vld [vmem:[%s1357_s1 + $0xc8] sm:$0xf]  ;;  %v43_v37 = vld [vmem:[%s1357_s1 + $0xa0] sm:$0xf] }
   0x7   :  { %v77_v17 = vrot.slane %v63_v13, %v1135_v14  ;;  %v70_v24 = vrot.slane %v20_v11, %v1135_v14  ;;  %v87_v27 = vrot.slane %v21_v16, %v1135_v14  ;;  %v37_v31 = vld [vmem:[%s1357_s1 + $0x70] sm:$0xff]  ;;  %1031 = vmatprep.subr.bf16.mxu1 %v1030_v21  ;;  %v30_v39 = vld [vmem:[%s1357_s1 + $0x38] sm:$0xff]  ;;  %v40_v40 = vld [vmem:[%s1357_s1 + $0x88] sm:$0xff]  ;;  %v94_v41 = vrot.slane %v80_v38, %v1135_v14 }
   0x8   :  { %1033 = vmatpush1.bf16.xpose.msra.mxu1 %v1032_v28  ;;  %v1040_v34 = vpack.c.bf16 %v37_v31, %v27_v30  ;;  %v47_v42 = vld [vmem:[%s1357_s1 + $0xc0] sm:$0xf]  ;;  %v1042_v43 = vpack.c.bf16 %v40_v40, %v30_v39  ;;  %v29_v44 = vld [vmem:[%s1357_s1 + $0x30] sm:$0xff]  ;;  %v50_v48 = vld [vmem:[%s1357_s1 + $0xd8] sm:$0xf] }
   0x9   :  { %v79_v26 = vcombine.high %v77_v17, %v77_v17  ;;  %v78_v33 = vcombine.high %v70_v24, %v70_v24  ;;  %119 = vmatprep.subr.mxu1 %v44_v32  ;;  %v95_v35 = vcombine.high %v87_v27, %v87_v27  ;;  %v39_v45 = vld [vmem:[%s1357_s1 + $0x80] sm:$0xff]  ;;  %v96_v47 = vcombine.high %v94_v41, %v94_v41  ;;  %v32_v49 = vld [vmem:[%s1357_s1 + $0x48] sm:$0xff]  ;;  %v42_v50 = vld [vmem:[%s1357_s1 + $0x98] sm:$0xff] }
   0xa   :  { %v1044_v46 = vpack.c.bf16 %v39_v45, %v29_v44  ;;  %v49_v51 = vld [vmem:[%s1357_s1 + $0xd0] sm:$0xf]  ;;  %v1046_v52 = vpack.c.bf16 %v42_v50, %v32_v49  ;;  %v31_v53 = vld [vmem:[%s1357_s1 + $0x40] sm:$0xff]  ;;  %v52_v58 = vld [vmem:[%s1357_s1 + $0xe8] sm:$0xf]  ;;  %v506_v49 = vsub.s32 1, %v1126_v8 }
   0xb   :  { %249 = vmatprep.mubr.f32.mxu0 %v79_v26  ;;  %179 = vmatprep.mubr.f32.mxu1 %v78_v33  ;;  %v41_v54 = vld [vmem:[%s1357_s1 + $0x90] sm:$0xff]  ;;  %v51_v59 = vld [vmem:[%s1357_s1 + $0xe0] sm:$0xf]  ;;  %v467_v60 = vld [vmem:[%s1359_s3 + $0x8] sm:$0xff] }
   0xc   :  { %v1013_v55 = vld.sshfl [vmem:[%s1358_s0 + $0x10] sm:$0x33 pattern:$0x76325410]  ;;  %v1048_v56 = vpack.c.bf16 %v41_v54, %v31_v53  ;;  %v477_v61 = vld [vmem:[%s1359_s3 + $0x58] sm:$0xff]  ;;  %v466_v62 = vld [vmem:[%s1359_s3] sm:$0xff] }
   0xd   :  { %190 = vmatpush1.xpose.msra.mxu0 %v45_v25  ;;  %v104_v57 = vcombine.high %v1013_v55, %v1013_v55  ;;  %v1050_v63 = vpack.c.bf16 %v477_v61, %v467_v60  ;;  %v476_v0 = vld [vmem:[%s1359_s3 + $0x50] sm:$0xff]  ;;  %v487_v2 = vld [vmem:[%s1359_s3 + $0xa8] sm:$0xf]  ;;  %v469_v3 = vld [vmem:[%s1359_s3 + $0x18] sm:$0xff]  ;;  %v514_v54 = vsub.s32 3, %v1126_v8 }
   0xe   :  { %1039 = vmatprep.subr.bf16.mxu0 %v1038_v29  ;;  %v1052_v1 = vpack.c.bf16 %v476_v0, %v466_v62  ;;  %v479_v4 = vld [vmem:[%s1359_s3 + $0x68] sm:$0xff]  ;;  %v486_v5 = vld [vmem:[%s1359_s3 + $0xa0] sm:$0xf]  ;;  %v468_v13 = vld [vmem:[%s1359_s3 + $0x10] sm:$0xff]  ;;  %v518_v62 = vsub.s32 4, %v1126_v8 }
   0xf   :  { %v1054_v6 = vpack.c.bf16 %v479_v4, %v469_v3  ;;  %v1012_v11 = vld [vmem:[%s1360_s2] ss:$0 sm:$0xff]  ;;  %v489_v21 = vld [vmem:[%s1359_s3 + $0xb8] sm:$0xf]  ;;  %v471_v22 = vld [vmem:[%s1359_s3 + $0x28] sm:$0xff] }
  0x10   :  { %250 = vmatmul.mubr.f32.vlgmr.msra.gmra.mrb[0].mxu0 %v77_v17  ;;  %120 = vmatpush1.xpose.msra.mxu1 %v43_v37  ;;  %v478_v15 = vld [vmem:[%s1359_s3 + $0x60] sm:$0xff]  ;;  %v481_v23 = vld [vmem:[%s1359_s3 + $0x78] sm:$0xff]  ;;  %v480_v25 = vld [vmem:[%s1359_s3 + $0x70] sm:$0xff] }
  0x11   :  { %1041 = vmatpush1.bf16.xpose.msra.mxu0 %v1040_v34  ;;  %319 = vmatprep.mubr.f32.mxu0 %v95_v35  ;;  %v1056_v19 = vpack.c.bf16 %v478_v15, %v468_v13  ;;  %v488_v26 = vld [vmem:[%s1359_s3 + $0xb0] sm:$0xf]  ;;  %v491_v29 = vld [vmem:[%s1359_s3 + $0xc8] sm:$0xf]  ;;  %v473_v30 = vld [vmem:[%s1359_s3 + $0x38] sm:$0xff]  ;;  %v530_v13 = vsub.s32 7, %v1126_v8 }
  0x12   :  { %259 = vmatprep.subr.mxu0 %v48_v36  ;;  %1051 = vmatprep.subr.bf16.mxu1 %v1050_v63  ;;  %v483_v31 = vld [vmem:[%s1359_s3 + $0x88] sm:$0xff]  ;;  %v472_v32 = vld [vmem:[%s1359_s3 + $0x30] sm:$0xff]  ;;  %v482_v33 = vld [vmem:[%s1359_s3 + $0x80] sm:$0xff] }
  0x13   :  { %180 = vmatmul.mubr.f32.vlgmr.msra.gmra.mrb[0].mxu1 %v70_v24  ;;  %v470_v24 = vld [vmem:[%s1359_s3 + $0x20] sm:$0xff]  ;;  %v1062_v35 = vpack.c.bf16 %v483_v31, %v473_v30  ;;  %v1064_v36 = vpack.c.bf16 %v482_v33, %v472_v32  ;;  %v493_v37 = vld [vmem:[%s1359_s3 + $0xd8] sm:$0xf]  ;;  %v475_v38 = vld [vmem:[%s1359_s3 + $0x48] sm:$0xff] }
  0x14   :  { %1053 = vmatpush1.bf16.msra.mxu1 %v1052_v1  ;;  %649 = vmatprep.mubr.f32.mxu1 %v1083_v7  ;;  %v1060_v28 = vpack.c.bf16 %v480_v25, %v470_v24  ;;  %v490_v34 = vld [vmem:[%s1359_s3 + $0xc0] sm:$0xf]  ;;  %v485_v39 = vld [vmem:[%s1359_s3 + $0x98] sm:$0xff]  ;;  %v495_v45 = vld [vmem:[%s1359_s3 + $0xe8] sm:$0xf]  ;;  %v522_v1 = vsub.s32 5, %v1126_v8 }
  0x15   :  { %1014 = vmatprep.subr.msk.mxu1 %vm554_vm0, %v487_v2  ;;  %v474_v40 = vld [vmem:[%s1359_s3 + $0x40] sm:$0xff] }
  0x18   :  { %1015 = vmatpush1.msk.msra.mxu1 %vm554_vm0, %v486_v5 }
  0x19   :  { %260 = vmatpush1.xpose.msra.mxu0 %v47_v42  ;;  %1055 = vmatprep.subr.bf16.mxu1 %v1054_v6  ;;  %v492_v42 = vld [vmem:[%s1359_s3 + $0xd0] sm:$0xf] }
  0x1a   :  { %1043 = vmatprep.subr.bf16.mxu0 %v1042_v43  ;;  %v1066_v43 = vpack.c.bf16 %v485_v39, %v475_v38 }
  0x1c   :  { %320 = vmatmul.mubr.f32.vlgmr.msra.gmra.mrb[0].mxu0 %v87_v27  ;;  %v1058_v27 = vpack.c.bf16 %v481_v23, %v471_v22 }
  0x1d   :  { %1045 = vmatpush1.bf16.xpose.msra.mxu0 %v1044_v46  ;;  %389 = vmatprep.mubr.f32.mxu0 %v96_v47  ;;  %v494_v46 = vld [vmem:[%s1359_s3 + $0xe0] sm:$0xf]  ;;  %v502_v47 = vsub.s32 0, %v1126_v8 }
  0x1e   :  { %329 = vmatprep.subr.mxu0 %v50_v48  ;;  %v496_v48 = vld [vmem:[%s1361_s4] sm:$0xff] }
  0x1f   :  { %v503_v50 = vrot.slane %v496_v48, %v502_v47  ;;  %v515_v61 = vrot.slane %v496_v48, %v514_v54  ;;  %v519_v6 = vrot.slane %v496_v48, %v518_v62  ;;  %v531_v24 = vrot.slane %v496_v48, %v530_v13 }
  0x25   :  { %330 = vmatpush1.xpose.msra.mxu0 %v49_v51  ;;  %v507_v51 = vrot.slane %v496_v48, %v506_v49 }
  0x26   :  { %1047 = vmatprep.subr.bf16.mxu0 %v1046_v52  ;;  %v510_v52 = vsub.s32 2, %v1126_v8 }
  0x28   :  { %390 = vmatmul.mubr.f32.vlgmr.msra.gmra.mrb[0].mxu0 %v94_v41  ;;  %v484_v41 = vld [vmem:[%s1359_s3 + $0x90] sm:$0xff] }
  0x29   :  { %1049 = vmatpush1.bf16.xpose.msra.mxu0 %v1048_v56  ;;  %459 = vmatprep.mubr.f32.mxu0 %v104_v57  ;;  %v1068_v44 = vpack.c.bf16 %v484_v41, %v474_v40 }
  0x2a   :  { %399 = vmatprep.subr.mxu0 %v52_v58 }
  0x31   :  { %400 = vmatpush1.xpose.msra.mxu0 %v51_v59  ;;  %v511_v59 = vrot.slane %v496_v48, %v510_v52 }
  0x34   :  { %460 = vmatmul.mubr.f32.vlgmr.msra.gmra.mrb[0].mxu0 %v1013_v55 }
  0xe6   :  { %v181_v9 = vpop.f32.mrb[0].mxu1 }
  0xe7   :  { %v183_v10 = vpop.f32.mrb[1].mxu1  ;;  %v182_v12 = vadd.f32 %v1012_v11, %v181_v9  ;;  %v523_v9 = vrot.slane %v496_v48, %v522_v1 }
  0xe8   :  { %v526_v10 = vsub.s32 6, %v1126_v8 }
 0x107   :  { %v461_v16 = vpop.f32.mrb[0].mxu0 }
 0x108   :  { %v1071_v17 = vadd.f32 %v461_v16, %v182_v12  ;;  %v463_v18 = vpop.f32.mrb[1].mxu0 }
 0x10a   :  { %v465_v20 = vmax.f32 %v1071_v17, 0.0 }
 0x10c   :  { %1016 = vmatmul.mubr.msk.f32.vlgmr.msra.gmra.mrb[2].mxu1 %vm550_vm1, %v465_v20 }
 0x10d   :  { %1057 = vmatpush1.bf16.msra.mxu1 %v1056_v19  ;;  %720 = vmatprep.mubr.f32.mxu1 %v1083_v7 }
 0x10e   :  { %1017 = vmatprep.subr.msk.mxu1 %vm554_vm0, %v489_v21  ;;  %v527_v21 = vrot.slane %v496_v48, %v526_v10 }
 0x111   :  { %1018 = vmatpush1.msk.msra.mxu1 %vm554_vm0, %v488_v26 }
 0x112   :  { %1019 = vmatmul.mubr.msk.f32.vlgmr.msra.gmra.mrb[4].mxu1 %vm550_vm1, %v465_v20  ;;  %1059 = vmatprep.subr.bf16.mxu1 %v1058_v27  ;;  %v497_v27 = vld [vmem:[%s1361_s4 + $0x8] sm:$0x3] }
 0x113   :  { %1061 = vmatpush1.bf16.msra.mxu1 %v1060_v28  ;;  %791 = vmatprep.mubr.f32.mxu1 %v1083_v7  ;;  %v535_v31 = vrot.slane %v497_v27, %v502_v47  ;;  %v539_v33 = vrot.slane %v497_v27, %v506_v49 }
 0x114   :  { %1020 = vmatprep.subr.msk.mxu1 %vm554_vm0, %v491_v29 }
 0x117   :  { %1021 = vmatpush1.msk.msra.mxu1 %vm554_vm0, %v490_v34 }
 0x118   :  { %1022 = vmatmul.mubr.msk.f32.vlgmr.msra.gmra.mrb[6].mxu1 %vm550_vm1, %v465_v20  ;;  %1063 = vmatprep.subr.bf16.mxu1 %v1062_v35 }
 0x119   :  { %1065 = vmatpush1.bf16.msra.mxu1 %v1064_v36  ;;  %862 = vmatprep.mubr.f32.mxu1 %v1083_v7 }
 0x11a   :  { %1023 = vmatprep.subr.msk.mxu1 %vm554_vm0, %v493_v37 }
 0x11d   :  { %1024 = vmatpush1.msk.msra.mxu1 %vm554_vm0, %v492_v42 }
 0x11e   :  { %1025 = vmatmul.mubr.msk.f32.vlgmr.msra.gmra.mrb[8].mxu1 %vm550_vm1, %v465_v20  ;;  %1067 = vmatprep.subr.bf16.mxu1 %v1066_v43 }
 0x11f   :  { %1069 = vmatpush1.bf16.msra.mxu1 %v1068_v44  ;;  %933 = vmatprep.mubr.f32.mxu1 %v1083_v7 }
 0x120   :  { %1026 = vmatprep.subr.msk.mxu1 %vm554_vm0, %v495_v45 }
 0x123   :  { %1027 = vmatpush1.msk.msra.mxu1 %vm554_vm0, %v494_v46 }
 0x124   :  { %1028 = vmatmul.mubr.msk.f32.vlgmr.msra.gmra.mrb[10].mxu1 %vm550_vm1, %v465_v20 }
 0x1df   :  { %v651_v53 = vpop.f32.mrb[2].mxu1 }
 0x1e0   :  { %v652_v55 = vadd.f32 %v651_v53, %v503_v50  ;;  %v653_v56 = vpop.f32.mrb[3].mxu1 }
 0x1e1   :  { %v654_v57 = vadd.f32 %v653_v56, %v507_v51 }
 0x1e2   :  { %v940_v58 = vmax.f32 %v652_v55, 0.0 }
 0x1e3   :  { %v941_v60 = vmax.f32 %v654_v57, 0.0 }
 0x1e5   :  { %v960_v63 = vcombine.low %v940_v58, %v941_v60  ;;  %v722_v0 = vpop.f32.mrb[4].mxu1 }
 0x1e6   :  { %v723_v2 = vadd.f32 %v722_v0, %v511_v59  ;;  %v724_v3 = vpop.f32.mrb[5].mxu1 }
 0x1e7   :  { %v725_v4 = vadd.f32 %v724_v3, %v515_v61  ;;  %v968_v17 = vrot.slane %v960_v63, %v1135_v14 }
 0x1e8   :  { %v942_v5 = vmax.f32 %v723_v2, 0.0 }
 0x1e9   :  { %v943_v7 = vmax.f32 %v725_v4, 0.0 }
 0x1eb   :  { %v961_v11 = vcombine.low %v942_v5, %v943_v7  ;;  %v793_v12 = vpop.f32.mrb[6].mxu1 }
 0x1ec   :  { %v794_v15 = vadd.f32 %v793_v12, %v519_v6  ;;  %v795_v16 = vpop.f32.mrb[7].mxu1 }
 0x1ed   :  { %v975_v18 = vrot.slane %v961_v11, %v1135_v14  ;;  %v796_v19 = vadd.f32 %v795_v16, %v523_v9 }
 0x1ee   :  { %v944_v20 = vmax.f32 %v794_v15, 0.0 }
 0x1ef   :  { %v976_v22 = vcombine.low %v968_v17, %v975_v18  ;;  %v945_v23 = vmax.f32 %v796_v19, 0.0 }
 0x1f1   :  { %v977_v25 = vcombine.low %v944_v20, %v945_v23  ;;  %v864_v26 = vpop.f32.mrb[8].mxu1  ;;  %1005 = vst [vmem:[%s1362_s5] sm:$0xff] %v976_v22 }
 0x1f2   :  { %v865_v8 = vadd.f32 %v864_v26, %v527_v21  ;;  %v866_v28 = vpop.f32.mrb[9].mxu1 }
 0x1f3   :  { %v867_v29 = vadd.f32 %v866_v28, %v531_v24  ;;  %v985_v38 = vrot.slane %v977_v25, %v1135_v14 }
 0x1f4   :  { %v946_v30 = vmax.f32 %v865_v8, 0.0 }
 0x1f5   :  { %v947_v32 = vmax.f32 %v867_v29, 0.0 }
 0x1f7   :  { %v978_v34 = vcombine.low %v946_v30, %v947_v32  ;;  %v935_v35 = vpop.f32.mrb[10].mxu1 }
 0x1f8   :  { %v936_v36 = vadd.f32 %v935_v35, %v535_v31  ;;  %v937_v37 = vpop.f32.mrb[11].mxu1 }
 0x1f9   :  { %v992_v39 = vrot.slane %v978_v34, %v1135_v14  ;;  %v938_v40 = vadd.f32 %v937_v37, %v539_v33 }
 0x1fa   :  { %v948_v41 = vmax.f32 %v936_v36, 0.0 }
 0x1fb   :  { %v993_v42 = vcombine.low %v985_v38, %v992_v39  ;;  %v949_v43 = vmax.f32 %v938_v40, 0.0 }
 0x1fd   :  { %v994_v44 = vcombine.low %v948_v41, %v949_v43  ;;  %1006 = vst [vmem:[%s1362_s5 + $0x8] sm:$0xff] %v993_v42 }
 0x1ff   :  { %1029 = vst.sshfl [vmem:[%s1362_s5 + $0x10] sm:$0x33 pattern:$0x76325410] %v994_v44 }

// kernel: autoencoder_mix_forward.6
= control target key start
LH: loop header
LB: loop body
LE: loop exit
PB: predicated region body
PF: predicated region fallthrough
CT: control target
= control target key end

     0   :  { %v264_v3 = vmov 0.0   ;;  %v265_v8 = vmov 0   ;;  %vm61_vm0 = vcmask 654336   ;;  %s424_s1 = inlined_call_operand.vmem [shape: f32[80,512], index: 1, kind: input, shape index: {}]   ;;  %s425_s2 = inlined_call_operand.vmem [shape: f32[5,1], index: 2, kind: input, shape index: {}]   ;;  %s426_s0 = inlined_call_operand.vmem [shape: f32[5,80], index: 0, kind: input, shape index: {}]   ;;  %s427_s3 = inlined_call_operand.vmem [shape: f32[5,512], index: 3, kind: output, shape index: {}]  }
   0x1   :  { %v16_v0 = vld [vmem:[%s424_s1 + $0x8] sm:$0xff]  ;;  %v18_v2 = vld [vmem:[%s424_s1 + $0x18] sm:$0xff]  ;;  %129 = vmatprep.mubr.f32.mxu0 %v264_v3  ;;  %200 = vmatprep.mubr.f32.mxu1 %v264_v3  ;;  %v15_v6 = vld [vmem:[%s424_s1] sm:$0xff] }
   0x2   :  { %v20_v1 = vld [vmem:[%s424_s1 + $0x28] sm:$0xff]  ;;  %v22_v5 = vld [vmem:[%s424_s1 + $0x38] sm:$0xff]  ;;  %v19_v7 = vld [vmem:[%s424_s1 + $0x20] sm:$0xff]  ;;  %263 = vset.pattern.permute.xlu0 %v265_v8 }
   0x3   :  { %v221_v4 = vpack.c.bf16 %v20_v1, %v16_v0  ;;  %v241_v9 = vpack.c.bf16 %v22_v5, %v18_v2  ;;  %v223_v10 = vpack.c.bf16 %v19_v7, %v15_v6  ;;  %v17_v11 = vld [vmem:[%s424_s1 + $0x10] sm:$0xff]  ;;  %v24_v13 = vld [vmem:[%s424_s1 + $0x48] sm:$0xff]  ;;  %v26_v16 = vld [vmem:[%s424_s1 + $0x58] sm:$0xff] }
   0x4   :  { %v21_v12 = vld [vmem:[%s424_s1 + $0x30] sm:$0xff]  ;;  %v28_v15 = vld [vmem:[%s424_s1 + $0x68] sm:$0xff]  ;;  %v30_v17 = vld [vmem:[%s424_s1 + $0x78] sm:$0xff] }
   0x5   :  { %222 = vmatprep.subr.bf16.mxu0 %v221_v4  ;;  %v243_v14 = vpack.c.bf16 %v21_v12, %v17_v11  ;;  %242 = vmatprep.subr.bf16.mxu1 %v241_v9  ;;  %v225_v18 = vpack.c.bf16 %v28_v15, %v24_v13  ;;  %v245_v19 = vpack.c.bf16 %v30_v17, %v26_v16  ;;  %v23_v20 = vld [vmem:[%s424_s1 + $0x40] sm:$0xff]  ;;  %v25_v22 = vld [vmem:[%s424_s1 + $0x50] sm:$0xff]  ;;  %v32_v25 = vld [vmem:[%s424_s1 + $0x88] sm:$0xff] }
   0x6   :  { %224 = vmatpush1.bf16.msra.mxu0 %v223_v10  ;;  %v27_v21 = vld [vmem:[%s424_s1 + $0x60] sm:$0xff]  ;;  %v29_v24 = vld [vmem:[%s424_s1 + $0x70] sm:$0xff]  ;;  %v36_v26 = vld [vmem:[%s424_s1 + $0xa8] sm:$0xff] }
   0x7   :  { %244 = vmatpush1.bf16.msra.mxu1 %v243_v14  ;;  %v227_v23 = vpack.c.bf16 %v27_v21, %v23_v20  ;;  %226 = vmatprep.subr.bf16.mxu0 %v225_v18  ;;  %v247_v27 = vpack.c.bf16 %v29_v24, %v25_v22  ;;  %v229_v28 = vpack.c.bf16 %v36_v26, %v32_v25  ;;  %v34_v29 = vld [vmem:[%s424_s1 + $0x98] sm:$0xff]  ;;  %v31_v31 = vld [vmem:[%s424_s1 + $0x80] sm:$0xff]  ;;  %v33_v34 = vld [vmem:[%s424_s1 + $0x90] sm:$0xff] }
   0x8   :  { %246 = vmatprep.subr.bf16.mxu1 %v245_v19  ;;  %v38_v30 = vld [vmem:[%s424_s1 + $0xb8] sm:$0xff]  ;;  %v35_v33 = vld [vmem:[%s424_s1 + $0xa0] sm:$0xff]  ;;  %v37_v35 = vld [vmem:[%s424_s1 + $0xb0] sm:$0xff] }
   0x9   :  { %v249_v32 = vpack.c.bf16 %v38_v30, %v34_v29  ;;  %v231_v36 = vpack.c.bf16 %v35_v33, %v31_v31  ;;  %v40_v37 = vld [vmem:[%s424_s1 + $0xc8] sm:$0xff]  ;;  %v42_v39 = vld [vmem:[%s424_s1 + $0xd8] sm:$0xff]  ;;  %v251_v40 = vpack.c.bf16 %v37_v35, %v33_v34  ;;  %v39_v43 = vld [vmem:[%s424_s1 + $0xc0] sm:$0xff] }
   0xa   :  { %228 = vmatpush1.bf16.msra.mxu0 %v227_v23  ;;  %v44_v38 = vld [vmem:[%s424_s1 + $0xe8] sm:$0xff]  ;;  %v46_v42 = vld [vmem:[%s424_s1 + $0xf8] sm:$0xff]  ;;  %v43_v44 = vld [vmem:[%s424_s1 + $0xe0] sm:$0xff] }
   0xb   :  { %248 = vmatpush1.bf16.msra.mxu1 %v247_v27  ;;  %230 = vmatprep.subr.bf16.mxu0 %v229_v28  ;;  %v233_v41 = vpack.c.bf16 %v44_v38, %v40_v37  ;;  %v253_v45 = vpack.c.bf16 %v46_v42, %v42_v39  ;;  %v41_v46 = vld [vmem:[%s424_s1 + $0xd0] sm:$0xff]  ;;  %v48_v48 = vld [vmem:[%s424_s1 + $0x108] sm:$0xff]  ;;  %v50_v50 = vld [vmem:[%s424_s1 + $0x118] sm:$0xff]  ;;  %v235_v52 = vpack.c.bf16 %v43_v44, %v39_v43 }
   0xc   :  { %250 = vmatprep.subr.bf16.mxu1 %v249_v32  ;;  %v45_v47 = vld [vmem:[%s424_s1 + $0xf0] sm:$0xff]  ;;  %v52_v49 = vld [vmem:[%s424_s1 + $0x128] sm:$0xff]  ;;  %v54_v51 = vld [vmem:[%s424_s1 + $0x138] sm:$0xff] }
   0xd   :  { %v255_v53 = vpack.c.bf16 %v45_v47, %v41_v46  ;;  %v237_v54 = vpack.c.bf16 %v52_v49, %v48_v48  ;;  %v47_v55 = vld [vmem:[%s424_s1 + $0x100] sm:$0xff]  ;;  %v257_v58 = vpack.c.bf16 %v54_v51, %v50_v50  ;;  %v49_v59 = vld [vmem:[%s424_s1 + $0x110] sm:$0xff] }
   0xe   :  { %232 = vmatpush1.bf16.msra.mxu0 %v231_v36  ;;  %v51_v56 = vld [vmem:[%s424_s1 + $0x120] sm:$0xff]  ;;  %v53_v60 = vld [vmem:[%s424_s1 + $0x130] sm:$0xff] }
   0xf   :  { %252 = vmatpush1.bf16.msra.mxu1 %v251_v40  ;;  %234 = vmatprep.subr.bf16.mxu0 %v233_v41  ;;  %v55_v57 = vld [vmem:[%s425_s2] sm:$0x1f]  ;;  %v239_v61 = vpack.c.bf16 %v51_v56, %v47_v55  ;;  %v259_v62 = vpack.c.bf16 %v53_v60, %v49_v59 }
  0x10   :  { %254 = vmatprep.subr.bf16.mxu1 %v253_v45  ;;  %58 = vperm.xlu0 %263, %v55_v57   ;;  %v14_v63 = vld [vmem:[%s426_s0] sm:$0x1f] }
  0x12   :  { %236 = vmatpush1.bf16.msra.mxu0 %v235_v52 }
  0x13   :  { %256 = vmatpush1.bf16.msra.mxu1 %v255_v53  ;;  %238 = vmatprep.subr.bf16.mxu0 %v237_v54 }
  0x14   :  { %258 = vmatprep.subr.bf16.mxu1 %v257_v58 }
  0x16   :  { %240 = vmatpush1.bf16.msra.mxu0 %v239_v61 }
  0x17   :  { %260 = vmatpush1.bf16.msra.mxu1 %v259_v62 }
  0x19   :  { %219 = vmatmul.mubr.msk.f32.vlgmr.msra.gmra.mrb[0].mxu0 %vm61_vm0, %v14_v63 }
  0x1a   :  { %220 = vmatmul.mubr.msk.f32.vlgmr.msra.gmra.mrb[0].mxu1 %vm61_vm0, %v14_v63 }
  0x8f   :  { %v59_v0 = vpop.permute.xlu0 %58 }
  0xec   :  { %v131_v1 = vpop.f32.mrb[0].mxu0 }
  0xed   :  { %v132_v2 = vadd.f32 %v131_v1, %v59_v0  ;;  %v202_v3 = vpop.f32.mrb[0].mxu1  ;;  %v133_v4 = vpop.f32.mrb[1].mxu0 }
  0xee   :  { %v203_v5 = vadd.f32 %v202_v3, %v59_v0  ;;  %v134_v6 = vadd.f32 %v133_v4, %v59_v0  ;;  %v204_v7 = vpop.f32.mrb[1].mxu1 }
  0xef   :  { %v207_v8 = vmax.f32 %v132_v2, 0.0  ;;  %v205_v9 = vadd.f32 %v204_v7, %v59_v0 }
  0xf0   :  { %v209_v10 = vmax.f32 %v203_v5, 0.0  ;;  %v208_v11 = vmax.f32 %v134_v6, 0.0 }
  0xf1   :  { %211 = vst [vmem:[%s427_s3] sm:$0x1f] %v207_v8  ;;  %v210_v12 = vmax.f32 %v205_v9, 0.0 }
  0xf2   :  { %213 = vst [vmem:[%s427_s3 + $0x10] sm:$0x1f] %v209_v10  ;;  %212 = vst [vmem:[%s427_s3 + $0x8] sm:$0x1f] %v208_v11 }
  0xf3   :  { %214 = vst [vmem:[%s427_s3 + $0x18] sm:$0x1f] %v210_v12 }

// kernel: autoencoder_mix_forward.8
= control target key start
LH: loop header
LB: loop body
LE: loop exit
PB: predicated region body
PF: predicated region fallthrough
CT: control target
= control target key end

     0   :  { %v734_v0 = vmov 0   ;;  %v735_v11 = vmov 1   ;;  %v736_v12 = vmov 2   ;;  %v737_v13 = vmov 3   ;;  %s1572_s0 = inlined_call_operand.vmem [shape: f32[80,5], index: 0, kind: input, shape index: {}]   ;;  %s1573_s1 = inlined_call_operand.vmem [shape: f32[5,512], index: 1, kind: input, shape index: {}]   ;;  %s1574_s2 = inlined_call_operand.vmem [shape: f32[80,512], index: 2, kind: output, shape index: {}]  }
   0x1   :  { %725 = vset.pattern.permute.xlu1 %v734_v0  ;;  %724 = vset.pattern.permute.xlu0 %v734_v0  ;;  %v757_v1 = vld [vmem:[%s1572_s0 + $0x10] sm:$0xff]  ;;  %v11_v2 = vld [vmem:[%s1572_s0] sm:$0xff]  ;;  %v766_v3 = vld [vmem:[%s1572_s0 + $0x18] sm:$0xff]  ;;  %v738_v14 = vmov 4   ;;  %v75_v17 = vlaneseq }
   0x2   :  { %37 = vperm.xlu1 %725, %v757_v1   ;;  %27 = vperm.xlu0 %724, %v11_v2   ;;  %v12_v4 = vld [vmem:[%s1572_s0 + $0x8] sm:$0xff]  ;;  %v15_v6 = vld [vmem:[%s1572_s0 + $0x20] sm:$0xff]  ;;  %v18_v7 = vld [vmem:[%s1572_s0 + $0x38] sm:$0xff] }
   0x3   :  { %v16_v5 = vld [vmem:[%s1572_s0 + $0x28] sm:$0xff]  ;;  %v17_v8 = vld [vmem:[%s1572_s0 + $0x30] sm:$0xff]  ;;  %v19_v10 = vld [vmem:[%s1572_s0 + $0x40] sm:$0xff]  ;;  %v76_v20 = vshrl.u32 %v75_v17, 7 }
   0x4   :  { %v20_v9 = vld [vmem:[%s1572_s0 + $0x48] sm:$0xff]  ;;  %v21_v24 = vld [vmem:[%s1573_s1] sm:$0x1f]  ;;  %v23_v28 = vld [vmem:[%s1573_s1 + $0x10] sm:$0x1f] }
   0x5   :  { %v77_v23 = vsub.s32 0, %v76_v20  ;;  %v22_v25 = vld [vmem:[%s1573_s1 + $0x8] sm:$0x1f]  ;;  %v24_v29 = vld [vmem:[%s1573_s1 + $0x18] sm:$0x1f]  ;;  %v173_v30 = vsub.s32 1, %v76_v20 }
   0x6   :  { %42 = vperm.xlu1 %725, %v766_v3   ;;  %32 = vperm.xlu0 %724, %v12_v4   ;;  %v309_v31 = vsub.s32 2, %v76_v20  ;;  %v445_v33 = vsub.s32 3, %v76_v20  ;;  %v581_v39 = vsub.s32 4, %v76_v20 }
   0x7   :  { %v812_v32 = vrot.slane %v21_v24, %v77_v23  ;;  %v814_v34 = vrot.slane %v22_v25, %v77_v23  ;;  %v816_v35 = vrot.slane %v23_v28, %v77_v23  ;;  %v818_v36 = vrot.slane %v24_v29, %v77_v23 }
   0x8   :  { %v824_v40 = vrot.slane %v21_v24, %v173_v30  ;;  %v826_v41 = vrot.slane %v22_v25, %v173_v30  ;;  %v828_v42 = vrot.slane %v23_v28, %v173_v30  ;;  %v830_v43 = vrot.slane %v24_v29, %v173_v30 }
   0x9   :  { %v832_v44 = vrot.slane %v21_v24, %v309_v31  ;;  %v834_v45 = vrot.slane %v22_v25, %v309_v31  ;;  %v836_v46 = vrot.slane %v23_v28, %v309_v31  ;;  %v838_v47 = vrot.slane %v24_v29, %v309_v31 }
   0xa   :  { %52 = vperm.xlu1 %725, %v16_v5   ;;  %47 = vperm.xlu0 %724, %v15_v6   ;;  %v840_v48 = vrot.slane %v21_v24, %v445_v33  ;;  %v842_v49 = vrot.slane %v22_v25, %v445_v33  ;;  %v844_v50 = vrot.slane %v23_v28, %v445_v33 }
   0xb   :  { %1587 = vst [vmem:[#allocation2_spill] sm:$0xff] %v834_v45  ;;  %1588 = vst [vmem:[#allocation3_spill] sm:$0xff] %v836_v46  ;;  %v846_v51 = vrot.slane %v24_v29, %v445_v33  ;;  %v848_v52 = vrot.slane %v21_v24, %v581_v39  ;;  %v850_v53 = vrot.slane %v22_v25, %v581_v39 }
   0xc   :  { %1589 = vst [vmem:[#allocation4_spill] sm:$0xff] %v838_v47  ;;  %1590 = vst [vmem:[#allocation5_spill] sm:$0xff] %v840_v48  ;;  %v852_v54 = vrot.slane %v23_v28, %v581_v39  ;;  %v854_v55 = vrot.slane %v24_v29, %v581_v39 }
   0xd   :  { %1591 = vst [vmem:[#allocation6_spill] sm:$0xff] %v842_v49  ;;  %1592 = vst [vmem:[#allocation7_spill] sm:$0xff] %v844_v50 }
   0xe   :  { %62 = vperm.xlu1 %725, %v18_v7   ;;  %57 = vperm.xlu0 %724, %v17_v8   ;;  %1593 = vst [vmem:[#allocation8_spill] sm:$0xff] %v846_v51  ;;  %1594 = vst [vmem:[#allocation9_spill] sm:$0xff] %v848_v52 }
   0xf   :  { %1595 = vst [vmem:[#allocation10_spill] sm:$0xff] %v850_v53  ;;  %1596 = vst [vmem:[#allocation11_spill] sm:$0xff] %v852_v54 }
  0x10   :  { %1597 = vst [vmem:[#allocation12_spill] sm:$0xff] %v854_v55 }
  0x12   :  { %72 = vperm.xlu1 %725, %v20_v9   ;;  %67 = vperm.xlu0 %724, %v19_v10  }
  0x16   :  { %727 = vset.pattern.permute.xlu1 %v735_v11  ;;  %726 = vset.pattern.permute.xlu0 %v735_v11 }
  0x17   :  { %136 = vperm.xlu1 %727, %v12_v4   ;;  %132 = vperm.xlu0 %726, %v11_v2  }
  0x1b   :  { %140 = vperm.xlu1 %727, %v757_v1   ;;  %144 = vperm.xlu0 %726, %v766_v3  }
  0x1f   :  { %148 = vperm.xlu1 %727, %v15_v6   ;;  %152 = vperm.xlu0 %726, %v16_v5  }
  0x23   :  { %156 = vperm.xlu1 %727, %v17_v8   ;;  %160 = vperm.xlu0 %726, %v18_v7  }
  0x27   :  { %164 = vperm.xlu1 %727, %v19_v10   ;;  %168 = vperm.xlu0 %726, %v20_v9  }
  0x2b   :  { %728 = vset.pattern.permute.xlu1 %v736_v12  ;;  %729 = vset.pattern.permute.xlu0 %v736_v12 }
  0x2c   :  { %268 = vperm.xlu1 %728, %v11_v2   ;;  %272 = vperm.xlu0 %729, %v12_v4  }
  0x30   :  { %276 = vperm.xlu1 %728, %v757_v1   ;;  %284 = vperm.xlu0 %729, %v15_v6  }
  0x34   :  { %280 = vperm.xlu1 %728, %v766_v3   ;;  %292 = vperm.xlu0 %729, %v17_v8  }
  0x38   :  { %288 = vperm.xlu1 %728, %v16_v5   ;;  %300 = vperm.xlu0 %729, %v19_v10  }
  0x3c   :  { %296 = vperm.xlu1 %728, %v18_v7   ;;  %730 = vset.pattern.permute.xlu0 %v737_v13 }
  0x3d   :  { %404 = vperm.xlu0 %730, %v11_v2  }
  0x40   :  { %304 = vperm.xlu1 %728, %v20_v9  }
  0x41   :  { %416 = vperm.xlu0 %730, %v766_v3  }
  0x44   :  { %731 = vset.pattern.permute.xlu1 %v737_v13 }
  0x45   :  { %408 = vperm.xlu1 %731, %v12_v4   ;;  %424 = vperm.xlu0 %730, %v16_v5  }
  0x49   :  { %412 = vperm.xlu1 %731, %v757_v1   ;;  %432 = vperm.xlu0 %730, %v18_v7  }
  0x4d   :  { %420 = vperm.xlu1 %731, %v15_v6   ;;  %440 = vperm.xlu0 %730, %v20_v9  }
  0x51   :  { %428 = vperm.xlu1 %731, %v17_v8   ;;  %733 = vset.pattern.permute.xlu0 %v738_v14 }
  0x52   :  { %544 = vperm.xlu0 %733, %v12_v4  }
  0x55   :  { %436 = vperm.xlu1 %731, %v19_v10  }
  0x56   :  { %556 = vperm.xlu0 %733, %v15_v6  }
  0x59   :  { %732 = vset.pattern.permute.xlu1 %v738_v14 }
  0x5a   :  { %540 = vperm.xlu1 %732, %v11_v2   ;;  %564 = vperm.xlu0 %733, %v17_v8  }
  0x5e   :  { %548 = vperm.xlu1 %732, %v757_v1   ;;  %572 = vperm.xlu0 %733, %v19_v10  }
  0x62   :  { %552 = vperm.xlu1 %732, %v766_v3  }
  0x66   :  { %560 = vperm.xlu1 %732, %v16_v5  }
  0x6a   :  { %568 = vperm.xlu1 %732, %v18_v7  }
  0x6e   :  { %576 = vperm.xlu1 %732, %v20_v9  }
  0x81   :  { %v38_v15 = vpop.permute.xlu1 %37  ;;  %v28_v16 = vpop.permute.xlu0 %27 }
  0x82   :  { %v857_v56 = vmul.f32 %v812_v32, %v38_v15  ;;  %v860_v57 = vmul.f32 %v814_v34, %v38_v15  ;;  %v863_v58 = vmul.f32 %v816_v35, %v38_v15  ;;  %v866_v59 = vmul.f32 %v818_v36, %v38_v15 }
  0x83   :  { %v91_v62 = vmul.f32 %v812_v32, %v28_v16  ;;  %v92_v63 = vmul.f32 %v814_v34, %v28_v16  ;;  %v93_v0 = vmul.f32 %v816_v35, %v28_v16  ;;  %v94_v1 = vmul.f32 %v818_v36, %v28_v16 }
  0x85   :  { %v43_v18 = vpop.permute.xlu1 %42  ;;  %v33_v19 = vpop.permute.xlu0 %32 }
  0x86   :  { %v873_v2 = vmul.f32 %v812_v32, %v43_v18  ;;  %v876_v3 = vmul.f32 %v814_v34, %v43_v18  ;;  %v879_v4 = vmul.f32 %v816_v35, %v43_v18  ;;  %v882_v5 = vmul.f32 %v818_v36, %v43_v18 }
  0x87   :  { %v95_v6 = vmul.f32 %v812_v32, %v33_v19  ;;  %v96_v7 = vmul.f32 %v814_v34, %v33_v19  ;;  %v97_v8 = vmul.f32 %v816_v35, %v33_v19  ;;  %v98_v9 = vmul.f32 %v818_v36, %v33_v19 }
  0x89   :  { %v53_v21 = vpop.permute.xlu1 %52  ;;  %v48_v22 = vpop.permute.xlu0 %47 }
  0x8a   :  { %v889_v10 = vmul.f32 %v812_v32, %v53_v21  ;;  %v892_v11 = vmul.f32 %v814_v34, %v53_v21  ;;  %v895_v12 = vmul.f32 %v816_v35, %v53_v21  ;;  %v898_v13 = vmul.f32 %v818_v36, %v53_v21 }
  0x8b   :  { %v901_v16 = vmul.f32 %v812_v32, %v48_v22  ;;  %v904_v17 = vmul.f32 %v814_v34, %v48_v22  ;;  %v907_v18 = vmul.f32 %v816_v35, %v48_v22  ;;  %v910_v19 = vmul.f32 %v818_v36, %v48_v22 }
  0x8d   :  { %v63_v26 = vpop.permute.xlu1 %62  ;;  %v804_v27 = vpop.permute.xlu0 %57 }
  0x8e   :  { %v913_v20 = vmul.f32 %v812_v32, %v63_v26  ;;  %v916_v21 = vmul.f32 %v814_v34, %v63_v26  ;;  %v919_v23 = vmul.f32 %v816_v35, %v63_v26  ;;  %v922_v24 = vmul.f32 %v818_v36, %v63_v26 }
  0x8f   :  { %v926_v25 = vmul.f32 %v812_v32, %v804_v27  ;;  %v930_v22 = vmul.f32 %v814_v34, %v804_v27  ;;  %v934_v28 = vmul.f32 %v816_v35, %v804_v27  ;;  %v938_v29 = vmul.f32 %v818_v36, %v804_v27 }
  0x91   :  { %v820_v37 = vpop.permute.xlu1 %72  ;;  %v822_v38 = vpop.permute.xlu0 %67 }
  0x92   :  { %v946_v54 = vmul.f32 %v812_v32, %v820_v37  ;;  %v950_v53 = vmul.f32 %v814_v34, %v820_v37  ;;  %v954_v27 = vmul.f32 %v816_v35, %v820_v37  ;;  %v958_v52 = vmul.f32 %v818_v36, %v820_v37 }
  0x93   :  { %v966_v51 = vmul.f32 %v814_v34, %v822_v38  ;;  %v970_v50 = vmul.f32 %v816_v35, %v822_v38  ;;  %v974_v49 = vmul.f32 %v818_v36, %v822_v38 }
  0x94   :  { %1598 = vst [vmem:[#allocation13_spill] sm:$0xff] %v946_v54  ;;  %1599 = vst [vmem:[#allocation14_spill] sm:$0xff] %v950_v53 }
  0x95   :  { %1600 = vst [vmem:[#allocation15_spill] sm:$0xff] %v954_v27  ;;  %1601 = vst [vmem:[#allocation16_spill] sm:$0xff] %v958_v52 }
  0x96   :  { %v137_v60 = vpop.permute.xlu1 %136  ;;  %v133_v61 = vpop.permute.xlu0 %132 }
  0x97   :  { %v191_v30 = vmul.f32 %v824_v40, %v137_v60  ;;  %v192_v26 = vmul.f32 %v826_v41, %v137_v60  ;;  %v193_v31 = vmul.f32 %v828_v42, %v137_v60  ;;  %v194_v33 = vmul.f32 %v830_v43, %v137_v60 }
  0x98   :  { %v962_v60 = vmul.f32 %v812_v32, %v822_v38  ;;  %v187_v48 = vmul.f32 %v824_v40, %v133_v61  ;;  %v188_v37 = vmul.f32 %v826_v41, %v133_v61  ;;  %v189_v52 = vmul.f32 %v828_v42, %v133_v61 }
  0x99   :  { %v190_v32 = vmul.f32 %v830_v43, %v133_v61  ;;  %v980_v27 = vadd.f32 %v191_v30, %v95_v6  ;;  %v982_v34 = vadd.f32 %v192_v26, %v96_v7  ;;  %v984_v53 = vadd.f32 %v193_v31, %v97_v8 }
  0x9a   :  { %v141_v14 = vpop.permute.xlu1 %140  ;;  %v145_v15 = vpop.permute.xlu0 %144  ;;  %v986_v35 = vadd.f32 %v194_v33, %v98_v9  ;;  %v996_v9 = vadd.f32 %v187_v48, %v91_v62  ;;  %v998_v30 = vadd.f32 %v188_v37, %v92_v63  ;;  %v1000_v26 = vadd.f32 %v189_v52, %v93_v0 }
  0x9b   :  { %1602 = vst [vmem:[#allocation17_spill] sm:$0xff] %v980_v27  ;;  %1603 = vst [vmem:[#allocation18_spill] sm:$0xff] %v982_v34  ;;  %v195_v36 = vmul.f32 %v824_v40, %v141_v14  ;;  %v196_v38 = vmul.f32 %v826_v41, %v141_v14  ;;  %v197_v46 = vmul.f32 %v828_v42, %v141_v14 }
  0x9c   :  { %1604 = vst [vmem:[#allocation19_spill] sm:$0xff] %v984_v53  ;;  %1605 = vst [vmem:[#allocation20_spill] sm:$0xff] %v986_v35  ;;  %v198_v45 = vmul.f32 %v830_v43, %v141_v14  ;;  %v199_v61 = vmul.f32 %v824_v40, %v145_v15  ;;  %v200_v6 = vmul.f32 %v826_v41, %v145_v15 }
  0x9d   :  { %v201_v7 = vmul.f32 %v828_v42, %v145_v15  ;;  %v202_v8 = vmul.f32 %v830_v43, %v145_v15  ;;  %v1002_v31 = vadd.f32 %v190_v32, %v94_v1  ;;  %v1009_v15 = vadd.f32 %v195_v36, %v857_v56 }
  0x9e   :  { %v149_v39 = vpop.permute.xlu1 %148  ;;  %v153_v55 = vpop.permute.xlu0 %152  ;;  %v1012_v48 = vadd.f32 %v196_v38, %v860_v57  ;;  %v1015_v52 = vadd.f32 %v197_v46, %v863_v58  ;;  %v1018_v62 = vadd.f32 %v198_v45, %v866_v59  ;;  %v1021_v63 = vadd.f32 %v199_v61, %v873_v2 }
  0x9f   :  { %v203_v33 = vmul.f32 %v824_v40, %v149_v39  ;;  %v204_v14 = vmul.f32 %v826_v41, %v149_v39  ;;  %v205_v35 = vmul.f32 %v828_v42, %v149_v39  ;;  %v206_v53 = vmul.f32 %v830_v43, %v149_v39 }
  0xa0   :  { %v1024_v0 = vadd.f32 %v200_v6, %v876_v3  ;;  %v1027_v1 = vadd.f32 %v201_v7, %v879_v4  ;;  %v1030_v56 = vadd.f32 %v202_v8, %v882_v5  ;;  %v207_v57 = vmul.f32 %v824_v40, %v153_v55 }
  0xa1   :  { %v208_v46 = vmul.f32 %v826_v41, %v153_v55  ;;  %v209_v58 = vmul.f32 %v828_v42, %v153_v55  ;;  %v210_v45 = vmul.f32 %v830_v43, %v153_v55  ;;  %v1037_v59 = vadd.f32 %v203_v33, %v901_v16 }
  0xa2   :  { %v157_v54 = vpop.permute.xlu1 %156  ;;  %v161_v47 = vpop.permute.xlu0 %160  ;;  %v1040_v2 = vadd.f32 %v204_v14, %v904_v17  ;;  %v1043_v3 = vadd.f32 %v205_v35, %v907_v18  ;;  %v1046_v4 = vadd.f32 %v206_v53, %v910_v19  ;;  %v1057_v53 = vadd.f32 %v207_v57, %v889_v10 }
  0xa3   :  { %v211_v5 = vmul.f32 %v824_v40, %v157_v54  ;;  %v212_v39 = vmul.f32 %v826_v41, %v157_v54  ;;  %v213_v37 = vmul.f32 %v828_v42, %v157_v54  ;;  %v214_v55 = vmul.f32 %v830_v43, %v157_v54 }
  0xa4   :  { %v215_v36 = vmul.f32 %v824_v40, %v161_v47  ;;  %v216_v17 = vmul.f32 %v826_v41, %v161_v47  ;;  %v217_v18 = vmul.f32 %v828_v42, %v161_v47  ;;  %v218_v35 = vmul.f32 %v830_v43, %v161_v47 }
  0xa5   :  { %v1060_v19 = vadd.f32 %v208_v46, %v892_v11  ;;  %v1063_v38 = vadd.f32 %v209_v58, %v895_v12  ;;  %v1066_v54 = vadd.f32 %v210_v45, %v898_v13  ;;  %v1073_v10 = vadd.f32 %v211_v5, %v926_v25  ;;  %v1606_v58 = vld [vmem:[#allocation2_spill] sm:$0xff]  ;;  %v1607_v45 = vld [vmem:[#allocation3_spill] sm:$0xff]  ;;  %v1608_v5 = vld [vmem:[#allocation4_spill] sm:$0xff] }
  0xa6   :  { %v165_v34 = vpop.permute.xlu1 %164  ;;  %v169_v27 = vpop.permute.xlu0 %168  ;;  %v1076_v11 = vadd.f32 %v212_v39, %v930_v22  ;;  %v1079_v12 = vadd.f32 %v213_v37, %v934_v28  ;;  %v1082_v13 = vadd.f32 %v214_v55, %v938_v29  ;;  %v1085_v14 = vadd.f32 %v215_v36, %v913_v20  ;;  %v1611_v36 = vld [vmem:[#allocation14_spill] sm:$0xff] }
  0xa7   :  { %v219_v61 = vmul.f32 %v824_v40, %v165_v34  ;;  %v220_v6 = vmul.f32 %v826_v41, %v165_v34  ;;  %v221_v7 = vmul.f32 %v828_v42, %v165_v34  ;;  %v222_v47 = vmul.f32 %v830_v43, %v165_v34 }
  0xa8   :  { %v1088_v57 = vadd.f32 %v216_v17, %v916_v21  ;;  %v1091_v25 = vadd.f32 %v217_v18, %v919_v23  ;;  %v1094_v22 = vadd.f32 %v218_v35, %v922_v24  ;;  %v223_v28 = vmul.f32 %v824_v40, %v169_v27  ;;  %v1613_v18 = vld [vmem:[#allocation15_spill] sm:$0xff] }
  0xa9   :  { %v224_v34 = vmul.f32 %v826_v41, %v169_v27  ;;  %v225_v29 = vmul.f32 %v828_v42, %v169_v27  ;;  %v226_v46 = vmul.f32 %v830_v43, %v169_v27  ;;  %v1101_v20 = vadd.f32 %v219_v61, %v962_v60 }
  0xaa   :  { %v1104_v21 = vadd.f32 %v220_v6, %v966_v51  ;;  %v1107_v23 = vadd.f32 %v221_v7, %v970_v50  ;;  %v1110_v24 = vadd.f32 %v222_v47, %v974_v49  ;;  %v1609_v49 = vld [vmem:[#allocation13_spill] sm:$0xff] }
  0xab   :  { %v269_v32 = vpop.permute.xlu1 %268  ;;  %v273_v16 = vpop.permute.xlu0 %272  ;;  %v1121_v55 = vadd.f32 %v223_v28, %v1609_v49  ;;  %v1124_v17 = vadd.f32 %v224_v34, %v1611_v36  ;;  %v1127_v35 = vadd.f32 %v225_v29, %v1613_v18  ;;  %v1617_v18 = vld [vmem:[#allocation17_spill] sm:$0xff] }
  0xac   :  { %v323_v40 = vmul.f32 %v832_v44, %v269_v32  ;;  %v324_v41 = vmul.f32 %v1606_v58, %v269_v32  ;;  %v325_v42 = vmul.f32 %v1607_v45, %v269_v32  ;;  %v326_v43 = vmul.f32 %v1608_v5, %v269_v32  ;;  %v1615_v32 = vld [vmem:[#allocation16_spill] sm:$0xff] }
  0xad   :  { %v327_v39 = vmul.f32 %v832_v44, %v273_v16  ;;  %v328_v51 = vmul.f32 %v1606_v58, %v273_v16  ;;  %v329_v50 = vmul.f32 %v1607_v45, %v273_v16  ;;  %v330_v37 = vmul.f32 %v1608_v5, %v273_v16  ;;  %1610 = vst [vmem:[#allocation2_spill] sm:$0xff] %v1121_v55 }
  0xae   :  { %1612 = vst [vmem:[#allocation3_spill] sm:$0xff] %v1124_v17  ;;  %1614 = vst [vmem:[#allocation4_spill] sm:$0xff] %v1127_v35  ;;  %v1130_v61 = vadd.f32 %v226_v46, %v1615_v32  ;;  %v1137_v28 = vadd.f32 %v323_v40, %v996_v9  ;;  %v1140_v34 = vadd.f32 %v324_v41, %v998_v30  ;;  %v1620_v40 = vld [vmem:[#allocation20_spill] sm:$0xff] }
  0xaf   :  { %v277_v8 = vpop.permute.xlu1 %276  ;;  %v285_v33 = vpop.permute.xlu0 %284  ;;  %v1143_v29 = vadd.f32 %v325_v42, %v1000_v26  ;;  %v1146_v46 = vadd.f32 %v326_v43, %v1002_v31  ;;  %v1149_v32 = vadd.f32 %v327_v39, %v1617_v18  ;;  %v1158_v30 = vadd.f32 %v330_v37, %v1620_v40 }
  0xb0   :  { %1616 = vst [vmem:[#allocation13_spill] sm:$0xff] %v1130_v61  ;;  %v331_v6 = vmul.f32 %v832_v44, %v277_v8  ;;  %v332_v7 = vmul.f32 %v1606_v58, %v277_v8  ;;  %v333_v47 = vmul.f32 %v1607_v45, %v277_v8  ;;  %v334_v16 = vmul.f32 %v1608_v5, %v277_v8  ;;  %v1618_v61 = vld [vmem:[#allocation18_spill] sm:$0xff]  ;;  %v1619_v8 = vld [vmem:[#allocation19_spill] sm:$0xff] }
  0xb1   :  { %v1152_v35 = vadd.f32 %v328_v51, %v1618_v61  ;;  %v1155_v9 = vadd.f32 %v329_v50, %v1619_v8  ;;  %v339_v26 = vmul.f32 %v832_v44, %v285_v33  ;;  %v340_v41 = vmul.f32 %v1606_v58, %v285_v33 }
  0xb2   :  { %v341_v31 = vmul.f32 %v1607_v45, %v285_v33  ;;  %v342_v42 = vmul.f32 %v1608_v5, %v285_v33  ;;  %v1165_v43 = vadd.f32 %v331_v6, %v1009_v15  ;;  %v1168_v39 = vadd.f32 %v332_v7, %v1012_v48 }
  0xb3   :  { %v281_v27 = vpop.permute.xlu1 %280  ;;  %v293_v60 = vpop.permute.xlu0 %292  ;;  %v1171_v51 = vadd.f32 %v333_v47, %v1015_v52  ;;  %v1174_v50 = vadd.f32 %v334_v16, %v1018_v62  ;;  %v1185_v62 = vadd.f32 %v339_v26, %v1037_v59  ;;  %v1188_v47 = vadd.f32 %v340_v41, %v1040_v2 }
  0xb4   :  { %v335_v37 = vmul.f32 %v832_v44, %v281_v27  ;;  %v336_v61 = vmul.f32 %v1606_v58, %v281_v27  ;;  %v337_v18 = vmul.f32 %v1607_v45, %v281_v27  ;;  %v338_v33 = vmul.f32 %v1608_v5, %v281_v27 }
  0xb5   :  { %v347_v15 = vmul.f32 %v832_v44, %v293_v60  ;;  %v348_v48 = vmul.f32 %v1606_v58, %v293_v60  ;;  %v349_v6 = vmul.f32 %v1607_v45, %v293_v60  ;;  %v350_v52 = vmul.f32 %v1608_v5, %v293_v60 }
  0xb6   :  { %v1191_v16 = vadd.f32 %v341_v31, %v1043_v3  ;;  %v1194_v27 = vadd.f32 %v342_v42, %v1046_v4  ;;  %v375_v59 = vadd.f32 %v335_v37, %v1021_v63  ;;  %v376_v26 = vadd.f32 %v336_v61, %v1024_v0 }
  0xb7   :  { %v289_v49 = vpop.permute.xlu1 %288  ;;  %v301_v36 = vpop.permute.xlu0 %300  ;;  %v377_v2 = vadd.f32 %v337_v18, %v1027_v1  ;;  %v378_v3 = vadd.f32 %v338_v33, %v1030_v56  ;;  %v1205_v4 = vadd.f32 %v347_v15, %v1073_v10  ;;  %v1208_v31 = vadd.f32 %v348_v48, %v1076_v11  ;;  %v1625_v15 = vld [vmem:[#allocation5_spill] sm:$0xff]  ;;  %v1626_v48 = vld [vmem:[#allocation6_spill] sm:$0xff] }
  0xb8   :  { %v343_v40 = vmul.f32 %v832_v44, %v289_v49  ;;  %v344_v17 = vmul.f32 %v1606_v58, %v289_v49  ;;  %v345_v55 = vmul.f32 %v1607_v45, %v289_v49  ;;  %v346_v60 = vmul.f32 %v1608_v5, %v289_v49 }
  0xb9   :  { %v1211_v42 = vadd.f32 %v349_v6, %v1079_v12  ;;  %v1214_v49 = vadd.f32 %v350_v52, %v1082_v13  ;;  %v355_v0 = vmul.f32 %v832_v44, %v301_v36  ;;  %v356_v1 = vmul.f32 %v1606_v58, %v301_v36  ;;  %v1628_v52 = vld [vmem:[#allocation8_spill] sm:$0xff] }
  0xba   :  { %v357_v56 = vmul.f32 %v1607_v45, %v301_v36  ;;  %v358_v37 = vmul.f32 %v1608_v5, %v301_v36  ;;  %v1221_v10 = vadd.f32 %v343_v40, %v1057_v53  ;;  %v1224_v11 = vadd.f32 %v344_v17, %v1060_v19  ;;  %v1627_v19 = vld [vmem:[#allocation7_spill] sm:$0xff] }
  0xbb   :  { %v297_v8 = vpop.permute.xlu1 %296  ;;  %v1227_v12 = vadd.f32 %v345_v55, %v1063_v38  ;;  %v1230_v13 = vadd.f32 %v346_v60, %v1066_v54  ;;  %v1241_v54 = vadd.f32 %v355_v0, %v1101_v20  ;;  %v1244_v60 = vadd.f32 %v356_v1, %v1104_v21 }
  0xbc   :  { %v405_v7 = vpop.permute.xlu0 %404  ;;  %1621 = vst [vmem:[#allocation14_spill] sm:$0xff] %v1221_v10  ;;  %1622 = vst [vmem:[#allocation15_spill] sm:$0xff] %v1224_v11  ;;  %v351_v61 = vmul.f32 %v832_v44, %v297_v8  ;;  %v352_v18 = vmul.f32 %v1606_v58, %v297_v8  ;;  %v353_v33 = vmul.f32 %v1607_v45, %v297_v8 }
  0xbd   :  { %1623 = vst [vmem:[#allocation16_spill] sm:$0xff] %v1227_v12  ;;  %1624 = vst [vmem:[#allocation17_spill] sm:$0xff] %v1230_v13  ;;  %v354_v36 = vmul.f32 %v1608_v5, %v297_v8  ;;  %v459_v53 = vmul.f32 %v1625_v15, %v405_v7  ;;  %v460_v6 = vmul.f32 %v1626_v48, %v405_v7 }
  0xbe   :  { %v461_v17 = vmul.f32 %v1627_v19, %v405_v7  ;;  %v462_v38 = vmul.f32 %v1628_v52, %v405_v7  ;;  %v1247_v13 = vadd.f32 %v357_v56, %v1107_v23  ;;  %v1250_v8 = vadd.f32 %v358_v37, %v1110_v24 }
  0xbf   :  { %v305_v41 = vpop.permute.xlu1 %304  ;;  %v1257_v20 = vadd.f32 %v351_v61, %v1085_v14  ;;  %v1260_v21 = vadd.f32 %v352_v18, %v1088_v57  ;;  %v1263_v23 = vadd.f32 %v353_v33, %v1091_v25  ;;  %v1266_v24 = vadd.f32 %v354_v36, %v1094_v22 }
  0xc0   :  { %v417_v63 = vpop.permute.xlu0 %416  ;;  %v1269_v0 = vadd.f32 %v459_v53, %v1137_v28  ;;  %v1272_v1 = vadd.f32 %v460_v6, %v1140_v34  ;;  %v1278_v14 = vadd.f32 %v462_v38, %v1146_v46  ;;  %v1283_v25 = vmul.f32 %v832_v44, %v305_v41 }
  0xc1   :  { %v471_v12 = vmul.f32 %v1625_v15, %v417_v63  ;;  %v472_v11 = vmul.f32 %v1626_v48, %v417_v63  ;;  %v473_v7 = vmul.f32 %v1627_v19, %v417_v63  ;;  %v474_v10 = vmul.f32 %v1628_v52, %v417_v63  ;;  %1629 = vst [vmem:[#allocation18_spill] sm:$0xff] %v1263_v23 }
  0xc2   :  { %1630 = vst [vmem:[#allocation19_spill] sm:$0xff] %v1266_v24  ;;  %v1275_v63 = vadd.f32 %v461_v17, %v1143_v29  ;;  %1631 = vst [vmem:[#allocation20_spill] sm:$0xff] %v1283_v25  ;;  %v1286_v22 = vmul.f32 %v1606_v58, %v305_v41  ;;  %v1289_v28 = vmul.f32 %v1607_v45, %v305_v41 }
  0xc3   :  { %v1292_v34 = vmul.f32 %v1608_v5, %v305_v41  ;;  %v1294_v29 = vadd.f32 %v471_v12, %v375_v59  ;;  %v1296_v37 = vadd.f32 %v472_v11, %v376_v26  ;;  %v1298_v46 = vadd.f32 %v473_v7, %v377_v2 }
  0xc4   :  { %v409_v55 = vpop.permute.xlu1 %408  ;;  %v425_v40 = vpop.permute.xlu0 %424  ;;  %1632 = vst [vmem:[#allocation5_spill] sm:$0xff] %v1286_v22  ;;  %1633 = vst [vmem:[#allocation6_spill] sm:$0xff] %v1289_v28  ;;  %v1300_v61 = vadd.f32 %v474_v10, %v378_v3 }
  0xc5   :  { %1634 = vst [vmem:[#allocation7_spill] sm:$0xff] %v1292_v34  ;;  %v463_v44 = vmul.f32 %v1625_v15, %v409_v55  ;;  %v464_v18 = vmul.f32 %v1626_v48, %v409_v55  ;;  %v465_v58 = vmul.f32 %v1627_v19, %v409_v55  ;;  %v466_v45 = vmul.f32 %v1628_v52, %v409_v55 }
  0xc6   :  { %v1317_v36 = vmul.f32 %v1625_v15, %v425_v40  ;;  %v1320_v53 = vmul.f32 %v1626_v48, %v425_v40  ;;  %v1323_v6 = vmul.f32 %v1627_v19, %v425_v40  ;;  %v1326_v17 = vmul.f32 %v1628_v52, %v425_v40 }
  0xc7   :  { %v503_v38 = vadd.f32 %v463_v44, %v1149_v32  ;;  %v504_v55 = vadd.f32 %v464_v18, %v1152_v35  ;;  %v505_v7 = vadd.f32 %v465_v58, %v1155_v9  ;;  %v1636_v44 = vld [vmem:[#allocation9_spill] sm:$0xff] }
  0xc8   :  { %v413_v57 = vpop.permute.xlu1 %412  ;;  %v1280_v56 = vpop.permute.xlu0 %432 }
  0xc9   :  { %v467_v33 = vmul.f32 %v1625_v15, %v413_v57  ;;  %v468_v5 = vmul.f32 %v1626_v48, %v413_v57  ;;  %v469_v59 = vmul.f32 %v1627_v19, %v413_v57  ;;  %v470_v26 = vmul.f32 %v1628_v52, %v413_v57 }
  0xca   :  { %v506_v57 = vadd.f32 %v466_v45, %v1158_v30  ;;  %v1638_v45 = vld [vmem:[#allocation11_spill] sm:$0xff] }
  0xcb   :  { %v1336_v34 = vadd.f32 %v468_v5, %v1168_v39  ;;  %v1339_v28 = vadd.f32 %v469_v59, %v1171_v51  ;;  %v1342_v40 = vadd.f32 %v470_v26, %v1174_v50  ;;  %v1637_v39 = vld [vmem:[#allocation10_spill] sm:$0xff] }
  0xcc   :  { %v421_v2 = vpop.permute.xlu1 %420  ;;  %v1310_v41 = vpop.permute.xlu0 %440 }
  0xcd   :  { %1635 = vst [vmem:[#allocation8_spill] sm:$0xff] %v1310_v41  ;;  %v475_v3 = vmul.f32 %v1625_v15, %v421_v2  ;;  %v476_v10 = vmul.f32 %v1626_v48, %v421_v2  ;;  %v477_v11 = vmul.f32 %v1627_v19, %v421_v2  ;;  %v478_v12 = vmul.f32 %v1628_v52, %v421_v2 }
  0xce   :  { %v1333_v2 = vadd.f32 %v467_v33, %v1165_v43  ;;  %v1639_v33 = vld [vmem:[#allocation12_spill] sm:$0xff] }
  0xcf   :  { %v515_v32 = vadd.f32 %v475_v3, %v1185_v62  ;;  %v516_v35 = vadd.f32 %v476_v10, %v1188_v47  ;;  %v517_v9 = vadd.f32 %v477_v11, %v1191_v16  ;;  %v518_v30 = vadd.f32 %v478_v12, %v1194_v27 }
  0xd0   :  { %v429_v22 = vpop.permute.xlu1 %428 }
  0xd1   :  { %v545_v43 = vpop.permute.xlu0 %544  ;;  %v483_v50 = vmul.f32 %v1625_v15, %v429_v22  ;;  %v484_v59 = vmul.f32 %v1626_v48, %v429_v22  ;;  %v485_v62 = vmul.f32 %v1627_v19, %v429_v22  ;;  %v486_v47 = vmul.f32 %v1628_v52, %v429_v22 }
  0xd2   :  { %v599_v18 = vmul.f32 %v1636_v44, %v545_v43  ;;  %v600_v58 = vmul.f32 %v1637_v39, %v545_v43  ;;  %v601_v51 = vmul.f32 %v1638_v45, %v545_v43  ;;  %v602_v5 = vmul.f32 %v1639_v33, %v545_v43 }
  0xd4   :  { %v639_v16 = vadd.f32 %v599_v18, %v503_v38  ;;  %v640_v26 = vadd.f32 %v600_v58, %v504_v55  ;;  %v641_v27 = vadd.f32 %v601_v51, %v505_v7  ;;  %v642_v3 = vadd.f32 %v602_v5, %v506_v57  ;;  %v437_v10 = vpop.permute.xlu1 %436 }
  0xd5   :  { %v491_v11 = vmul.f32 %v1625_v15, %v437_v10  ;;  %v492_v12 = vmul.f32 %v1626_v48, %v437_v10  ;;  %v493_v25 = vmul.f32 %v1627_v19, %v437_v10  ;;  %v494_v43 = vmul.f32 %v1628_v52, %v437_v10  ;;  %v557_v41 = vpop.permute.xlu0 %556 }
  0xd6   :  { %679 = vst [vmem:[%s1574_s2 + $0x20] sm:$0xff] %v639_v16  ;;  %680 = vst [vmem:[%s1574_s2 + $0x28] sm:$0xff] %v640_v26  ;;  %v611_v22 = vmul.f32 %v1636_v44, %v557_v41  ;;  %v612_v38 = vmul.f32 %v1637_v39, %v557_v41  ;;  %v613_v55 = vmul.f32 %v1638_v45, %v557_v41 }
  0xd7   :  { %681 = vst [vmem:[%s1574_s2 + $0x30] sm:$0xff] %v641_v27  ;;  %682 = vst [vmem:[%s1574_s2 + $0x38] sm:$0xff] %v642_v3  ;;  %v614_v7 = vmul.f32 %v1639_v33, %v557_v41  ;;  %v523_v57 = vadd.f32 %v483_v50, %v1205_v4  ;;  %v524_v18 = vadd.f32 %v484_v59, %v1208_v31 }
  0xd8   :  { %v525_v58 = vadd.f32 %v485_v62, %v1211_v42  ;;  %v526_v51 = vadd.f32 %v486_v47, %v1214_v49  ;;  %v651_v5 = vadd.f32 %v611_v22, %v515_v32  ;;  %v652_v16 = vadd.f32 %v612_v38, %v516_v35 }
  0xd9   :  { %v653_v26 = vadd.f32 %v613_v55, %v517_v9  ;;  %v654_v27 = vadd.f32 %v614_v7, %v518_v30  ;;  %v541_v3 = vpop.permute.xlu1 %540  ;;  %v565_v10 = vpop.permute.xlu0 %564  ;;  %v531_v24 = vadd.f32 %v491_v11, %v1241_v54  ;;  %v532_v23 = vadd.f32 %v492_v12, %v1244_v60 }
  0xda   :  { %v533_v41 = vadd.f32 %v493_v25, %v1247_v13  ;;  %v534_v4 = vadd.f32 %v494_v43, %v1250_v8  ;;  %691 = vst [vmem:[%s1574_s2 + $0x80] sm:$0xff] %v651_v5  ;;  %692 = vst [vmem:[%s1574_s2 + $0x88] sm:$0xff] %v652_v16  ;;  %v595_v31 = vmul.f32 %v1636_v44, %v541_v3 }
  0xdb   :  { %693 = vst [vmem:[%s1574_s2 + $0x90] sm:$0xff] %v653_v26  ;;  %694 = vst [vmem:[%s1574_s2 + $0x98] sm:$0xff] %v654_v27  ;;  %v596_v42 = vmul.f32 %v1637_v39, %v541_v3  ;;  %v597_v49 = vmul.f32 %v1638_v45, %v541_v3  ;;  %v598_v13 = vmul.f32 %v1639_v33, %v541_v3 }
  0xdc   :  { %v619_v54 = vmul.f32 %v1636_v44, %v565_v10  ;;  %v620_v60 = vmul.f32 %v1637_v39, %v565_v10  ;;  %v621_v8 = vmul.f32 %v1638_v45, %v565_v10  ;;  %v622_v25 = vmul.f32 %v1639_v33, %v565_v10 }
  0xdd   :  { %v635_v32 = vadd.f32 %v595_v31, %v1269_v0  ;;  %v636_v35 = vadd.f32 %v596_v42, %v1272_v1  ;;  %v637_v9 = vadd.f32 %v597_v49, %v1275_v63  ;;  %v638_v30 = vadd.f32 %v598_v13, %v1278_v14  ;;  %v549_v11 = vpop.permute.xlu1 %548  ;;  %v573_v12 = vpop.permute.xlu0 %572  ;;  %v1640_v42 = vld [vmem:[#allocation14_spill] sm:$0xff]  ;;  %v1641_v13 = vld [vmem:[#allocation15_spill] sm:$0xff] }
  0xde   :  { %v659_v50 = vadd.f32 %v619_v54, %v523_v57  ;;  %v660_v59 = vadd.f32 %v620_v60, %v524_v18  ;;  %v661_v62 = vadd.f32 %v621_v8, %v525_v58  ;;  %v662_v47 = vadd.f32 %v622_v25, %v526_v51  ;;  %v1642_v60 = vld [vmem:[#allocation16_spill] sm:$0xff]  ;;  %v1643_v25 = vld [vmem:[#allocation17_spill] sm:$0xff] }
  0xdf   :  { %675 = vst [vmem:[%s1574_s2] sm:$0xff] %v635_v32  ;;  %676 = vst [vmem:[%s1574_s2 + $0x8] sm:$0xff] %v636_v35  ;;  %v603_v0 = vmul.f32 %v1636_v44, %v549_v11  ;;  %v604_v1 = vmul.f32 %v1637_v39, %v549_v11  ;;  %v605_v63 = vmul.f32 %v1638_v45, %v549_v11 }
  0xe0   :  { %677 = vst [vmem:[%s1574_s2 + $0x10] sm:$0xff] %v637_v9  ;;  %678 = vst [vmem:[%s1574_s2 + $0x18] sm:$0xff] %v638_v30  ;;  %v606_v14 = vmul.f32 %v1639_v33, %v549_v11  ;;  %v627_v43 = vmul.f32 %v1636_v44, %v573_v12  ;;  %v628_v22 = vmul.f32 %v1637_v39, %v573_v12  ;;  %v1645_v9 = vld [vmem:[#allocation19_spill] sm:$0xff]  ;;  %v1646_v11 = vld [vmem:[#allocation8_spill] sm:$0xff] }
  0xe1   :  { %699 = vst [vmem:[%s1574_s2 + $0xc0] sm:$0xff] %v659_v50  ;;  %700 = vst [vmem:[%s1574_s2 + $0xc8] sm:$0xff] %v660_v59  ;;  %v629_v38 = vmul.f32 %v1638_v45, %v573_v12  ;;  %v630_v55 = vmul.f32 %v1639_v33, %v573_v12  ;;  %v643_v7 = vadd.f32 %v603_v0, %v1333_v2  ;;  %v553_v27 = vpop.permute.xlu1 %552 }
  0xe2   :  { %701 = vst [vmem:[%s1574_s2 + $0xd0] sm:$0xff] %v661_v62  ;;  %702 = vst [vmem:[%s1574_s2 + $0xd8] sm:$0xff] %v662_v47  ;;  %v644_v57 = vadd.f32 %v604_v1, %v1336_v34  ;;  %v645_v18 = vadd.f32 %v605_v63, %v1339_v28  ;;  %v646_v58 = vadd.f32 %v606_v14, %v1342_v40  ;;  %v1647_v63 = vld [vmem:[#allocation2_spill] sm:$0xff]  ;;  %v1648_v14 = vld [vmem:[#allocation20_spill] sm:$0xff] }
  0xe3   :  { %v667_v51 = vadd.f32 %v627_v43, %v531_v24  ;;  %v668_v5 = vadd.f32 %v628_v22, %v532_v23  ;;  %v669_v16 = vadd.f32 %v629_v38, %v533_v41  ;;  %v670_v26 = vadd.f32 %v630_v55, %v534_v4  ;;  %683 = vst [vmem:[%s1574_s2 + $0x40] sm:$0xff] %v643_v7  ;;  %v1649_v22 = vld [vmem:[#allocation3_spill] sm:$0xff]  ;;  %v1650_v38 = vld [vmem:[#allocation5_spill] sm:$0xff]  ;;  %v1651_v7 = vld [vmem:[#allocation4_spill] sm:$0xff] }
  0xe4   :  { %684 = vst [vmem:[%s1574_s2 + $0x48] sm:$0xff] %v644_v57  ;;  %685 = vst [vmem:[%s1574_s2 + $0x50] sm:$0xff] %v645_v18  ;;  %v607_v23 = vmul.f32 %v1636_v44, %v553_v27  ;;  %v608_v24 = vmul.f32 %v1637_v39, %v553_v27  ;;  %v609_v28 = vmul.f32 %v1638_v45, %v553_v27  ;;  %v1652_v57 = vld [vmem:[#allocation6_spill] sm:$0xff] }
  0xe5   :  { %686 = vst [vmem:[%s1574_s2 + $0x58] sm:$0xff] %v646_v58  ;;  %v610_v34 = vmul.f32 %v1639_v33, %v553_v27  ;;  %v487_v2 = vmul.f32 %v1625_v15, %v1280_v56  ;;  %v488_v40 = vmul.f32 %v1626_v48, %v1280_v56  ;;  %v489_v3 = vmul.f32 %v1627_v19, %v1280_v56  ;;  %v561_v35 = vpop.permute.xlu1 %560  ;;  %v1653_v58 = vld [vmem:[#allocation13_spill] sm:$0xff] }
  0xe6   :  { %v490_v10 = vmul.f32 %v1628_v52, %v1280_v56  ;;  %707 = vst [vmem:[%s1574_s2 + $0x100] sm:$0xff] %v667_v51  ;;  %708 = vst [vmem:[%s1574_s2 + $0x108] sm:$0xff] %v668_v5  ;;  %v647_v41 = vadd.f32 %v607_v23, %v1294_v29  ;;  %v648_v56 = vadd.f32 %v608_v24, %v1296_v37  ;;  %v1654_v51 = vld [vmem:[#allocation7_spill] sm:$0xff] }
  0xe7   :  { %709 = vst [vmem:[%s1574_s2 + $0x110] sm:$0xff] %v669_v16  ;;  %710 = vst [vmem:[%s1574_s2 + $0x118] sm:$0xff] %v670_v26  ;;  %v649_v4 = vadd.f32 %v609_v28, %v1298_v46  ;;  %v650_v31 = vadd.f32 %v610_v34, %v1300_v61  ;;  %v519_v49 = vadd.f32 %v1317_v36, %v1640_v42 }
  0xe8   :  { %v520_v54 = vadd.f32 %v1320_v53, %v1641_v13  ;;  %v521_v8 = vadd.f32 %v1323_v6, %v1642_v60  ;;  %v522_v32 = vadd.f32 %v1326_v17, %v1643_v25  ;;  %687 = vst [vmem:[%s1574_s2 + $0x60] sm:$0xff] %v647_v41  ;;  %688 = vst [vmem:[%s1574_s2 + $0x68] sm:$0xff] %v648_v56  ;;  %v1644_v6 = vld [vmem:[#allocation18_spill] sm:$0xff] }
  0xe9   :  { %689 = vst [vmem:[%s1574_s2 + $0x70] sm:$0xff] %v649_v4  ;;  %690 = vst [vmem:[%s1574_s2 + $0x78] sm:$0xff] %v650_v31  ;;  %v615_v29 = vmul.f32 %v1636_v44, %v561_v35  ;;  %v616_v37 = vmul.f32 %v1637_v39, %v561_v35  ;;  %v617_v46 = vmul.f32 %v1638_v45, %v561_v35 }
  0xea   :  { %v618_v61 = vmul.f32 %v1639_v33, %v561_v35  ;;  %v527_v36 = vadd.f32 %v487_v2, %v1257_v20  ;;  %v528_v53 = vadd.f32 %v488_v40, %v1260_v21  ;;  %v529_v17 = vadd.f32 %v489_v3, %v1644_v6  ;;  %v569_v21 = vpop.permute.xlu1 %568 }
  0xeb   :  { %v530_v30 = vadd.f32 %v490_v10, %v1645_v9  ;;  %v655_v50 = vadd.f32 %v615_v29, %v519_v49  ;;  %v656_v59 = vadd.f32 %v616_v37, %v520_v54  ;;  %v657_v62 = vadd.f32 %v617_v46, %v521_v8 }
  0xec   :  { %v658_v47 = vadd.f32 %v618_v61, %v522_v32  ;;  %v495_v12 = vmul.f32 %v1625_v15, %v1646_v11  ;;  %v496_v0 = vmul.f32 %v1626_v48, %v1646_v11  ;;  %v497_v1 = vmul.f32 %v1627_v19, %v1646_v11 }
  0xed   :  { %v498_v20 = vmul.f32 %v1628_v52, %v1646_v11  ;;  %695 = vst [vmem:[%s1574_s2 + $0xa0] sm:$0xff] %v655_v50  ;;  %696 = vst [vmem:[%s1574_s2 + $0xa8] sm:$0xff] %v656_v59  ;;  %v623_v15 = vmul.f32 %v1636_v44, %v569_v21  ;;  %v624_v48 = vmul.f32 %v1637_v39, %v569_v21 }
  0xee   :  { %697 = vst [vmem:[%s1574_s2 + $0xb0] sm:$0xff] %v657_v62  ;;  %698 = vst [vmem:[%s1574_s2 + $0xb8] sm:$0xff] %v658_v47  ;;  %v625_v19 = vmul.f32 %v1638_v45, %v569_v21  ;;  %v626_v52 = vmul.f32 %v1639_v33, %v569_v21  ;;  %v399_v43 = vadd.f32 %v1648_v14, %v1647_v63  ;;  %v577_v24 = vpop.permute.xlu1 %576 }
  0xef   :  { %v400_v55 = vadd.f32 %v1650_v38, %v1649_v22  ;;  %v401_v18 = vadd.f32 %v1652_v57, %v1651_v7  ;;  %v402_v5 = vadd.f32 %v1654_v51, %v1653_v58  ;;  %v663_v16 = vadd.f32 %v623_v15, %v527_v36 }
  0xf0   :  { %v664_v26 = vadd.f32 %v624_v48, %v528_v53  ;;  %v665_v27 = vadd.f32 %v625_v19, %v529_v17  ;;  %v666_v23 = vadd.f32 %v626_v52, %v530_v30  ;;  %v535_v28 = vadd.f32 %v495_v12, %v399_v43 }
  0xf1   :  { %v536_v34 = vadd.f32 %v496_v0, %v400_v55  ;;  %v537_v2 = vadd.f32 %v497_v1, %v401_v18  ;;  %v538_v40 = vadd.f32 %v498_v20, %v402_v5  ;;  %703 = vst [vmem:[%s1574_s2 + $0xe0] sm:$0xff] %v663_v16  ;;  %v631_v3 = vmul.f32 %v1636_v44, %v577_v24 }
  0xf2   :  { %704 = vst [vmem:[%s1574_s2 + $0xe8] sm:$0xff] %v664_v26  ;;  %705 = vst [vmem:[%s1574_s2 + $0xf0] sm:$0xff] %v665_v27  ;;  %v632_v10 = vmul.f32 %v1637_v39, %v577_v24  ;;  %v633_v41 = vmul.f32 %v1638_v45, %v577_v24  ;;  %v634_v56 = vmul.f32 %v1639_v33, %v577_v24 }
  0xf3   :  { %706 = vst [vmem:[%s1574_s2 + $0xf8] sm:$0xff] %v666_v23  ;;  %v671_v4 = vadd.f32 %v631_v3, %v535_v28 }
  0xf4   :  { %v672_v31 = vadd.f32 %v632_v10, %v536_v34  ;;  %v673_v42 = vadd.f32 %v633_v41, %v537_v2  ;;  %v674_v49 = vadd.f32 %v634_v56, %v538_v40 }
  0xf5   :  { %711 = vst [vmem:[%s1574_s2 + $0x120] sm:$0xff] %v671_v4 }
  0xf6   :  { %712 = vst [vmem:[%s1574_s2 + $0x128] sm:$0xff] %v672_v31  ;;  %713 = vst [vmem:[%s1574_s2 + $0x130] sm:$0xff] %v673_v42 }
  0xf7   :  { %714 = vst [vmem:[%s1574_s2 + $0x138] sm:$0xff] %v674_v49 }

// kernel: autoencoder_mix_forward.9
= control target key start
LH: loop header
LB: loop body
LE: loop exit
PB: predicated region body
PF: predicated region fallthrough
CT: control target
= control target key end

     0   :  { %v1437_v0 = vmov 1   ;;  %v1438_v1 = vmov 0   ;;  %v1439_v6 = vmov 2   ;;  %v1440_v7 = vmov 3   ;;  %s3442_s0 = inlined_call_operand.vmem [shape: f32[16,5], index: 0, kind: input, shape index: {}]   ;;  %s3443_s2 = inlined_call_operand.vmem [shape: f32[16,5], index: 2, kind: input, shape index: {}]   ;;  %s3444_s1 = inlined_call_operand.vmem [shape: f32[5,2048], index: 1, kind: input, shape index: {}]   ;;  %s3445_s3 = inlined_call_operand.vmem [shape: f32[5,2048], index: 3, kind: input, shape index: {}]   ;;  %s3446_s4 = inlined_call_operand.vmem [shape: f32[32,2048], index: 4, kind: output, shape index: {}]  }
   0x1   :  { %1427 = vset.pattern.permute.xlu1 %v1437_v0  ;;  %1426 = vset.pattern.permute.xlu0 %v1438_v1  ;;  %v17_v2 = vld [vmem:[%s3442_s0] sm:$0xff]  ;;  %v18_v3 = vld [vmem:[%s3442_s0 + $0x8] sm:$0xff]  ;;  %v1441_v8 = vmov 4   ;;  %v45_v9 = vlaneseq  ;;  %v1494_v13 = vld [vmem:[%s3444_s1 + $0x10] sm:$0x1f] }
   0x2   :  { %142 = vperm.xlu1 %1427, %v17_v2   ;;  %37 = vperm.xlu0 %1426, %v17_v2   ;;  %v717_v4 = vld [vmem:[%s3443_s2] sm:$0xff]  ;;  %v718_v5 = vld [vmem:[%s3443_s2 + $0x8] sm:$0xff]  ;;  %v1499_v14 = vld [vmem:[%s3444_s1 + $0x18] sm:$0x1f] }
   0x3   :  { %v1479_v10 = vshrl.u32 %v45_v9, 7  ;;  %v1484_v11 = vld [vmem:[%s3444_s1] sm:$0x1f]  ;;  %v1489_v12 = vld [vmem:[%s3444_s1 + $0x8] sm:$0x1f] }
   0x4   :  { %v1507_v16 = vld [vmem:[%s3444_s1 + $0x20] sm:$0x1f]  ;;  %v1512_v17 = vld [vmem:[%s3444_s1 + $0x28] sm:$0x1f]  ;;  %v1517_v18 = vld [vmem:[%s3444_s1 + $0x30] sm:$0x1f] }
   0x5   :  { %v1502_v15 = vsub.s32 1, %v1479_v10  ;;  %v1522_v19 = vld [vmem:[%s3444_s1 + $0x38] sm:$0x1f]  ;;  %v1527_v20 = vld [vmem:[%s3444_s1 + $0x40] sm:$0x1f]  ;;  %v1572_v30 = vsub.s32 0, %v1479_v10 }
   0x6   :  { %146 = vperm.xlu1 %1427, %v18_v3   ;;  %42 = vperm.xlu0 %1426, %v18_v3   ;;  %v1532_v21 = vld [vmem:[%s3444_s1 + $0x48] sm:$0x1f]  ;;  %v1537_v22 = vld [vmem:[%s3444_s1 + $0x50] sm:$0x1f]  ;;  %v1542_v23 = vld [vmem:[%s3444_s1 + $0x58] sm:$0x1f] }
   0x7   :  { %v1547_v24 = vld [vmem:[%s3444_s1 + $0x60] sm:$0x1f]  ;;  %v1552_v25 = vld [vmem:[%s3444_s1 + $0x68] sm:$0x1f]  ;;  %v1557_v26 = vld [vmem:[%s3444_s1 + $0x70] sm:$0x1f]  ;;  %v1561_v27 = vrot.slane %v1484_v11, %v1502_v15  ;;  %v1565_v28 = vrot.slane %v1489_v12, %v1502_v15  ;;  %v1569_v29 = vrot.slane %v1494_v13, %v1502_v15  ;;  %v1581_v32 = vrot.slane %v1499_v14, %v1502_v15 }
   0x8   :  { %v1577_v31 = vld [vmem:[%s3444_s1 + $0x78] sm:$0x1f]  ;;  %v1585_v33 = vrot.slane %v1507_v16, %v1502_v15  ;;  %v1589_v34 = vrot.slane %v1512_v17, %v1502_v15  ;;  %v1593_v35 = vrot.slane %v1517_v18, %v1502_v15  ;;  %v1597_v36 = vrot.slane %v1522_v19, %v1502_v15  ;;  %v1646_v48 = vld [vmem:[%s3445_s3] sm:$0x1f]  ;;  %v1651_v49 = vld [vmem:[%s3445_s3 + $0x8] sm:$0x1f] }
   0x9   :  { %v1601_v37 = vrot.slane %v1527_v20, %v1502_v15  ;;  %v1605_v38 = vrot.slane %v1532_v21, %v1502_v15  ;;  %v1609_v39 = vrot.slane %v1537_v22, %v1502_v15  ;;  %v1613_v40 = vrot.slane %v1542_v23, %v1502_v15  ;;  %v1656_v50 = vld [vmem:[%s3445_s3 + $0x10] sm:$0x1f]  ;;  %v1677_v55 = vld [vmem:[%s3445_s3 + $0x18] sm:$0x1f]  ;;  %v1682_v56 = vld [vmem:[%s3445_s3 + $0x20] sm:$0x1f] }
   0xa   :  { %1428 = vset.pattern.permute.xlu1 %v1438_v1  ;;  %737 = vperm.xlu0 %1426, %v717_v4   ;;  %v1617_v41 = vrot.slane %v1547_v24, %v1502_v15  ;;  %v1621_v42 = vrot.slane %v1552_v25, %v1502_v15  ;;  %v1625_v43 = vrot.slane %v1557_v26, %v1502_v15  ;;  %v1687_v57 = vld [vmem:[%s3445_s3 + $0x28] sm:$0x1f]  ;;  %v1708_v62 = vld [vmem:[%s3445_s3 + $0x30] sm:$0x1f]  ;;  %v1713_v63 = vld [vmem:[%s3445_s3 + $0x38] sm:$0x1f] }
   0xb   :  { %742 = vperm.xlu1 %1428, %v718_v5   ;;  %v1629_v44 = vrot.slane %v1577_v31, %v1502_v15  ;;  %v1633_v45 = vrot.slane %v1484_v11, %v1572_v30  ;;  %v1637_v46 = vrot.slane %v1489_v12, %v1572_v30  ;;  %v1641_v47 = vrot.slane %v1494_v13, %v1572_v30  ;;  %v1758_v9 = vld [vmem:[%s3445_s3 + $0x60] sm:$0x1f] }
   0xc   :  { %v1660_v51 = vrot.slane %v1499_v14, %v1572_v30  ;;  %v1664_v52 = vrot.slane %v1507_v16, %v1572_v30  ;;  %v1668_v53 = vrot.slane %v1512_v17, %v1572_v30  ;;  %v1672_v54 = vrot.slane %v1517_v18, %v1572_v30 }
   0xd   :  { %v1691_v58 = vrot.slane %v1522_v19, %v1572_v30  ;;  %v1695_v59 = vrot.slane %v1527_v20, %v1572_v30  ;;  %v1699_v60 = vrot.slane %v1532_v21, %v1572_v30  ;;  %v1703_v61 = vrot.slane %v1537_v22, %v1572_v30 }
   0xe   :  { %1429 = vset.pattern.permute.xlu0 %v1437_v0  ;;  %3590 = vst [vmem:[#allocation2_spill] sm:$0xff] %v1664_v52  ;;  %3591 = vst [vmem:[#allocation3_spill] sm:$0xff] %v1668_v53  ;;  %v1722_v1 = vrot.slane %v1542_v23, %v1572_v30 }
   0xf   :  { %1430 = vset.pattern.permute.xlu1 %v1437_v0  ;;  %842 = vperm.xlu0 %1429, %v717_v4   ;;  %3592 = vst [vmem:[#allocation4_spill] sm:$0xff] %v1672_v54  ;;  %3593 = vst [vmem:[#allocation5_spill] sm:$0xff] %v1691_v58  ;;  %v1718_v0 = vld [vmem:[%s3445_s3 + $0x40] sm:$0x1f] }
  0x10   :  { %846 = vperm.xlu1 %1430, %v718_v5   ;;  %3594 = vst [vmem:[#allocation6_spill] sm:$0xff] %v1695_v59  ;;  %3595 = vst [vmem:[#allocation7_spill] sm:$0xff] %v1699_v60  ;;  %v1789_v60 = vrot.slane %v1677_v55, %v1572_v30  ;;  %v1805_v59 = vrot.slane %v1713_v63, %v1572_v30  ;;  %v1809_v58 = vrot.slane %v1718_v0, %v1572_v30 }
  0x11   :  { %3596 = vst [vmem:[#allocation8_spill] sm:$0xff] %v1703_v61  ;;  %3597 = vst [vmem:[#allocation9_spill] sm:$0xff] %v1722_v1  ;;  %v1780_v1 = vrot.slane %v1656_v50, %v1572_v30  ;;  %v1785_v61 = vld [vmem:[%s3445_s3 + $0x78] sm:$0x1f] }
  0x12   :  { %3605 = vst [vmem:[#allocation17_spill] sm:$0xff] %v1789_v60  ;;  %3609 = vst [vmem:[#allocation21_spill] sm:$0xff] %v1805_v59 }
  0x13   :  { %1432 = vset.pattern.permute.xlu0 %v1439_v6  ;;  %3604 = vst [vmem:[#allocation16_spill] sm:$0xff] %v1780_v1  ;;  %v1801_v1 = vrot.slane %v1708_v62, %v1572_v30  ;;  %3610 = vst [vmem:[#allocation22_spill] sm:$0xff] %v1809_v58 }
  0x14   :  { %1431 = vset.pattern.permute.xlu1 %v1439_v6  ;;  %282 = vperm.xlu0 %1432, %v18_v3   ;;  %v1744_v6 = vld [vmem:[%s3445_s3 + $0x50] sm:$0x1f] }
  0x15   :  { %278 = vperm.xlu1 %1431, %v17_v2   ;;  %3608 = vst [vmem:[#allocation20_spill] sm:$0xff] %v1801_v1  ;;  %v1825_v1 = vrot.slane %v1758_v9, %v1572_v30 }
  0x17   :  { %3614 = vst [vmem:[#allocation26_spill] sm:$0xff] %v1825_v1  ;;  %v287_v1 = vsub.s32 2, %v1479_v10 }
  0x18   :  { %1433 = vset.pattern.permute.xlu0 %v1440_v7 }
  0x19   :  { %978 = vperm.xlu1 %1431, %v717_v4   ;;  %414 = vperm.xlu0 %1433, %v17_v2   ;;  %v1914_v54 = vrot.slane %v1499_v14, %v287_v1 }
  0x1b   :  { %3637 = vst [vmem:[#allocation49_spill] sm:$0xff] %v1914_v54  ;;  %v1935_v54 = vrot.slane %v1537_v22, %v287_v1 }
  0x1d   :  { %982 = vperm.xlu1 %1431, %v718_v5   ;;  %1118 = vperm.xlu0 %1433, %v718_v5   ;;  %3644 = vst [vmem:[#allocation56_spill] sm:$0xff] %v1935_v54  ;;  %v1956_v54 = vsub.s32 3, %v1479_v10 }
  0x21   :  { %1434 = vset.pattern.permute.xlu1 %v1440_v7  ;;  %1436 = vset.pattern.permute.xlu0 %v1441_v8  ;;  %v1749_v7 = vld [vmem:[%s3445_s3 + $0x58] sm:$0x1f] }
  0x22   :  { %418 = vperm.xlu1 %1434, %v18_v3   ;;  %554 = vperm.xlu0 %1436, %v18_v3   ;;  %v1730_v3 = vrot.slane %v1552_v25, %v1572_v30 }
  0x24   :  { %3599 = vst [vmem:[#allocation11_spill] sm:$0xff] %v1730_v3  ;;  %v1768_v3 = vld [vmem:[%s3445_s3 + $0x70] sm:$0x1f] }
  0x25   :  { %v1833_v58 = vrot.slane %v1768_v3, %v1572_v30 }
  0x26   :  { %1114 = vperm.xlu1 %1434, %v717_v4  }
  0x27   :  { %3616 = vst [vmem:[#allocation28_spill] sm:$0xff] %v1833_v58  ;;  %v1854_v58 = vrot.slane %v1677_v55, %v1502_v15 }
  0x29   :  { %3621 = vst [vmem:[#allocation33_spill] sm:$0xff] %v1854_v58 }
  0x2a   :  { %1435 = vset.pattern.permute.xlu1 %v1441_v8  ;;  %v1753_v8 = vrot.slane %v1577_v31, %v1572_v30 }
  0x2b   :  { %550 = vperm.xlu1 %1435, %v17_v2   ;;  %v1726_v2 = vrot.slane %v1547_v24, %v1572_v30 }
  0x2c   :  { %3601 = vst [vmem:[#allocation13_spill] sm:$0xff] %v1753_v8  ;;  %v1776_v8 = vrot.slane %v1651_v49, %v1572_v30 }
  0x2d   :  { %3598 = vst [vmem:[#allocation10_spill] sm:$0xff] %v1726_v2  ;;  %v1772_v2 = vrot.slane %v1646_v48, %v1572_v30 }
  0x2e   :  { %3603 = vst [vmem:[#allocation15_spill] sm:$0xff] %v1776_v8  ;;  %v1797_v8 = vrot.slane %v1687_v57, %v1572_v30 }
  0x2f   :  { %1250 = vperm.xlu1 %1435, %v717_v4   ;;  %v1734_v4 = vrot.slane %v1557_v26, %v1572_v30  ;;  %3602 = vst [vmem:[#allocation14_spill] sm:$0xff] %v1772_v2  ;;  %v1793_v2 = vrot.slane %v1682_v56, %v1572_v30 }
  0x30   :  { %3607 = vst [vmem:[#allocation19_spill] sm:$0xff] %v1797_v8  ;;  %v1821_v8 = vrot.slane %v1749_v7, %v1572_v30 }
  0x31   :  { %3600 = vst [vmem:[#allocation12_spill] sm:$0xff] %v1734_v4  ;;  %v1763_v4 = vld [vmem:[%s3445_s3 + $0x68] sm:$0x1f]  ;;  %3606 = vst [vmem:[#allocation18_spill] sm:$0xff] %v1793_v2  ;;  %v1817_v2 = vrot.slane %v1744_v6, %v1572_v30 }
  0x32   :  { %3613 = vst [vmem:[#allocation25_spill] sm:$0xff] %v1821_v8  ;;  %v1829_v59 = vrot.slane %v1763_v4, %v1572_v30  ;;  %v1845_v8 = vrot.slane %v1651_v49, %v1502_v15 }
  0x33   :  { %1254 = vperm.xlu1 %1435, %v718_v5   ;;  %v1739_v5 = vld [vmem:[%s3445_s3 + $0x48] sm:$0x1f]  ;;  %3612 = vst [vmem:[#allocation24_spill] sm:$0xff] %v1817_v2  ;;  %v1841_v2 = vrot.slane %v1646_v48, %v1502_v15 }
  0x34   :  { %v1813_v60 = vrot.slane %v1739_v5, %v1572_v30  ;;  %3615 = vst [vmem:[#allocation27_spill] sm:$0xff] %v1829_v59  ;;  %3619 = vst [vmem:[#allocation31_spill] sm:$0xff] %v1845_v8  ;;  %v1850_v59 = vrot.slane %v1656_v50, %v1502_v15  ;;  %v1866_v8 = vrot.slane %v1708_v62, %v1502_v15 }
  0x35   :  { %3618 = vst [vmem:[#allocation30_spill] sm:$0xff] %v1841_v2  ;;  %v1862_v2 = vrot.slane %v1687_v57, %v1502_v15  ;;  %v1878_v58 = vrot.slane %v1739_v5, %v1502_v15 }
  0x36   :  { %3611 = vst [vmem:[#allocation23_spill] sm:$0xff] %v1813_v60  ;;  %v1837_v60 = vrot.slane %v1785_v61, %v1572_v30  ;;  %3620 = vst [vmem:[#allocation32_spill] sm:$0xff] %v1850_v59  ;;  %v1858_v30 = vrot.slane %v1682_v56, %v1502_v15  ;;  %v1874_v59 = vrot.slane %v1718_v0, %v1502_v15 }
  0x37   :  { %3623 = vst [vmem:[#allocation35_spill] sm:$0xff] %v1862_v2  ;;  %3624 = vst [vmem:[#allocation36_spill] sm:$0xff] %v1866_v8  ;;  %v1886_v2 = vrot.slane %v1749_v7, %v1502_v15  ;;  %v1890_v8 = vrot.slane %v1758_v9, %v1502_v15 }
  0x38   :  { %3617 = vst [vmem:[#allocation29_spill] sm:$0xff] %v1837_v60  ;;  %3622 = vst [vmem:[#allocation34_spill] sm:$0xff] %v1858_v30  ;;  %v1870_v60 = vrot.slane %v1713_v63, %v1502_v15  ;;  %v1882_v30 = vrot.slane %v1744_v6, %v1502_v15 }
  0x39   :  { %3626 = vst [vmem:[#allocation38_spill] sm:$0xff] %v1874_v59  ;;  %3627 = vst [vmem:[#allocation39_spill] sm:$0xff] %v1878_v58  ;;  %v1898_v59 = vrot.slane %v1768_v3, %v1502_v15  ;;  %v1902_v58 = vrot.slane %v1785_v61, %v1502_v15 }
  0x3a   :  { %3625 = vst [vmem:[#allocation37_spill] sm:$0xff] %v1870_v60  ;;  %3628 = vst [vmem:[#allocation40_spill] sm:$0xff] %v1882_v30  ;;  %v1894_v60 = vrot.slane %v1763_v4, %v1502_v15  ;;  %v1905_v30 = vrot.slane %v1484_v11, %v287_v1  ;;  %v1923_v15 = vrot.slane %v1517_v18, %v287_v1 }
  0x3b   :  { %3629 = vst [vmem:[#allocation41_spill] sm:$0xff] %v1886_v2  ;;  %3630 = vst [vmem:[#allocation42_spill] sm:$0xff] %v1890_v8  ;;  %v1908_v2 = vrot.slane %v1489_v12, %v287_v1  ;;  %v1911_v8 = vrot.slane %v1494_v13, %v287_v1 }
  0x3c   :  { %3631 = vst [vmem:[#allocation43_spill] sm:$0xff] %v1894_v60  ;;  %3632 = vst [vmem:[#allocation44_spill] sm:$0xff] %v1898_v59  ;;  %v1917_v60 = vrot.slane %v1507_v16, %v287_v1  ;;  %v1920_v59 = vrot.slane %v1512_v17, %v287_v1 }
  0x3d   :  { %3633 = vst [vmem:[#allocation45_spill] sm:$0xff] %v1902_v58  ;;  %3634 = vst [vmem:[#allocation46_spill] sm:$0xff] %v1905_v30  ;;  %v1926_v30 = vrot.slane %v1522_v19, %v287_v1  ;;  %v1977_v58 = vrot.slane %v1713_v63, %v287_v1 }
  0x3e   :  { %3635 = vst [vmem:[#allocation47_spill] sm:$0xff] %v1908_v2  ;;  %3636 = vst [vmem:[#allocation48_spill] sm:$0xff] %v1911_v8  ;;  %v1929_v2 = vrot.slane %v1527_v20, %v287_v1  ;;  %v1932_v8 = vrot.slane %v1532_v21, %v287_v1 }
  0x3f   :  { %3638 = vst [vmem:[#allocation50_spill] sm:$0xff] %v1917_v60  ;;  %3639 = vst [vmem:[#allocation51_spill] sm:$0xff] %v1920_v59  ;;  %v1938_v60 = vrot.slane %v1542_v23, %v287_v1  ;;  %v1941_v59 = vrot.slane %v1547_v24, %v287_v1 }
  0x40   :  { %3640 = vst [vmem:[#allocation52_spill] sm:$0xff] %v1923_v15  ;;  %3641 = vst [vmem:[#allocation53_spill] sm:$0xff] %v1926_v30  ;;  %v1944_v15 = vrot.slane %v1552_v25, %v287_v1  ;;  %v1947_v30 = vrot.slane %v1557_v26, %v287_v1 }
  0x41   :  { %3642 = vst [vmem:[#allocation54_spill] sm:$0xff] %v1929_v2  ;;  %3643 = vst [vmem:[#allocation55_spill] sm:$0xff] %v1932_v8  ;;  %v1950_v2 = vrot.slane %v1577_v31, %v287_v1  ;;  %v1953_v8 = vrot.slane %v1646_v48, %v287_v1 }
  0x42   :  { %3645 = vst [vmem:[#allocation57_spill] sm:$0xff] %v1938_v60  ;;  %3646 = vst [vmem:[#allocation58_spill] sm:$0xff] %v1941_v59  ;;  %v1959_v60 = vrot.slane %v1651_v49, %v287_v1  ;;  %v1962_v59 = vrot.slane %v1656_v50, %v287_v1 }
  0x43   :  { %3647 = vst [vmem:[#allocation59_spill] sm:$0xff] %v1944_v15  ;;  %3648 = vst [vmem:[#allocation60_spill] sm:$0xff] %v1947_v30  ;;  %v1965_v15 = vrot.slane %v1677_v55, %v287_v1  ;;  %v1968_v30 = vrot.slane %v1682_v56, %v287_v1 }
  0x44   :  { %3649 = vst [vmem:[#allocation61_spill] sm:$0xff] %v1950_v2  ;;  %3650 = vst [vmem:[#allocation62_spill] sm:$0xff] %v1953_v8  ;;  %v1971_v2 = vrot.slane %v1687_v57, %v287_v1  ;;  %v1974_v8 = vrot.slane %v1708_v62, %v287_v1 }
  0x45   :  { %3651 = vst [vmem:[#allocation63_spill] sm:$0xff] %v1959_v60  ;;  %3652 = vst [vmem:[#allocation64_spill] sm:$0xff] %v1962_v59  ;;  %v1980_v60 = vrot.slane %v1718_v0, %v287_v1  ;;  %v1983_v59 = vrot.slane %v1739_v5, %v287_v1 }
  0x46   :  { %3653 = vst [vmem:[#allocation65_spill] sm:$0xff] %v1965_v15  ;;  %3654 = vst [vmem:[#allocation66_spill] sm:$0xff] %v1968_v30  ;;  %v1986_v15 = vrot.slane %v1744_v6, %v287_v1  ;;  %v1989_v30 = vrot.slane %v1749_v7, %v287_v1 }
  0x47   :  { %3655 = vst [vmem:[#allocation67_spill] sm:$0xff] %v1971_v2  ;;  %3656 = vst [vmem:[#allocation68_spill] sm:$0xff] %v1974_v8  ;;  %v1992_v2 = vrot.slane %v1758_v9, %v287_v1  ;;  %v1995_v8 = vrot.slane %v1763_v4, %v287_v1 }
  0x48   :  { %3657 = vst [vmem:[#allocation69_spill] sm:$0xff] %v1977_v58  ;;  %3658 = vst [vmem:[#allocation70_spill] sm:$0xff] %v1980_v60  ;;  %v1998_v58 = vrot.slane %v1768_v3, %v287_v1  ;;  %v2001_v60 = vrot.slane %v1785_v61, %v287_v1  ;;  %v2022_v1 = vrot.slane %v1507_v16, %v1956_v54 }
  0x49   :  { %3659 = vst [vmem:[#allocation71_spill] sm:$0xff] %v1983_v59  ;;  %3660 = vst [vmem:[#allocation72_spill] sm:$0xff] %v1986_v15  ;;  %v2005_v59 = vrot.slane %v1484_v11, %v1956_v54  ;;  %v2009_v15 = vrot.slane %v1489_v12, %v1956_v54 }
  0x4a   :  { %3661 = vst [vmem:[#allocation73_spill] sm:$0xff] %v1989_v30  ;;  %3662 = vst [vmem:[#allocation74_spill] sm:$0xff] %v1992_v2  ;;  %v2013_v2 = vrot.slane %v1494_v13, %v1956_v54  ;;  %v3739_v30 = vld [vmem:[#allocation13_spill] sm:$0xff] }
  0x4b   :  { %3663 = vst [vmem:[#allocation75_spill] sm:$0xff] %v1995_v8  ;;  %3664 = vst [vmem:[#allocation76_spill] sm:$0xff] %v1998_v58  ;;  %v2017_v8 = vrot.slane %v1499_v14, %v1956_v54  ;;  %v559_v58 = vsub.s32 4, %v1479_v10  ;;  %v2042_v10 = vrot.slane %v1532_v21, %v1956_v54 }
  0x4c   :  { %3665 = vst [vmem:[#allocation77_spill] sm:$0xff] %v2001_v60  ;;  %3666 = vst [vmem:[#allocation78_spill] sm:$0xff] %v2005_v59  ;;  %v2026_v59 = vrot.slane %v1512_v17, %v1956_v54 }
  0x4d   :  { %3667 = vst [vmem:[#allocation79_spill] sm:$0xff] %v2009_v15  ;;  %3668 = vst [vmem:[#allocation80_spill] sm:$0xff] %v2013_v2  ;;  %v2030_v15 = vrot.slane %v1517_v18, %v1956_v54  ;;  %v2034_v2 = vrot.slane %v1522_v19, %v1956_v54  ;;  %v2078_v60 = vrot.slane %v1499_v14, %v559_v58 }
  0x4e   :  { %3669 = vst [vmem:[#allocation81_spill] sm:$0xff] %v2017_v8  ;;  %3670 = vst [vmem:[#allocation82_spill] sm:$0xff] %v2022_v1  ;;  %v2038_v8 = vrot.slane %v1527_v20, %v1956_v54  ;;  %v2046_v1 = vrot.slane %v1537_v22, %v1956_v54  ;;  %v2099_v14 = vrot.slane %v1537_v22, %v559_v58 }
  0x4f   :  { %3671 = vst [vmem:[#allocation83_spill] sm:$0xff] %v2026_v59  ;;  %3672 = vst [vmem:[#allocation84_spill] sm:$0xff] %v2030_v15  ;;  %v2050_v59 = vrot.slane %v1542_v23, %v1956_v54  ;;  %v2054_v15 = vrot.slane %v1547_v24, %v1956_v54  ;;  %v2122_v22 = vrot.slane %v1651_v49, %v1956_v54 }
  0x50   :  { %3673 = vst [vmem:[#allocation85_spill] sm:$0xff] %v2034_v2  ;;  %3674 = vst [vmem:[#allocation86_spill] sm:$0xff] %v2038_v8  ;;  %v2058_v2 = vrot.slane %v1552_v25, %v1956_v54  ;;  %v2062_v8 = vrot.slane %v1557_v26, %v1956_v54 }
  0x51   :  { %3675 = vst [vmem:[#allocation87_spill] sm:$0xff] %v2042_v10  ;;  %3676 = vst [vmem:[#allocation88_spill] sm:$0xff] %v2046_v1  ;;  %v2066_v10 = vrot.slane %v1577_v31, %v1956_v54  ;;  %v2069_v1 = vrot.slane %v1484_v11, %v559_v58  ;;  %v2090_v11 = vrot.slane %v1522_v19, %v559_v58 }
  0x52   :  { %3677 = vst [vmem:[#allocation89_spill] sm:$0xff] %v2050_v59  ;;  %3678 = vst [vmem:[#allocation90_spill] sm:$0xff] %v2054_v15  ;;  %v2072_v59 = vrot.slane %v1489_v12, %v559_v58  ;;  %v2075_v15 = vrot.slane %v1494_v13, %v559_v58  ;;  %v2093_v12 = vrot.slane %v1527_v20, %v559_v58 }
  0x53   :  { %3679 = vst [vmem:[#allocation91_spill] sm:$0xff] %v2058_v2  ;;  %3680 = vst [vmem:[#allocation92_spill] sm:$0xff] %v2062_v8  ;;  %v2081_v2 = vrot.slane %v1507_v16, %v559_v58  ;;  %v2084_v8 = vrot.slane %v1512_v17, %v559_v58  ;;  %v2096_v13 = vrot.slane %v1532_v21, %v559_v58 }
  0x54   :  { %3681 = vst [vmem:[#allocation93_spill] sm:$0xff] %v2066_v10  ;;  %3682 = vst [vmem:[#allocation94_spill] sm:$0xff] %v2069_v1  ;;  %v2087_v10 = vrot.slane %v1517_v18, %v559_v58  ;;  %v2102_v16 = vrot.slane %v1542_v23, %v559_v58  ;;  %v2105_v17 = vrot.slane %v1547_v24, %v559_v58 }
  0x55   :  { %3683 = vst [vmem:[#allocation95_spill] sm:$0xff] %v2072_v59  ;;  %3684 = vst [vmem:[#allocation96_spill] sm:$0xff] %v2075_v15  ;;  %v2108_v18 = vrot.slane %v1552_v25, %v559_v58  ;;  %v2111_v19 = vrot.slane %v1557_v26, %v559_v58  ;;  %v2114_v20 = vrot.slane %v1577_v31, %v559_v58  ;;  %v3738_v59 = vld [vmem:[#allocation12_spill] sm:$0xff] }
  0x56   :  { %3685 = vst [vmem:[#allocation97_spill] sm:$0xff] %v2078_v60  ;;  %3686 = vst [vmem:[#allocation98_spill] sm:$0xff] %v2081_v2  ;;  %v2118_v21 = vrot.slane %v1646_v48, %v1956_v54  ;;  %v2126_v23 = vrot.slane %v1656_v50, %v1956_v54  ;;  %v2130_v24 = vrot.slane %v1677_v55, %v1956_v54  ;;  %v3737_v60 = vld [vmem:[#allocation11_spill] sm:$0xff] }
  0x57   :  { %3687 = vst [vmem:[#allocation99_spill] sm:$0xff] %v2084_v8  ;;  %3688 = vst [vmem:[#allocation100_spill] sm:$0xff] %v2087_v10  ;;  %v2134_v25 = vrot.slane %v1682_v56, %v1956_v54  ;;  %v2138_v26 = vrot.slane %v1687_v57, %v1956_v54  ;;  %v2142_v31 = vrot.slane %v1708_v62, %v1956_v54  ;;  %v3736_v8 = vld [vmem:[#allocation10_spill] sm:$0xff] }
  0x58   :  { %3689 = vst [vmem:[#allocation101_spill] sm:$0xff] %v2090_v11  ;;  %3690 = vst [vmem:[#allocation102_spill] sm:$0xff] %v2093_v12  ;;  %v3735_v11 = vld [vmem:[#allocation9_spill] sm:$0xff] }
  0x59   :  { %3691 = vst [vmem:[#allocation103_spill] sm:$0xff] %v2096_v13  ;;  %3692 = vst [vmem:[#allocation104_spill] sm:$0xff] %v2099_v14  ;;  %v3733_v14 = vld [vmem:[#allocation7_spill] sm:$0xff]  ;;  %v3734_v13 = vld [vmem:[#allocation8_spill] sm:$0xff] }
  0x5a   :  { %3693 = vst [vmem:[#allocation105_spill] sm:$0xff] %v2102_v16  ;;  %3694 = vst [vmem:[#allocation106_spill] sm:$0xff] %v2105_v17  ;;  %v3732_v17 = vld [vmem:[#allocation6_spill] sm:$0xff] }
  0x5b   :  { %3695 = vst [vmem:[#allocation107_spill] sm:$0xff] %v2108_v18  ;;  %3696 = vst [vmem:[#allocation108_spill] sm:$0xff] %v2111_v19  ;;  %v3731_v19 = vld [vmem:[#allocation5_spill] sm:$0xff] }
  0x5c   :  { %3697 = vst [vmem:[#allocation109_spill] sm:$0xff] %v2114_v20  ;;  %3698 = vst [vmem:[#allocation110_spill] sm:$0xff] %v2118_v21  ;;  %v2190_v21 = vrot.slane %v1677_v55, %v559_v58  ;;  %v2211_v55 = vrot.slane %v1744_v6, %v559_v58 }
  0x5d   :  { %3699 = vst [vmem:[#allocation111_spill] sm:$0xff] %v2122_v22  ;;  %3700 = vst [vmem:[#allocation112_spill] sm:$0xff] %v2126_v23  ;;  %v2146_v22 = vrot.slane %v1713_v63, %v1956_v54  ;;  %v2150_v23 = vrot.slane %v1718_v0, %v1956_v54 }
  0x5e   :  { %3701 = vst [vmem:[#allocation113_spill] sm:$0xff] %v2130_v24  ;;  %3702 = vst [vmem:[#allocation114_spill] sm:$0xff] %v2134_v25  ;;  %v2154_v24 = vrot.slane %v1739_v5, %v1956_v54  ;;  %v2158_v25 = vrot.slane %v1744_v6, %v1956_v54 }
  0x5f   :  { %3703 = vst [vmem:[#allocation115_spill] sm:$0xff] %v2138_v26  ;;  %3704 = vst [vmem:[#allocation116_spill] sm:$0xff] %v2142_v31  ;;  %v2162_v26 = vrot.slane %v1749_v7, %v1956_v54  ;;  %v2166_v31 = vrot.slane %v1758_v9, %v1956_v54 }
  0x60   :  { %3705 = vst [vmem:[#allocation117_spill] sm:$0xff] %v2146_v22  ;;  %3706 = vst [vmem:[#allocation118_spill] sm:$0xff] %v2150_v23  ;;  %v2170_v22 = vrot.slane %v1763_v4, %v1956_v54  ;;  %v2174_v23 = vrot.slane %v1768_v3, %v1956_v54 }
  0x61   :  { %3707 = vst [vmem:[#allocation119_spill] sm:$0xff] %v2154_v24  ;;  %3708 = vst [vmem:[#allocation120_spill] sm:$0xff] %v2158_v25  ;;  %v2178_v24 = vrot.slane %v1785_v61, %v1956_v54  ;;  %v2181_v25 = vrot.slane %v1646_v48, %v559_v58  ;;  %v2199_v54 = vrot.slane %v1708_v62, %v559_v58 }
  0x62   :  { %3709 = vst [vmem:[#allocation121_spill] sm:$0xff] %v2162_v26  ;;  %3710 = vst [vmem:[#allocation122_spill] sm:$0xff] %v2166_v31  ;;  %v2184_v26 = vrot.slane %v1651_v49, %v559_v58  ;;  %v2187_v31 = vrot.slane %v1656_v50, %v559_v58  ;;  %v2202_v48 = vrot.slane %v1713_v63, %v559_v58 }
  0x63   :  { %3711 = vst [vmem:[#allocation123_spill] sm:$0xff] %v2170_v22  ;;  %3712 = vst [vmem:[#allocation124_spill] sm:$0xff] %v2174_v23  ;;  %v2193_v22 = vrot.slane %v1682_v56, %v559_v58  ;;  %v2196_v23 = vrot.slane %v1687_v57, %v559_v58  ;;  %v2205_v49 = vrot.slane %v1718_v0, %v559_v58 }
  0x64   :  { %3713 = vst [vmem:[#allocation125_spill] sm:$0xff] %v2178_v24  ;;  %3714 = vst [vmem:[#allocation126_spill] sm:$0xff] %v2181_v25  ;;  %v2208_v50 = vrot.slane %v1739_v5, %v559_v58  ;;  %v2214_v56 = vrot.slane %v1749_v7, %v559_v58  ;;  %v2220_v62 = vrot.slane %v1763_v4, %v559_v58  ;;  %v3730_v24 = vld [vmem:[#allocation4_spill] sm:$0xff] }
  0x65   :  { %3715 = vst [vmem:[#allocation127_spill] sm:$0xff] %v2184_v26  ;;  %3716 = vst [vmem:[#allocation128_spill] sm:$0xff] %v2187_v31  ;;  %v2223_v63 = vrot.slane %v1768_v3, %v559_v58  ;;  %v2226_v0 = vrot.slane %v1785_v61, %v559_v58 }
  0x66   :  { %3717 = vst [vmem:[#allocation129_spill] sm:$0xff] %v2190_v21  ;;  %3718 = vst [vmem:[#allocation130_spill] sm:$0xff] %v2193_v22 }
  0x67   :  { %3719 = vst [vmem:[#allocation131_spill] sm:$0xff] %v2196_v23  ;;  %3720 = vst [vmem:[#allocation132_spill] sm:$0xff] %v2199_v54  ;;  %v2217_v23 = vrot.slane %v1758_v9, %v559_v58 }
  0x68   :  { %3721 = vst [vmem:[#allocation133_spill] sm:$0xff] %v2202_v48  ;;  %3722 = vst [vmem:[#allocation134_spill] sm:$0xff] %v2205_v49 }
  0x69   :  { %3723 = vst [vmem:[#allocation135_spill] sm:$0xff] %v2208_v50  ;;  %3724 = vst [vmem:[#allocation136_spill] sm:$0xff] %v2211_v55 }
  0x6a   :  { %3725 = vst [vmem:[#allocation137_spill] sm:$0xff] %v2214_v56  ;;  %3726 = vst [vmem:[#allocation138_spill] sm:$0xff] %v2217_v23 }
  0x6b   :  { %3727 = vst [vmem:[#allocation139_spill] sm:$0xff] %v2220_v62  ;;  %3728 = vst [vmem:[#allocation140_spill] sm:$0xff] %v2223_v63 }
  0x6c   :  { %3729 = vst [vmem:[#allocation141_spill] sm:$0xff] %v2226_v0 }
  0x81   :  { %v143_v57 = vpop.permute.xlu1 %142  ;;  %v38_v63 = vpop.permute.xlu0 %37 }
  0x82   :  { %v213_v5 = vmul.f32 %v1561_v27, %v143_v57  ;;  %v214_v6 = vmul.f32 %v1565_v28, %v143_v57  ;;  %v215_v7 = vmul.f32 %v1569_v29, %v143_v57  ;;  %v216_v56 = vmul.f32 %v1581_v32, %v143_v57 }
  0x83   :  { %v217_v9 = vmul.f32 %v1585_v33, %v143_v57  ;;  %v218_v23 = vmul.f32 %v1589_v34, %v143_v57  ;;  %v219_v4 = vmul.f32 %v1593_v35, %v143_v57  ;;  %v220_v3 = vmul.f32 %v1597_v36, %v143_v57 }
  0x84   :  { %v221_v58 = vmul.f32 %v1601_v37, %v143_v57  ;;  %v222_v61 = vmul.f32 %v1605_v38, %v143_v57  ;;  %v223_v0 = vmul.f32 %v1609_v39, %v143_v57  ;;  %v224_v62 = vmul.f32 %v1613_v40, %v143_v57 }
  0x85   :  { %v225_v55 = vmul.f32 %v1617_v41, %v143_v57  ;;  %v226_v50 = vmul.f32 %v1621_v42, %v143_v57  ;;  %v227_v49 = vmul.f32 %v1625_v43, %v143_v57  ;;  %v228_v48 = vmul.f32 %v1629_v44, %v143_v57 }
  0x86   :  { %v109_v54 = vmul.f32 %v1633_v45, %v38_v63  ;;  %v110_v22 = vmul.f32 %v1637_v46, %v38_v63  ;;  %v111_v21 = vmul.f32 %v1641_v47, %v38_v63  ;;  %v112_v31 = vmul.f32 %v1660_v51, %v38_v63 }
  0x87   :  { %v113_v26 = vmul.f32 %v1664_v52, %v38_v63  ;;  %v114_v25 = vmul.f32 %v1668_v53, %v38_v63  ;;  %v115_v20 = vmul.f32 %v3730_v24, %v38_v63  ;;  %v116_v18 = vmul.f32 %v3731_v19, %v38_v63 }
  0x88   :  { %v117_v16 = vmul.f32 %v3732_v17, %v38_v63  ;;  %v118_v57 = vmul.f32 %v3733_v14, %v38_v63  ;;  %v119_v12 = vmul.f32 %v3734_v13, %v38_v63  ;;  %v120_v10 = vmul.f32 %v3735_v11, %v38_v63 }
  0x89   :  { %v121_v2 = vmul.f32 %v3736_v8, %v38_v63  ;;  %v122_v15 = vmul.f32 %v3737_v60, %v38_v63  ;;  %v123_v1 = vmul.f32 %v3738_v59, %v38_v63  ;;  %v124_v53 = vmul.f32 %v3739_v30, %v38_v63  ;;  %v147_v60 = vpop.permute.xlu1 %146 }
  0x8a   :  { %v2260_v52 = vadd.f32 %v213_v5, %v109_v54  ;;  %v2262_v24 = vadd.f32 %v214_v6, %v110_v22  ;;  %v2264_v19 = vadd.f32 %v215_v7, %v111_v21  ;;  %v2266_v17 = vadd.f32 %v216_v56, %v112_v31  ;;  %v3772_v5 = vld [vmem:[#allocation10_spill] sm:$0xff]  ;;  %v3774_v7 = vld [vmem:[#allocation11_spill] sm:$0xff] }
  0x8b   :  { %v2268_v14 = vadd.f32 %v217_v9, %v113_v26  ;;  %v2270_v13 = vadd.f32 %v218_v23, %v114_v25  ;;  %v2272_v11 = vadd.f32 %v219_v4, %v115_v20  ;;  %v2274_v8 = vadd.f32 %v220_v3, %v116_v18  ;;  %v3776_v4 = vld [vmem:[#allocation12_spill] sm:$0xff] }
  0x8c   :  { %v2276_v59 = vadd.f32 %v221_v58, %v117_v16  ;;  %v2278_v63 = vadd.f32 %v222_v61, %v118_v57  ;;  %v2280_v54 = vadd.f32 %v223_v0, %v119_v12  ;;  %v2282_v22 = vadd.f32 %v224_v62, %v120_v10  ;;  %v3770_v62 = vld [vmem:[#allocation9_spill] sm:$0xff]  ;;  %v3779_v61 = vld [vmem:[#allocation14_spill] sm:$0xff] }
  0x8d   :  { %v2284_v21 = vadd.f32 %v225_v55, %v121_v2  ;;  %v2286_v31 = vadd.f32 %v226_v50, %v122_v15  ;;  %v2288_v26 = vadd.f32 %v227_v49, %v123_v1  ;;  %v2290_v23 = vadd.f32 %v228_v48, %v124_v53  ;;  %v3764_v49 = vld [vmem:[#allocation6_spill] sm:$0xff] }
  0x8e   :  { %v2293_v18 = vmul.f32 %v1561_v27, %v147_v60  ;;  %v2296_v16 = vmul.f32 %v1565_v28, %v147_v60  ;;  %v2299_v20 = vmul.f32 %v1569_v29, %v147_v60  ;;  %v2302_v10 = vmul.f32 %v1581_v32, %v147_v60  ;;  %v43_v28 = vpop.permute.xlu0 %42 }
  0x8f   :  { %v2305_v2 = vmul.f32 %v1585_v33, %v147_v60  ;;  %v2308_v15 = vmul.f32 %v1589_v34, %v147_v60  ;;  %v2311_v53 = vmul.f32 %v1593_v35, %v147_v60  ;;  %v2314_v27 = vmul.f32 %v1597_v36, %v147_v60 }
  0x90   :  { %3740 = vst [vmem:[#allocation13_spill] sm:$0xff] %v2299_v20  ;;  %3741 = vst [vmem:[#allocation142_spill] sm:$0xff] %v2302_v10  ;;  %v2317_v1 = vmul.f32 %v1601_v37, %v147_v60  ;;  %v2320_v29 = vmul.f32 %v1605_v38, %v147_v60  ;;  %v2323_v32 = vmul.f32 %v1609_v39, %v147_v60 }
  0x91   :  { %3742 = vst [vmem:[#allocation143_spill] sm:$0xff] %v2305_v2  ;;  %3743 = vst [vmem:[#allocation144_spill] sm:$0xff] %v2308_v15  ;;  %v2326_v33 = vmul.f32 %v1613_v40, %v147_v60  ;;  %v2329_v34 = vmul.f32 %v1617_v41, %v147_v60  ;;  %v2332_v35 = vmul.f32 %v1621_v42, %v147_v60  ;;  %v3756_v42 = vld [vmem:[#allocation2_spill] sm:$0xff]  ;;  %v3839_v2 = vld [vmem:[#allocation44_spill] sm:$0xff] }
  0x92   :  { %3744 = vst [vmem:[#allocation145_spill] sm:$0xff] %v2311_v53  ;;  %3745 = vst [vmem:[#allocation146_spill] sm:$0xff] %v2314_v27  ;;  %v2335_v36 = vmul.f32 %v1625_v43, %v147_v60  ;;  %v2338_v37 = vmul.f32 %v1629_v44, %v147_v60  ;;  %v2341_v38 = vmul.f32 %v1633_v45, %v43_v28  ;;  %v3758_v43 = vld [vmem:[#allocation3_spill] sm:$0xff]  ;;  %v3760_v44 = vld [vmem:[#allocation4_spill] sm:$0xff] }
  0x93   :  { %3746 = vst [vmem:[#allocation147_spill] sm:$0xff] %v2317_v1  ;;  %3747 = vst [vmem:[#allocation148_spill] sm:$0xff] %v2320_v29  ;;  %v2344_v39 = vmul.f32 %v1637_v46, %v43_v28  ;;  %v2347_v40 = vmul.f32 %v1641_v47, %v43_v28  ;;  %v2350_v41 = vmul.f32 %v1660_v51, %v43_v28  ;;  %v3762_v45 = vld [vmem:[#allocation5_spill] sm:$0xff]  ;;  %v743_v46 = vpop.permute.xlu1 %742  ;;  %v3766_v47 = vld [vmem:[#allocation7_spill] sm:$0xff] }
  0x94   :  { %3748 = vst [vmem:[#allocation149_spill] sm:$0xff] %v2323_v32  ;;  %3749 = vst [vmem:[#allocation150_spill] sm:$0xff] %v2326_v33  ;;  %v2353_v12 = vmul.f32 %v3756_v42, %v43_v28  ;;  %v2356_v25 = vmul.f32 %v3758_v43, %v43_v28  ;;  %v2359_v60 = vmul.f32 %v3760_v44, %v43_v28  ;;  %v3768_v51 = vld [vmem:[#allocation8_spill] sm:$0xff]  ;;  %v3781_v42 = vld [vmem:[#allocation15_spill] sm:$0xff]  ;;  %v738_v33 = vpop.permute.xlu0 %737 }
  0x95   :  { %3750 = vst [vmem:[#allocation151_spill] sm:$0xff] %v2329_v34  ;;  %3751 = vst [vmem:[#allocation152_spill] sm:$0xff] %v2332_v35  ;;  %v2362_v48 = vmul.f32 %v3762_v45, %v43_v28  ;;  %v2365_v50 = vmul.f32 %v3764_v49, %v43_v28  ;;  %v2368_v55 = vmul.f32 %v3766_v47, %v43_v28  ;;  %v3783_v44 = vld [vmem:[#allocation16_spill] sm:$0xff]  ;;  %v3785_v49 = vld [vmem:[#allocation17_spill] sm:$0xff] }
  0x96   :  { %3752 = vst [vmem:[#allocation153_spill] sm:$0xff] %v2335_v36  ;;  %3753 = vst [vmem:[#allocation154_spill] sm:$0xff] %v2338_v37  ;;  %v2371_v56 = vmul.f32 %v3768_v51, %v43_v28  ;;  %v2374_v0 = vmul.f32 %v3770_v62, %v43_v28  ;;  %v2377_v6 = vmul.f32 %v3772_v5, %v43_v28  ;;  %v3787_v51 = vld [vmem:[#allocation18_spill] sm:$0xff]  ;;  %v3789_v5 = vld [vmem:[#allocation19_spill] sm:$0xff] }
  0x97   :  { %3754 = vst [vmem:[#allocation155_spill] sm:$0xff] %v2347_v40  ;;  %3755 = vst [vmem:[#allocation156_spill] sm:$0xff] %v2350_v41  ;;  %v2380_v9 = vmul.f32 %v3774_v7, %v43_v28  ;;  %v2383_v3 = vmul.f32 %v3776_v4, %v43_v28  ;;  %v2386_v58 = vmul.f32 %v3739_v30, %v43_v28  ;;  %v3791_v30 = vld [vmem:[#allocation20_spill] sm:$0xff]  ;;  %v3793_v4 = vld [vmem:[#allocation21_spill] sm:$0xff] }
  0x98   :  { %3757 = vst [vmem:[#allocation2_spill] sm:$0xff] %v2353_v12  ;;  %3759 = vst [vmem:[#allocation3_spill] sm:$0xff] %v2356_v25  ;;  %v2389_v57 = vmul.f32 %v3779_v61, %v743_v46  ;;  %v2392_v43 = vmul.f32 %v3781_v42, %v743_v46  ;;  %v2395_v45 = vmul.f32 %v3783_v44, %v743_v46  ;;  %v3795_v37 = vld [vmem:[#allocation22_spill] sm:$0xff]  ;;  %v3799_v36 = vld [vmem:[#allocation24_spill] sm:$0xff]  ;;  %v843_v10 = vpop.permute.xlu0 %842 }
  0x99   :  { %3761 = vst [vmem:[#allocation4_spill] sm:$0xff] %v2359_v60  ;;  %3763 = vst [vmem:[#allocation5_spill] sm:$0xff] %v2362_v48  ;;  %v2398_v47 = vmul.f32 %v3785_v49, %v743_v46  ;;  %v2401_v62 = vmul.f32 %v3787_v51, %v743_v46  ;;  %v2404_v7 = vmul.f32 %v3789_v5, %v743_v46  ;;  %v3803_v35 = vld [vmem:[#allocation26_spill] sm:$0xff]  ;;  %v3807_v34 = vld [vmem:[#allocation28_spill] sm:$0xff] }
  0x9a   :  { %3765 = vst [vmem:[#allocation6_spill] sm:$0xff] %v2365_v50  ;;  %3767 = vst [vmem:[#allocation7_spill] sm:$0xff] %v2368_v55  ;;  %v2407_v28 = vmul.f32 %v3791_v30, %v743_v46  ;;  %v814_v32 = vmul.f32 %v3789_v5, %v738_v33  ;;  %v3827_v27 = vld [vmem:[#allocation38_spill] sm:$0xff]  ;;  %v3829_v48 = vld [vmem:[#allocation39_spill] sm:$0xff] }
  0x9b   :  { %3769 = vst [vmem:[#allocation8_spill] sm:$0xff] %v2371_v56  ;;  %3771 = vst [vmem:[#allocation9_spill] sm:$0xff] %v2374_v0  ;;  %v811_v0 = vmul.f32 %v3783_v44, %v738_v33  ;;  %v847_v56 = vpop.permute.xlu1 %846  ;;  %v821_v44 = vmul.f32 %v3803_v35, %v738_v33  ;;  %v3831_v53 = vld [vmem:[#allocation40_spill] sm:$0xff]  ;;  %v3833_v60 = vld [vmem:[#allocation41_spill] sm:$0xff] }
  0x9c   :  { %3773 = vst [vmem:[#allocation10_spill] sm:$0xff] %v2377_v6  ;;  %3775 = vst [vmem:[#allocation11_spill] sm:$0xff] %v2380_v9  ;;  %v3805_v9 = vld [vmem:[#allocation27_spill] sm:$0xff]  ;;  %v3809_v6 = vld [vmem:[#allocation29_spill] sm:$0xff] }
  0x9d   :  { %3777 = vst [vmem:[#allocation12_spill] sm:$0xff] %v2383_v3  ;;  %3778 = vst [vmem:[#allocation157_spill] sm:$0xff] %v2386_v58  ;;  %v3797_v58 = vld [vmem:[#allocation23_spill] sm:$0xff]  ;;  %v3801_v3 = vld [vmem:[#allocation25_spill] sm:$0xff]  ;;  %v824_v5 = vmul.f32 %v3809_v6, %v738_v33 }
  0x9e   :  { %3780 = vst [vmem:[#allocation14_spill] sm:$0xff] %v2389_v57  ;;  %3782 = vst [vmem:[#allocation15_spill] sm:$0xff] %v2392_v43  ;;  %v2410_v57 = vmul.f32 %v3793_v4, %v743_v46  ;;  %v2413_v43 = vmul.f32 %v3795_v37, %v743_v46  ;;  %v3835_v15 = vld [vmem:[#allocation42_spill] sm:$0xff]  ;;  %v3837_v25 = vld [vmem:[#allocation43_spill] sm:$0xff] }
  0x9f   :  { %3784 = vst [vmem:[#allocation16_spill] sm:$0xff] %v2395_v45  ;;  %3786 = vst [vmem:[#allocation17_spill] sm:$0xff] %v2398_v47  ;;  %v2416_v45 = vmul.f32 %v3797_v58, %v743_v46  ;;  %v2419_v47 = vmul.f32 %v3799_v36, %v743_v46  ;;  %v3841_v12 = vld [vmem:[#allocation45_spill] sm:$0xff] }
  0xa0   :  { %3788 = vst [vmem:[#allocation18_spill] sm:$0xff] %v2401_v62  ;;  %3790 = vst [vmem:[#allocation19_spill] sm:$0xff] %v2404_v7  ;;  %v2422_v62 = vmul.f32 %v3801_v3, %v743_v46  ;;  %v2425_v7 = vmul.f32 %v3803_v35, %v743_v46 }
  0xa1   :  { %3792 = vst [vmem:[#allocation20_spill] sm:$0xff] %v2407_v28  ;;  %3794 = vst [vmem:[#allocation21_spill] sm:$0xff] %v2410_v57  ;;  %v2428_v28 = vmul.f32 %v3805_v9, %v743_v46  ;;  %v2431_v57 = vmul.f32 %v3807_v34, %v743_v46 }
  0xa2   :  { %3796 = vst [vmem:[#allocation22_spill] sm:$0xff] %v2413_v43  ;;  %3798 = vst [vmem:[#allocation23_spill] sm:$0xff] %v2416_v45  ;;  %v2434_v43 = vmul.f32 %v3809_v6, %v743_v46  ;;  %v809_v45 = vmul.f32 %v3779_v61, %v738_v33  ;;  %v817_v46 = vmul.f32 %v3795_v37, %v738_v33  ;;  %v3815_v37 = vld [vmem:[#allocation32_spill] sm:$0xff]  ;;  %v3825_v6 = vld [vmem:[#allocation37_spill] sm:$0xff] }
  0xa3   :  { %3800 = vst [vmem:[#allocation24_spill] sm:$0xff] %v2419_v47  ;;  %3802 = vst [vmem:[#allocation25_spill] sm:$0xff] %v2422_v62  ;;  %v810_v47 = vmul.f32 %v3781_v42, %v738_v33  ;;  %v812_v62 = vmul.f32 %v3785_v49, %v738_v33  ;;  %v819_v61 = vmul.f32 %v3799_v36, %v738_v33  ;;  %v3817_v36 = vld [vmem:[#allocation33_spill] sm:$0xff] }
  0xa4   :  { %3804 = vst [vmem:[#allocation26_spill] sm:$0xff] %v2425_v7  ;;  %3806 = vst [vmem:[#allocation27_spill] sm:$0xff] %v2428_v28  ;;  %v813_v7 = vmul.f32 %v3787_v51, %v738_v33  ;;  %v815_v28 = vmul.f32 %v3791_v30, %v738_v33  ;;  %v820_v42 = vmul.f32 %v3801_v3, %v738_v33  ;;  %v3811_v30 = vld [vmem:[#allocation30_spill] sm:$0xff] }
  0xa5   :  { %3808 = vst [vmem:[#allocation28_spill] sm:$0xff] %v2431_v57  ;;  %3810 = vst [vmem:[#allocation29_spill] sm:$0xff] %v2434_v43  ;;  %v816_v57 = vmul.f32 %v3793_v4, %v738_v33  ;;  %v818_v43 = vmul.f32 %v3797_v58, %v738_v33  ;;  %v822_v49 = vmul.f32 %v3805_v9, %v738_v33  ;;  %v3813_v4 = vld [vmem:[#allocation31_spill] sm:$0xff]  ;;  %v3819_v3 = vld [vmem:[#allocation34_spill] sm:$0xff] }
  0xa6   :  { %v823_v51 = vmul.f32 %v3807_v34, %v738_v33  ;;  %v2453_v29 = vmul.f32 %v3811_v30, %v847_v56  ;;  %v2456_v55 = vmul.f32 %v3813_v4, %v847_v56  ;;  %v2459_v58 = vmul.f32 %v3815_v37, %v847_v56  ;;  %v3821_v9 = vld [vmem:[#allocation35_spill] sm:$0xff]  ;;  %v3823_v34 = vld [vmem:[#allocation36_spill] sm:$0xff] }
  0xa7   :  { %v2462_v1 = vmul.f32 %v3817_v36, %v847_v56  ;;  %v2465_v35 = vmul.f32 %v3819_v3, %v847_v56  ;;  %v2468_v50 = vmul.f32 %v3821_v9, %v847_v56  ;;  %v2471_v33 = vmul.f32 %v3823_v34, %v847_v56 }
  0xa8   :  { %3812 = vst [vmem:[#allocation30_spill] sm:$0xff] %v2453_v29  ;;  %3814 = vst [vmem:[#allocation31_spill] sm:$0xff] %v2456_v55  ;;  %v2474_v29 = vmul.f32 %v3825_v6, %v847_v56  ;;  %v2477_v55 = vmul.f32 %v3827_v27, %v847_v56  ;;  %v915_v41 = vmul.f32 %v3815_v37, %v843_v10 }
  0xa9   :  { %3816 = vst [vmem:[#allocation32_spill] sm:$0xff] %v2459_v58  ;;  %3818 = vst [vmem:[#allocation33_spill] sm:$0xff] %v2462_v1  ;;  %v2480_v58 = vmul.f32 %v3829_v48, %v847_v56  ;;  %v2483_v1 = vmul.f32 %v3831_v53, %v847_v56  ;;  %v918_v20 = vmul.f32 %v3821_v9, %v843_v10 }
  0xaa   :  { %3820 = vst [vmem:[#allocation34_spill] sm:$0xff] %v2465_v35  ;;  %3822 = vst [vmem:[#allocation35_spill] sm:$0xff] %v2468_v50  ;;  %v2486_v35 = vmul.f32 %v3833_v60, %v847_v56  ;;  %v2489_v50 = vmul.f32 %v3835_v15, %v847_v56  ;;  %v925_v37 = vmul.f32 %v3835_v15, %v843_v10 }
  0xab   :  { %3824 = vst [vmem:[#allocation36_spill] sm:$0xff] %v2471_v33  ;;  %3826 = vst [vmem:[#allocation37_spill] sm:$0xff] %v2474_v29  ;;  %v2492_v33 = vmul.f32 %v3837_v25, %v847_v56  ;;  %v2495_v29 = vmul.f32 %v3839_v2, %v847_v56  ;;  %v928_v9 = vmul.f32 %v3841_v12, %v843_v10 }
  0xac   :  { %3828 = vst [vmem:[#allocation38_spill] sm:$0xff] %v2477_v55  ;;  %3830 = vst [vmem:[#allocation39_spill] sm:$0xff] %v2480_v58  ;;  %v2498_v55 = vmul.f32 %v3841_v12, %v847_v56  ;;  %v913_v58 = vmul.f32 %v3811_v30, %v843_v10  ;;  %v921_v56 = vmul.f32 %v3827_v27, %v843_v10 }
  0xad   :  { %3832 = vst [vmem:[#allocation40_spill] sm:$0xff] %v2483_v1  ;;  %3834 = vst [vmem:[#allocation41_spill] sm:$0xff] %v2486_v35  ;;  %v914_v1 = vmul.f32 %v3813_v4, %v843_v10  ;;  %v916_v35 = vmul.f32 %v3817_v36, %v843_v10  ;;  %v923_v30 = vmul.f32 %v3831_v53, %v843_v10 }
  0xae   :  { %3836 = vst [vmem:[#allocation42_spill] sm:$0xff] %v2489_v50  ;;  %3838 = vst [vmem:[#allocation43_spill] sm:$0xff] %v2492_v33  ;;  %v917_v50 = vmul.f32 %v3819_v3, %v843_v10  ;;  %v919_v33 = vmul.f32 %v3823_v34, %v843_v10  ;;  %v924_v4 = vmul.f32 %v3833_v60, %v843_v10 }
  0xaf   :  { %3840 = vst [vmem:[#allocation44_spill] sm:$0xff] %v2495_v29  ;;  %3842 = vst [vmem:[#allocation45_spill] sm:$0xff] %v2498_v55  ;;  %v920_v29 = vmul.f32 %v3825_v6, %v843_v10  ;;  %v922_v55 = vmul.f32 %v3829_v48, %v843_v10  ;;  %v926_v36 = vmul.f32 %v3837_v25, %v843_v10  ;;  %v279_v25 = vpop.permute.xlu1 %278 }
  0xb0   :  { %v927_v3 = vmul.f32 %v3839_v2, %v843_v10  ;;  %v2516_v40 = vadd.f32 %v913_v58, %v809_v45  ;;  %v2518_v34 = vadd.f32 %v914_v1, %v810_v47  ;;  %v2520_v6 = vadd.f32 %v915_v41, %v811_v0  ;;  %v3861_v47 = vld [vmem:[#allocation48_spill] sm:$0xff] }
  0xb1   :  { %v2522_v27 = vadd.f32 %v916_v35, %v812_v62  ;;  %v2524_v48 = vadd.f32 %v917_v50, %v813_v7  ;;  %v2526_v53 = vadd.f32 %v918_v20, %v814_v32  ;;  %v2528_v60 = vadd.f32 %v919_v33, %v815_v28  ;;  %v3859_v32 = vld [vmem:[#allocation46_spill] sm:$0xff] }
  0xb2   :  { %3843 = vst [vmem:[#allocation158_spill] sm:$0xff] %v2516_v40  ;;  %3844 = vst [vmem:[#allocation159_spill] sm:$0xff] %v2518_v34  ;;  %v2530_v15 = vadd.f32 %v920_v29, %v816_v57  ;;  %v2532_v2 = vadd.f32 %v921_v56, %v817_v46  ;;  %v2534_v10 = vadd.f32 %v922_v55, %v818_v43  ;;  %v3860_v57 = vld [vmem:[#allocation47_spill] sm:$0xff]  ;;  %v3862_v55 = vld [vmem:[#allocation49_spill] sm:$0xff] }
  0xb3   :  { %3845 = vst [vmem:[#allocation160_spill] sm:$0xff] %v2520_v6  ;;  %3846 = vst [vmem:[#allocation161_spill] sm:$0xff] %v2522_v27  ;;  %v2536_v12 = vadd.f32 %v923_v30, %v819_v61  ;;  %v2538_v1 = vadd.f32 %v924_v4, %v820_v42  ;;  %v2540_v41 = vadd.f32 %v925_v37, %v821_v44  ;;  %v3863_v7 = vld [vmem:[#allocation50_spill] sm:$0xff]  ;;  %v3864_v46 = vld [vmem:[#allocation51_spill] sm:$0xff] }
  0xb4   :  { %3847 = vst [vmem:[#allocation162_spill] sm:$0xff] %v2524_v48  ;;  %3848 = vst [vmem:[#allocation163_spill] sm:$0xff] %v2526_v53  ;;  %v2542_v0 = vadd.f32 %v926_v36, %v822_v49  ;;  %v2544_v50 = vadd.f32 %v927_v3, %v823_v51  ;;  %v2546_v20 = vadd.f32 %v928_v9, %v824_v5  ;;  %v3865_v42 = vld [vmem:[#allocation52_spill] sm:$0xff]  ;;  %v3866_v49 = vld [vmem:[#allocation53_spill] sm:$0xff] }
  0xb5   :  { %3849 = vst [vmem:[#allocation164_spill] sm:$0xff] %v2528_v60  ;;  %3850 = vst [vmem:[#allocation165_spill] sm:$0xff] %v2530_v15  ;;  %v349_v29 = vmul.f32 %v3859_v32, %v279_v25  ;;  %v350_v45 = vmul.f32 %v3860_v57, %v279_v25  ;;  %v351_v62 = vmul.f32 %v3861_v47, %v279_v25  ;;  %v3867_v51 = vld [vmem:[#allocation54_spill] sm:$0xff]  ;;  %v3868_v5 = vld [vmem:[#allocation55_spill] sm:$0xff] }
  0xb6   :  { %3851 = vst [vmem:[#allocation166_spill] sm:$0xff] %v2532_v2  ;;  %3852 = vst [vmem:[#allocation167_spill] sm:$0xff] %v2534_v10  ;;  %v352_v43 = vmul.f32 %v3862_v55, %v279_v25  ;;  %v353_v28 = vmul.f32 %v3863_v7, %v279_v25  ;;  %v354_v61 = vmul.f32 %v3864_v46, %v279_v25  ;;  %v3869_v56 = vld [vmem:[#allocation56_spill] sm:$0xff]  ;;  %v3870_v4 = vld [vmem:[#allocation57_spill] sm:$0xff] }
  0xb7   :  { %3853 = vst [vmem:[#allocation168_spill] sm:$0xff] %v2536_v12  ;;  %3854 = vst [vmem:[#allocation169_spill] sm:$0xff] %v2538_v1  ;;  %v355_v44 = vmul.f32 %v3865_v42, %v279_v25  ;;  %v356_v58 = vmul.f32 %v3866_v49, %v279_v25  ;;  %v357_v35 = vmul.f32 %v3867_v51, %v279_v25  ;;  %v3871_v36 = vld [vmem:[#allocation58_spill] sm:$0xff]  ;;  %v3872_v9 = vld [vmem:[#allocation59_spill] sm:$0xff] }
  0xb8   :  { %3855 = vst [vmem:[#allocation170_spill] sm:$0xff] %v2540_v41  ;;  %3856 = vst [vmem:[#allocation171_spill] sm:$0xff] %v2542_v0  ;;  %v358_v33 = vmul.f32 %v3868_v5, %v279_v25  ;;  %v359_v30 = vmul.f32 %v3869_v56, %v279_v25  ;;  %v360_v37 = vmul.f32 %v3870_v4, %v279_v25  ;;  %v3874_v41 = vld [vmem:[#allocation61_spill] sm:$0xff]  ;;  %v3901_v27 = vld [vmem:[#allocation75_spill] sm:$0xff] }
  0xb9   :  { %3857 = vst [vmem:[#allocation172_spill] sm:$0xff] %v2544_v50  ;;  %3858 = vst [vmem:[#allocation173_spill] sm:$0xff] %v2546_v20  ;;  %v361_v3 = vmul.f32 %v3871_v36, %v279_v25  ;;  %v362_v20 = vmul.f32 %v3872_v9, %v279_v25  ;;  %v3873_v50 = vld [vmem:[#allocation60_spill] sm:$0xff]  ;;  %v364_v1 = vmul.f32 %v3874_v41, %v279_v25  ;;  %v3897_v48 = vld [vmem:[#allocation73_spill] sm:$0xff] }
  0xba   :  { %v363_v0 = vmul.f32 %v3873_v50, %v279_v25  ;;  %v2565_v12 = vadd.f32 %v349_v29, %v2260_v52  ;;  %v2568_v10 = vadd.f32 %v350_v45, %v2262_v24  ;;  %v2571_v2 = vadd.f32 %v351_v62, %v2264_v19  ;;  %v979_v24 = vpop.permute.xlu1 %978  ;;  %v3905_v6 = vld [vmem:[#allocation77_spill] sm:$0xff] }
  0xbb   :  { %v2574_v15 = vadd.f32 %v352_v43, %v2266_v17  ;;  %v2577_v60 = vadd.f32 %v353_v28, %v2268_v14  ;;  %v2580_v53 = vadd.f32 %v354_v61, %v2270_v13  ;;  %v2583_v25 = vadd.f32 %v355_v44, %v2272_v11  ;;  %v3889_v61 = vld [vmem:[#allocation69_spill] sm:$0xff] }
  0xbc   :  { %v2586_v52 = vadd.f32 %v356_v58, %v2274_v8  ;;  %v2589_v29 = vadd.f32 %v357_v35, %v2276_v59  ;;  %v2592_v19 = vadd.f32 %v358_v33, %v2278_v63  ;;  %v2595_v17 = vadd.f32 %v359_v30, %v2280_v54  ;;  %v3875_v63 = vld [vmem:[#allocation62_spill] sm:$0xff]  ;;  %v3877_v54 = vld [vmem:[#allocation63_spill] sm:$0xff] }
  0xbd   :  { %v2598_v14 = vadd.f32 %v360_v37, %v2282_v22  ;;  %v2601_v13 = vadd.f32 %v361_v3, %v2284_v21  ;;  %v2604_v11 = vadd.f32 %v362_v20, %v2286_v31  ;;  %v2607_v8 = vadd.f32 %v363_v0, %v2288_v26  ;;  %v3879_v22 = vld [vmem:[#allocation64_spill] sm:$0xff]  ;;  %v3881_v21 = vld [vmem:[#allocation65_spill] sm:$0xff]  ;;  %v3883_v31 = vld [vmem:[#allocation66_spill] sm:$0xff] }
  0xbe   :  { %v2610_v59 = vadd.f32 %v364_v1, %v2290_v23  ;;  %v2613_v45 = vmul.f32 %v3875_v63, %v979_v24  ;;  %v2616_v62 = vmul.f32 %v3877_v54, %v979_v24  ;;  %v2619_v43 = vmul.f32 %v3879_v22, %v979_v24  ;;  %v3885_v26 = vld [vmem:[#allocation67_spill] sm:$0xff]  ;;  %v3887_v23 = vld [vmem:[#allocation68_spill] sm:$0xff]  ;;  %v3891_v58 = vld [vmem:[#allocation70_spill] sm:$0xff] }
  0xbf   :  { %v2622_v28 = vmul.f32 %v3881_v21, %v979_v24  ;;  %v2625_v20 = vmul.f32 %v3883_v31, %v979_v24  ;;  %v2628_v0 = vmul.f32 %v3885_v26, %v979_v24  ;;  %v2631_v1 = vmul.f32 %v3887_v23, %v979_v24  ;;  %v3893_v33 = vld [vmem:[#allocation71_spill] sm:$0xff]  ;;  %v3895_v37 = vld [vmem:[#allocation72_spill] sm:$0xff]  ;;  %v3925_v26 = vld [vmem:[#allocation9_spill] sm:$0xff] }
  0xc0   :  { %3876 = vst [vmem:[#allocation46_spill] sm:$0xff] %v2613_v45  ;;  %3878 = vst [vmem:[#allocation47_spill] sm:$0xff] %v2616_v62  ;;  %v2634_v44 = vmul.f32 %v3889_v61, %v979_v24  ;;  %v2637_v35 = vmul.f32 %v3891_v58, %v979_v24  ;;  %v2640_v30 = vmul.f32 %v3893_v33, %v979_v24  ;;  %v3907_v62 = vld [vmem:[#allocation155_spill] sm:$0xff]  ;;  %v3909_v45 = vld [vmem:[#allocation156_spill] sm:$0xff] }
  0xc1   :  { %3880 = vst [vmem:[#allocation48_spill] sm:$0xff] %v2619_v43  ;;  %3882 = vst [vmem:[#allocation49_spill] sm:$0xff] %v2622_v28  ;;  %v2643_v3 = vmul.f32 %v3895_v37, %v979_v24  ;;  %v3899_v28 = vld [vmem:[#allocation74_spill] sm:$0xff]  ;;  %v3903_v43 = vld [vmem:[#allocation76_spill] sm:$0xff] }
  0xc2   :  { %3884 = vst [vmem:[#allocation50_spill] sm:$0xff] %v2625_v20  ;;  %3886 = vst [vmem:[#allocation51_spill] sm:$0xff] %v2628_v0  ;;  %v2646_v20 = vmul.f32 %v3897_v48, %v979_v24  ;;  %v2649_v0 = vmul.f32 %v3899_v28, %v979_v24  ;;  %v3912_v28 = vld [vmem:[#allocation143_spill] sm:$0xff]  ;;  %v3914_v48 = vld [vmem:[#allocation144_spill] sm:$0xff] }
  0xc3   :  { %3888 = vst [vmem:[#allocation52_spill] sm:$0xff] %v2631_v1  ;;  %3890 = vst [vmem:[#allocation53_spill] sm:$0xff] %v2634_v44  ;;  %v2652_v1 = vmul.f32 %v3901_v27, %v979_v24  ;;  %v2655_v44 = vmul.f32 %v3903_v43, %v979_v24  ;;  %v283_v27 = vpop.permute.xlu0 %282  ;;  %v3927_v31 = vld [vmem:[#allocation10_spill] sm:$0xff]  ;;  %v3929_v21 = vld [vmem:[#allocation11_spill] sm:$0xff] }
  0xc4   :  { %3892 = vst [vmem:[#allocation54_spill] sm:$0xff] %v2637_v35  ;;  %3894 = vst [vmem:[#allocation55_spill] sm:$0xff] %v2640_v30  ;;  %v2658_v35 = vmul.f32 %v3905_v6, %v979_v24  ;;  %v261_v30 = vadd.f32 %v2293_v18, %v2341_v38  ;;  %v3916_v6 = vld [vmem:[#allocation145_spill] sm:$0xff]  ;;  %v3918_v38 = vld [vmem:[#allocation146_spill] sm:$0xff] }
  0xc5   :  { %3896 = vst [vmem:[#allocation56_spill] sm:$0xff] %v2643_v3  ;;  %3898 = vst [vmem:[#allocation57_spill] sm:$0xff] %v2646_v20  ;;  %v262_v3 = vadd.f32 %v2296_v16, %v2344_v39  ;;  %v3908_v20 = vld [vmem:[#allocation13_spill] sm:$0xff]  ;;  %v3919_v16 = vld [vmem:[#allocation6_spill] sm:$0xff] }
  0xc6   :  { %3900 = vst [vmem:[#allocation58_spill] sm:$0xff] %v2649_v0  ;;  %3902 = vst [vmem:[#allocation59_spill] sm:$0xff] %v2652_v1  ;;  %v263_v34 = vadd.f32 %v3908_v20, %v3907_v62  ;;  %v3910_v0 = vld [vmem:[#allocation142_spill] sm:$0xff]  ;;  %v3917_v18 = vld [vmem:[#allocation5_spill] sm:$0xff] }
  0xc7   :  { %3904 = vst [vmem:[#allocation60_spill] sm:$0xff] %v2655_v44  ;;  %3906 = vst [vmem:[#allocation61_spill] sm:$0xff] %v2658_v35  ;;  %v264_v40 = vadd.f32 %v3910_v0, %v3909_v45  ;;  %v3911_v1 = vld [vmem:[#allocation2_spill] sm:$0xff]  ;;  %v3913_v44 = vld [vmem:[#allocation3_spill] sm:$0xff]  ;;  %v268_v33 = vadd.f32 %v3918_v38, %v3917_v18 }
  0xc8   :  { %v265_v43 = vadd.f32 %v3912_v28, %v3911_v1  ;;  %v266_v24 = vadd.f32 %v3914_v48, %v3913_v44  ;;  %v3915_v35 = vld [vmem:[#allocation4_spill] sm:$0xff]  ;;  %v3920_v39 = vld [vmem:[#allocation147_spill] sm:$0xff]  ;;  %v3924_v0 = vld [vmem:[#allocation149_spill] sm:$0xff] }
  0xc9   :  { %v267_v37 = vadd.f32 %v3916_v6, %v3915_v35  ;;  %v269_v58 = vadd.f32 %v3920_v39, %v3919_v16  ;;  %v3921_v62 = vld [vmem:[#allocation7_spill] sm:$0xff]  ;;  %v3922_v20 = vld [vmem:[#allocation148_spill] sm:$0xff]  ;;  %v3926_v28 = vld [vmem:[#allocation150_spill] sm:$0xff] }
  0xca   :  { %v270_v61 = vadd.f32 %v3922_v20, %v3921_v62  ;;  %v3923_v45 = vld [vmem:[#allocation8_spill] sm:$0xff]  ;;  %v272_v1 = vadd.f32 %v3926_v28, %v3925_v26  ;;  %v3928_v48 = vld [vmem:[#allocation151_spill] sm:$0xff]  ;;  %v3932_v18 = vld [vmem:[#allocation153_spill] sm:$0xff]  ;;  %v365_v62 = vmul.f32 %v3859_v32, %v283_v27  ;;  %v366_v20 = vmul.f32 %v3860_v57, %v283_v27 }
  0xcb   :  { %v271_v23 = vadd.f32 %v3924_v0, %v3923_v45  ;;  %v273_v44 = vadd.f32 %v3928_v48, %v3927_v31  ;;  %v3930_v6 = vld [vmem:[#allocation152_spill] sm:$0xff]  ;;  %v3933_v54 = vld [vmem:[#allocation157_spill] sm:$0xff]  ;;  %v3934_v16 = vld [vmem:[#allocation154_spill] sm:$0xff]  ;;  %v367_v45 = vmul.f32 %v3861_v47, %v283_v27  ;;  %v368_v26 = vmul.f32 %v3862_v55, %v283_v27  ;;  %v2704_v48 = vpop.permute.xlu1 %982 }
  0xcc   :  { %v274_v35 = vadd.f32 %v3930_v6, %v3929_v21  ;;  %v3931_v22 = vld [vmem:[#allocation12_spill] sm:$0xff]  ;;  %v276_v39 = vadd.f32 %v3934_v16, %v3933_v54  ;;  %v369_v0 = vmul.f32 %v3863_v7, %v283_v27  ;;  %v370_v31 = vmul.f32 %v3864_v46, %v283_v27  ;;  %3935 = vst [vmem:[#allocation155_spill] sm:$0xff] %v2704_v48 }
  0xcd   :  { %v275_v38 = vadd.f32 %v3932_v18, %v3931_v22  ;;  %v371_v21 = vmul.f32 %v3865_v42, %v283_v27  ;;  %v372_v28 = vmul.f32 %v3866_v49, %v283_v27  ;;  %v373_v22 = vmul.f32 %v3867_v51, %v283_v27  ;;  %v3962_v63 = vld [vmem:[#allocation92_spill] sm:$0xff] }
  0xce   :  { %v374_v54 = vmul.f32 %v3868_v5, %v283_v27  ;;  %v375_v32 = vmul.f32 %v3869_v56, %v283_v27  ;;  %v376_v57 = vmul.f32 %v3870_v4, %v283_v27  ;;  %v377_v47 = vmul.f32 %v3871_v36, %v283_v27  ;;  %v415_v56 = vpop.permute.xlu0 %414 }
  0xcf   :  { %v378_v55 = vmul.f32 %v3872_v9, %v283_v27  ;;  %v379_v7 = vmul.f32 %v3873_v50, %v283_v27  ;;  %v380_v46 = vmul.f32 %v3874_v41, %v283_v27  ;;  %v2710_v42 = vadd.f32 %v365_v62, %v261_v30 }
  0xd0   :  { %v2712_v49 = vadd.f32 %v366_v20, %v262_v3  ;;  %v2714_v51 = vadd.f32 %v367_v45, %v263_v34  ;;  %v2716_v5 = vadd.f32 %v368_v26, %v264_v40  ;;  %v2718_v4 = vadd.f32 %v369_v0, %v265_v43  ;;  %v3952_v20 = vld [vmem:[#allocation82_spill] sm:$0xff]  ;;  %v3953_v45 = vld [vmem:[#allocation83_spill] sm:$0xff]  ;;  %v3954_v26 = vld [vmem:[#allocation84_spill] sm:$0xff] }
  0xd1   :  { %v2720_v6 = vadd.f32 %v370_v31, %v266_v24  ;;  %v2722_v36 = vadd.f32 %v371_v21, %v267_v37  ;;  %v2724_v9 = vadd.f32 %v372_v28, %v268_v33  ;;  %v2726_v50 = vadd.f32 %v373_v22, %v269_v58  ;;  %v3948_v37 = vld [vmem:[#allocation78_spill] sm:$0xff]  ;;  %v3949_v33 = vld [vmem:[#allocation79_spill] sm:$0xff]  ;;  %v3950_v58 = vld [vmem:[#allocation80_spill] sm:$0xff] }
  0xd2   :  { %3936 = vst [vmem:[#allocation13_spill] sm:$0xff] %v2718_v4  ;;  %v2728_v27 = vadd.f32 %v374_v54, %v270_v61  ;;  %v2730_v41 = vadd.f32 %v375_v32, %v271_v23  ;;  %v2732_v30 = vadd.f32 %v376_v57, %v272_v1  ;;  %v2734_v34 = vadd.f32 %v377_v47, %v273_v44  ;;  %v3951_v61 = vld [vmem:[#allocation81_spill] sm:$0xff]  ;;  %v419_v23 = vpop.permute.xlu1 %418  ;;  %v3956_v31 = vld [vmem:[#allocation86_spill] sm:$0xff]  ;;  %v3957_v21 = vld [vmem:[#allocation87_spill] sm:$0xff]  ;;  %v2770_v4 = vpop.permute.xlu0 %1118 }
  0xd3   :  { %3937 = vst [vmem:[#allocation156_spill] sm:$0xff] %v2720_v6  ;;  %3938 = vst [vmem:[#allocation142_spill] sm:$0xff] %v2722_v36  ;;  %v2736_v40 = vadd.f32 %v378_v55, %v274_v35  ;;  %v2738_v43 = vadd.f32 %v379_v7, %v275_v38  ;;  %v2740_v3 = vadd.f32 %v380_v46, %v276_v39  ;;  %v3955_v0 = vld [vmem:[#allocation85_spill] sm:$0xff]  ;;  %v3958_v22 = vld [vmem:[#allocation88_spill] sm:$0xff] }
  0xd4   :  { %3939 = vst [vmem:[#allocation2_spill] sm:$0xff] %v2724_v9  ;;  %3940 = vst [vmem:[#allocation143_spill] sm:$0xff] %v2726_v50  ;;  %v485_v24 = vmul.f32 %v3948_v37, %v415_v56  ;;  %v486_v18 = vmul.f32 %v3949_v33, %v415_v56  ;;  %v487_v16 = vmul.f32 %v3950_v58, %v415_v56  ;;  %v3959_v32 = vld [vmem:[#allocation89_spill] sm:$0xff]  ;;  %v3960_v47 = vld [vmem:[#allocation90_spill] sm:$0xff] }
  0xd5   :  { %3941 = vst [vmem:[#allocation3_spill] sm:$0xff] %v2728_v27  ;;  %3942 = vst [vmem:[#allocation144_spill] sm:$0xff] %v2730_v41  ;;  %v488_v62 = vmul.f32 %v3951_v61, %v415_v56  ;;  %v489_v1 = vmul.f32 %v3952_v20, %v415_v56  ;;  %v490_v44 = vmul.f32 %v3953_v45, %v415_v56  ;;  %v3961_v7 = vld [vmem:[#allocation91_spill] sm:$0xff] }
  0xd6   :  { %3943 = vst [vmem:[#allocation4_spill] sm:$0xff] %v2732_v30  ;;  %3944 = vst [vmem:[#allocation145_spill] sm:$0xff] %v2734_v34  ;;  %v491_v35 = vmul.f32 %v3954_v26, %v415_v56  ;;  %v492_v38 = vmul.f32 %v3955_v0, %v415_v56  ;;  %v493_v39 = vmul.f32 %v3956_v31, %v415_v56 }
  0xd7   :  { %3945 = vst [vmem:[#allocation5_spill] sm:$0xff] %v2736_v40  ;;  %3946 = vst [vmem:[#allocation146_spill] sm:$0xff] %v2738_v43  ;;  %v494_v28 = vmul.f32 %v3957_v21, %v415_v56  ;;  %v495_v54 = vmul.f32 %v3958_v22, %v415_v56  ;;  %v496_v57 = vmul.f32 %v3959_v32, %v415_v56 }
  0xd8   :  { %3947 = vst [vmem:[#allocation6_spill] sm:$0xff] %v2740_v3  ;;  %v497_v55 = vmul.f32 %v3960_v47, %v415_v56  ;;  %v498_v46 = vmul.f32 %v3961_v7, %v415_v56  ;;  %v499_v48 = vmul.f32 %v3962_v63, %v415_v56  ;;  %v3963_v3 = vld [vmem:[#allocation93_spill] sm:$0xff]  ;;  %v501_v40 = vmul.f32 %v3948_v37, %v419_v23 }
  0xd9   :  { %v500_v43 = vmul.f32 %v3963_v3, %v415_v56  ;;  %v502_v34 = vmul.f32 %v3949_v33, %v419_v23  ;;  %v503_v30 = vmul.f32 %v3950_v58, %v419_v23  ;;  %v504_v41 = vmul.f32 %v3951_v61, %v419_v23  ;;  %3964 = vst [vmem:[#allocation147_spill] sm:$0xff] %v2770_v4 }
  0xda   :  { %v505_v27 = vmul.f32 %v3952_v20, %v419_v23  ;;  %v506_v50 = vmul.f32 %v3953_v45, %v419_v23  ;;  %v507_v9 = vmul.f32 %v3954_v26, %v419_v23  ;;  %v508_v36 = vmul.f32 %v3955_v0, %v419_v23 }
  0xdb   :  { %v509_v6 = vmul.f32 %v3956_v31, %v419_v23  ;;  %v510_v56 = vmul.f32 %v3957_v21, %v419_v23  ;;  %v511_v37 = vmul.f32 %v3958_v22, %v419_v23  ;;  %v512_v33 = vmul.f32 %v3959_v32, %v419_v23 }
  0xdc   :  { %v513_v58 = vmul.f32 %v3960_v47, %v419_v23  ;;  %v514_v61 = vmul.f32 %v3961_v7, %v419_v23  ;;  %v515_v20 = vmul.f32 %v3962_v63, %v419_v23  ;;  %v516_v45 = vmul.f32 %v3963_v3, %v419_v23  ;;  %v3982_v23 = vld [vmem:[#allocation2_spill] sm:$0xff]  ;;  %v3995_v47 = vld [vmem:[#allocation97_spill] sm:$0xff] }
  0xdd   :  { %v2777_v26 = vadd.f32 %v485_v24, %v2565_v12  ;;  %v2780_v0 = vadd.f32 %v486_v18, %v2568_v10  ;;  %v2783_v31 = vadd.f32 %v487_v16, %v2571_v2  ;;  %v2786_v21 = vadd.f32 %v488_v62, %v2574_v15  ;;  %v3979_v24 = vld [vmem:[#allocation13_spill] sm:$0xff]  ;;  %v3980_v18 = vld [vmem:[#allocation156_spill] sm:$0xff]  ;;  %v3996_v7 = vld [vmem:[#allocation98_spill] sm:$0xff] }
  0xde   :  { %v2789_v22 = vadd.f32 %v489_v1, %v2577_v60  ;;  %v2792_v32 = vadd.f32 %v490_v44, %v2580_v53  ;;  %v2795_v63 = vadd.f32 %v491_v35, %v2583_v25  ;;  %v2798_v12 = vadd.f32 %v492_v38, %v2586_v52  ;;  %v3983_v1 = vld [vmem:[#allocation143_spill] sm:$0xff] }
  0xdf   :  { %3965 = vst [vmem:[#allocation7_spill] sm:$0xff] %v2783_v31  ;;  %3966 = vst [vmem:[#allocation148_spill] sm:$0xff] %v2786_v21  ;;  %v2801_v10 = vadd.f32 %v493_v39, %v2589_v29  ;;  %v2804_v2 = vadd.f32 %v494_v28, %v2592_v19  ;;  %v2807_v15 = vadd.f32 %v495_v54, %v2595_v17  ;;  %v3993_v28 = vld [vmem:[#allocation95_spill] sm:$0xff]  ;;  %v3994_v54 = vld [vmem:[#allocation96_spill] sm:$0xff] }
  0xe0   :  { %3967 = vst [vmem:[#allocation8_spill] sm:$0xff] %v2789_v22  ;;  %3968 = vst [vmem:[#allocation149_spill] sm:$0xff] %v2792_v32  ;;  %v2810_v60 = vadd.f32 %v496_v57, %v2598_v14  ;;  %v2813_v53 = vadd.f32 %v497_v55, %v2601_v13  ;;  %v2816_v25 = vadd.f32 %v498_v46, %v2604_v11  ;;  %v3981_v11 = vld [vmem:[#allocation142_spill] sm:$0xff] }
  0xe1   :  { %3969 = vst [vmem:[#allocation9_spill] sm:$0xff] %v2795_v63  ;;  %3970 = vst [vmem:[#allocation150_spill] sm:$0xff] %v2798_v12  ;;  %v2819_v52 = vadd.f32 %v499_v48, %v2607_v8  ;;  %v2822_v29 = vadd.f32 %v500_v43, %v2610_v59  ;;  %v533_v19 = vadd.f32 %v501_v40, %v2710_v42  ;;  %v555_v48 = vpop.permute.xlu0 %554  ;;  %v3984_v43 = vld [vmem:[#allocation3_spill] sm:$0xff]  ;;  %v3985_v42 = vld [vmem:[#allocation144_spill] sm:$0xff] }
  0xe2   :  { %3971 = vst [vmem:[#allocation10_spill] sm:$0xff] %v2801_v10  ;;  %3972 = vst [vmem:[#allocation151_spill] sm:$0xff] %v2804_v2  ;;  %v534_v17 = vadd.f32 %v502_v34, %v2712_v49  ;;  %v535_v3 = vadd.f32 %v503_v30, %v2714_v51  ;;  %v536_v14 = vadd.f32 %v504_v41, %v2716_v5  ;;  %v3986_v49 = vld [vmem:[#allocation4_spill] sm:$0xff]  ;;  %v3987_v51 = vld [vmem:[#allocation145_spill] sm:$0xff] }
  0xe3   :  { %3973 = vst [vmem:[#allocation11_spill] sm:$0xff] %v2807_v15  ;;  %3974 = vst [vmem:[#allocation152_spill] sm:$0xff] %v2810_v60  ;;  %v537_v13 = vadd.f32 %v505_v27, %v3979_v24  ;;  %v538_v16 = vadd.f32 %v506_v50, %v3980_v18  ;;  %v539_v62 = vadd.f32 %v507_v9, %v3981_v11  ;;  %v3988_v5 = vld [vmem:[#allocation5_spill] sm:$0xff]  ;;  %v3989_v27 = vld [vmem:[#allocation146_spill] sm:$0xff]  ;;  %v2840_v9 = vpop.permute.xlu1 %1114 }
  0xe4   :  { %3975 = vst [vmem:[#allocation12_spill] sm:$0xff] %v2813_v53  ;;  %3976 = vst [vmem:[#allocation153_spill] sm:$0xff] %v2816_v25  ;;  %v540_v8 = vadd.f32 %v508_v36, %v3982_v23  ;;  %v541_v59 = vadd.f32 %v509_v6, %v3983_v1  ;;  %v542_v44 = vadd.f32 %v510_v56, %v3984_v43  ;;  %v3990_v50 = vld [vmem:[#allocation6_spill] sm:$0xff]  ;;  %v3997_v56 = vld [vmem:[#allocation99_spill] sm:$0xff] }
  0xe5   :  { %3977 = vst [vmem:[#allocation157_spill] sm:$0xff] %v2819_v52  ;;  %3978 = vst [vmem:[#allocation154_spill] sm:$0xff] %v2822_v29  ;;  %v543_v40 = vadd.f32 %v511_v37, %v3985_v42  ;;  %v544_v34 = vadd.f32 %v512_v33, %v3986_v49  ;;  %v545_v30 = vadd.f32 %v513_v58, %v3987_v51  ;;  %v3992_v36 = vld [vmem:[#allocation94_spill] sm:$0xff]  ;;  %v3998_v33 = vld [vmem:[#allocation100_spill] sm:$0xff] }
  0xe6   :  { %v546_v41 = vadd.f32 %v514_v61, %v3988_v5  ;;  %v547_v35 = vadd.f32 %v515_v20, %v3989_v27  ;;  %v548_v38 = vadd.f32 %v516_v45, %v3990_v50  ;;  %3991 = vst [vmem:[#allocation78_spill] sm:$0xff] %v2840_v9  ;;  %v637_v39 = vmul.f32 %v3992_v36, %v555_v48  ;;  %v3999_v61 = vld [vmem:[#allocation101_spill] sm:$0xff]  ;;  %v4000_v24 = vld [vmem:[#allocation102_spill] sm:$0xff]  ;;  %v4001_v18 = vld [vmem:[#allocation103_spill] sm:$0xff] }
  0xe7   :  { %v638_v6 = vmul.f32 %v3993_v28, %v555_v48  ;;  %v639_v57 = vmul.f32 %v3994_v54, %v555_v48  ;;  %v640_v55 = vmul.f32 %v3995_v47, %v555_v48  ;;  %v641_v46 = vmul.f32 %v3996_v7, %v555_v48  ;;  %v4002_v23 = vld [vmem:[#allocation104_spill] sm:$0xff]  ;;  %v4003_v43 = vld [vmem:[#allocation105_spill] sm:$0xff]  ;;  %v4004_v49 = vld [vmem:[#allocation106_spill] sm:$0xff]  ;;  %v551_v63 = vpop.permute.xlu1 %550 }
  0xe8   :  { %v642_v37 = vmul.f32 %v3997_v56, %v555_v48  ;;  %v643_v58 = vmul.f32 %v3998_v33, %v555_v48  ;;  %v644_v20 = vmul.f32 %v3999_v61, %v555_v48  ;;  %v645_v45 = vmul.f32 %v4000_v24, %v555_v48  ;;  %v4005_v5 = vld [vmem:[#allocation107_spill] sm:$0xff]  ;;  %v4006_v50 = vld [vmem:[#allocation108_spill] sm:$0xff]  ;;  %v4007_v9 = vld [vmem:[#allocation109_spill] sm:$0xff] }
  0xe9   :  { %v646_v11 = vmul.f32 %v4001_v18, %v555_v48  ;;  %v647_v1 = vmul.f32 %v4002_v23, %v555_v48  ;;  %v648_v42 = vmul.f32 %v4003_v43, %v555_v48  ;;  %v649_v51 = vmul.f32 %v4004_v49, %v555_v48 }
  0xea   :  { %v650_v27 = vmul.f32 %v4005_v5, %v555_v48  ;;  %v651_v4 = vmul.f32 %v4006_v50, %v555_v48  ;;  %v652_v29 = vmul.f32 %v4007_v9, %v555_v48  ;;  %v669_v52 = vadd.f32 %v637_v39, %v533_v19  ;;  %v4008_v48 = vld [vmem:[#allocation7_spill] sm:$0xff]  ;;  %v4013_v39 = vld [vmem:[#allocation150_spill] sm:$0xff] }
  0xeb   :  { %v670_v25 = vadd.f32 %v638_v6, %v534_v17  ;;  %v671_v53 = vadd.f32 %v639_v57, %v535_v3  ;;  %v672_v60 = vadd.f32 %v640_v55, %v536_v14  ;;  %v673_v15 = vadd.f32 %v641_v46, %v537_v13  ;;  %v4014_v6 = vld [vmem:[#allocation10_spill] sm:$0xff]  ;;  %v4015_v57 = vld [vmem:[#allocation151_spill] sm:$0xff]  ;;  %v4018_v55 = vld [vmem:[#allocation12_spill] sm:$0xff] }
  0xec   :  { %v674_v2 = vadd.f32 %v642_v37, %v538_v16  ;;  %v675_v10 = vadd.f32 %v643_v58, %v539_v62  ;;  %v676_v12 = vadd.f32 %v644_v20, %v540_v8  ;;  %v677_v32 = vadd.f32 %v645_v45, %v541_v59  ;;  %701 = vst [vmem:[%s3446_s4 + $0x80] sm:$0xff] %v669_v52  ;;  %v4019_v46 = vld [vmem:[#allocation153_spill] sm:$0xff]  ;;  %v4021_v58 = vld [vmem:[#allocation154_spill] sm:$0xff] }
  0xed   :  { %v678_v22 = vadd.f32 %v646_v11, %v542_v44  ;;  %v679_v21 = vadd.f32 %v647_v1, %v543_v40  ;;  %v680_v31 = vadd.f32 %v648_v42, %v544_v34  ;;  %702 = vst [vmem:[%s3446_s4 + $0x88] sm:$0xff] %v670_v25  ;;  %703 = vst [vmem:[%s3446_s4 + $0x90] sm:$0xff] %v671_v53  ;;  %v4009_v44 = vld [vmem:[#allocation148_spill] sm:$0xff]  ;;  %v4020_v37 = vld [vmem:[#allocation157_spill] sm:$0xff] }
  0xee   :  { %704 = vst [vmem:[%s3446_s4 + $0x98] sm:$0xff] %v672_v60  ;;  %v681_v19 = vadd.f32 %v649_v51, %v545_v30  ;;  %v682_v17 = vadd.f32 %v650_v27, %v546_v41  ;;  %v683_v3 = vadd.f32 %v651_v4, %v547_v35  ;;  %v684_v14 = vadd.f32 %v652_v29, %v548_v38  ;;  %v4010_v34 = vld [vmem:[#allocation8_spill] sm:$0xff]  ;;  %v4011_v41 = vld [vmem:[#allocation149_spill] sm:$0xff]  ;;  %v4022_v20 = vld [vmem:[#allocation14_spill] sm:$0xff] }
  0xef   :  { %705 = vst [vmem:[%s3446_s4 + $0xa0] sm:$0xff] %v673_v15  ;;  %706 = vst [vmem:[%s3446_s4 + $0xa8] sm:$0xff] %v674_v2  ;;  %v621_v4 = vmul.f32 %v3992_v36, %v551_v63  ;;  %v628_v2 = vmul.f32 %v3999_v61, %v551_v63  ;;  %v629_v15 = vmul.f32 %v4000_v24, %v551_v63  ;;  %v4012_v38 = vld [vmem:[#allocation9_spill] sm:$0xff]  ;;  %v4023_v24 = vld [vmem:[#allocation30_spill] sm:$0xff] }
  0xf0   :  { %707 = vst [vmem:[%s3446_s4 + $0xb0] sm:$0xff] %v675_v10  ;;  %708 = vst [vmem:[%s3446_s4 + $0xb8] sm:$0xff] %v676_v12  ;;  %v622_v12 = vmul.f32 %v3993_v28, %v551_v63  ;;  %v623_v10 = vmul.f32 %v3994_v54, %v551_v63  ;;  %v630_v60 = vmul.f32 %v4001_v18, %v551_v63  ;;  %v4024_v18 = vld [vmem:[#allocation15_spill] sm:$0xff]  ;;  %v4026_v1 = vld [vmem:[#allocation16_spill] sm:$0xff] }
  0xf1   :  { %709 = vst [vmem:[%s3446_s4 + $0xc0] sm:$0xff] %v677_v32  ;;  %710 = vst [vmem:[%s3446_s4 + $0xc8] sm:$0xff] %v678_v22  ;;  %v624_v32 = vmul.f32 %v3995_v47, %v551_v63  ;;  %v627_v22 = vmul.f32 %v3998_v33, %v551_v63  ;;  %v631_v53 = vmul.f32 %v4002_v23, %v551_v63  ;;  %v4017_v47 = vld [vmem:[#allocation152_spill] sm:$0xff]  ;;  %v4025_v11 = vld [vmem:[#allocation31_spill] sm:$0xff] }
  0xf2   :  { %711 = vst [vmem:[%s3446_s4 + $0xd0] sm:$0xff] %v679_v21  ;;  %712 = vst [vmem:[%s3446_s4 + $0xd8] sm:$0xff] %v680_v31  ;;  %v625_v31 = vmul.f32 %v3996_v7, %v551_v63  ;;  %v626_v21 = vmul.f32 %v3997_v56, %v551_v63  ;;  %v632_v25 = vmul.f32 %v4003_v43, %v551_v63  ;;  %v4027_v43 = vld [vmem:[#allocation32_spill] sm:$0xff]  ;;  %v4029_v51 = vld [vmem:[#allocation33_spill] sm:$0xff] }
  0xf3   :  { %713 = vst [vmem:[%s3446_s4 + $0xe0] sm:$0xff] %v681_v19  ;;  %714 = vst [vmem:[%s3446_s4 + $0xe8] sm:$0xff] %v682_v17  ;;  %v633_v52 = vmul.f32 %v4004_v49, %v551_v63  ;;  %v634_v29 = vmul.f32 %v4005_v5, %v551_v63  ;;  %v635_v13 = vmul.f32 %v4006_v50, %v551_v63  ;;  %v4028_v49 = vld [vmem:[#allocation17_spill] sm:$0xff]  ;;  %v4030_v27 = vld [vmem:[#allocation18_spill] sm:$0xff] }
  0xf4   :  { %715 = vst [vmem:[%s3446_s4 + $0xf0] sm:$0xff] %v683_v3  ;;  %716 = vst [vmem:[%s3446_s4 + $0xf8] sm:$0xff] %v684_v14  ;;  %v636_v16 = vmul.f32 %v4007_v9, %v551_v63  ;;  %v653_v62 = vadd.f32 %v621_v4, %v2777_v26  ;;  %v654_v8 = vadd.f32 %v622_v12, %v2780_v0  ;;  %v4016_v9 = vld [vmem:[#allocation11_spill] sm:$0xff]  ;;  %v4031_v50 = vld [vmem:[#allocation34_spill] sm:$0xff] }
  0xf5   :  { %v655_v59 = vadd.f32 %v623_v10, %v4008_v48  ;;  %v656_v40 = vadd.f32 %v624_v32, %v4009_v44  ;;  %v657_v30 = vadd.f32 %v625_v31, %v4010_v34  ;;  %v658_v35 = vadd.f32 %v626_v21, %v4011_v41  ;;  %v4032_v17 = vld [vmem:[#allocation19_spill] sm:$0xff]  ;;  %v4034_v4 = vld [vmem:[#allocation20_spill] sm:$0xff]  ;;  %v4036_v32 = vld [vmem:[#allocation21_spill] sm:$0xff] }
  0xf6   :  { %v659_v36 = vadd.f32 %v627_v22, %v4012_v38  ;;  %v660_v28 = vadd.f32 %v628_v2, %v4013_v39  ;;  %v661_v54 = vadd.f32 %v629_v15, %v4014_v6  ;;  %v662_v63 = vadd.f32 %v630_v60, %v4015_v57  ;;  %685 = vst [vmem:[%s3446_s4] sm:$0xff] %v653_v62  ;;  %v4033_v3 = vld [vmem:[#allocation35_spill] sm:$0xff]  ;;  %v4035_v12 = vld [vmem:[#allocation36_spill] sm:$0xff]  ;;  %v4037_v31 = vld [vmem:[#allocation37_spill] sm:$0xff] }
  0xf7   :  { %v663_v26 = vadd.f32 %v631_v53, %v4016_v9  ;;  %v664_v0 = vadd.f32 %v632_v25, %v4017_v47  ;;  %686 = vst [vmem:[%s3446_s4 + $0x8] sm:$0xff] %v654_v8  ;;  %687 = vst [vmem:[%s3446_s4 + $0x10] sm:$0xff] %v655_v59  ;;  %v665_v7 = vadd.f32 %v633_v52, %v4018_v55  ;;  %v4038_v22 = vld [vmem:[#allocation22_spill] sm:$0xff]  ;;  %v4040_v60 = vld [vmem:[#allocation23_spill] sm:$0xff] }
  0xf8   :  { %688 = vst [vmem:[%s3446_s4 + $0x18] sm:$0xff] %v656_v40  ;;  %v666_v56 = vadd.f32 %v634_v29, %v4019_v46  ;;  %v667_v33 = vadd.f32 %v635_v13, %v4020_v37  ;;  %v668_v61 = vadd.f32 %v636_v16, %v4021_v58  ;;  %689 = vst [vmem:[%s3446_s4 + $0x20] sm:$0xff] %v657_v30  ;;  %v4039_v2 = vld [vmem:[#allocation38_spill] sm:$0xff]  ;;  %v4041_v53 = vld [vmem:[#allocation39_spill] sm:$0xff] }
  0xf9   :  { %690 = vst [vmem:[%s3446_s4 + $0x28] sm:$0xff] %v658_v35  ;;  %691 = vst [vmem:[%s3446_s4 + $0x30] sm:$0xff] %v659_v36  ;;  %v961_v45 = vadd.f32 %v4023_v24, %v4022_v20  ;;  %v962_v23 = vadd.f32 %v4025_v11, %v4024_v18  ;;  %v963_v42 = vadd.f32 %v4027_v43, %v4026_v1  ;;  %v4042_v52 = vld [vmem:[#allocation24_spill] sm:$0xff]  ;;  %v4044_v16 = vld [vmem:[#allocation25_spill] sm:$0xff] }
  0xfa   :  { %692 = vst [vmem:[%s3446_s4 + $0x38] sm:$0xff] %v660_v28  ;;  %693 = vst [vmem:[%s3446_s4 + $0x40] sm:$0xff] %v661_v54  ;;  %v964_v5 = vadd.f32 %v4029_v51, %v4028_v49  ;;  %v965_v19 = vadd.f32 %v4031_v50, %v4030_v27  ;;  %v966_v14 = vadd.f32 %v4033_v3, %v4032_v17  ;;  %v4043_v29 = vld [vmem:[#allocation40_spill] sm:$0xff]  ;;  %v4045_v62 = vld [vmem:[#allocation41_spill] sm:$0xff] }
  0xfb   :  { %694 = vst [vmem:[%s3446_s4 + $0x48] sm:$0xff] %v662_v63  ;;  %695 = vst [vmem:[%s3446_s4 + $0x50] sm:$0xff] %v663_v26  ;;  %v967_v10 = vadd.f32 %v4035_v12, %v4034_v4  ;;  %v968_v21 = vadd.f32 %v4037_v31, %v4036_v32  ;;  %v969_v15 = vadd.f32 %v4039_v2, %v4038_v22  ;;  %v4046_v48 = vld [vmem:[#allocation26_spill] sm:$0xff]  ;;  %v4048_v40 = vld [vmem:[#allocation27_spill] sm:$0xff] }
  0xfc   :  { %696 = vst [vmem:[%s3446_s4 + $0x58] sm:$0xff] %v664_v0  ;;  %697 = vst [vmem:[%s3446_s4 + $0x60] sm:$0xff] %v665_v7  ;;  %v970_v25 = vadd.f32 %v4041_v53, %v4040_v60  ;;  %v971_v13 = vadd.f32 %v4043_v29, %v4042_v52  ;;  %v972_v8 = vadd.f32 %v4045_v62, %v4044_v16  ;;  %v4047_v59 = vld [vmem:[#allocation42_spill] sm:$0xff]  ;;  %v4049_v34 = vld [vmem:[#allocation43_spill] sm:$0xff] }
  0xfd   :  { %698 = vst [vmem:[%s3446_s4 + $0x68] sm:$0xff] %v666_v56  ;;  %699 = vst [vmem:[%s3446_s4 + $0x70] sm:$0xff] %v667_v33  ;;  %v973_v44 = vadd.f32 %v4047_v59, %v4046_v48  ;;  %v974_v30 = vadd.f32 %v4049_v34, %v4048_v40  ;;  %v4050_v41 = vld [vmem:[#allocation28_spill] sm:$0xff]  ;;  %v4052_v36 = vld [vmem:[#allocation29_spill] sm:$0xff] }
  0xfe   :  { %700 = vst [vmem:[%s3446_s4 + $0x78] sm:$0xff] %v668_v61  ;;  %v4051_v35 = vld [vmem:[#allocation44_spill] sm:$0xff]  ;;  %v4053_v39 = vld [vmem:[#allocation45_spill] sm:$0xff]  ;;  %v4054_v6 = vld [vmem:[#allocation155_spill] sm:$0xff] }
  0xff   :  { %v975_v38 = vadd.f32 %v4051_v35, %v4050_v41  ;;  %v976_v28 = vadd.f32 %v4053_v39, %v4052_v36  ;;  %v4055_v54 = vld [vmem:[#allocation62_spill] sm:$0xff]  ;;  %v4056_v63 = vld [vmem:[#allocation63_spill] sm:$0xff]  ;;  %v4057_v26 = vld [vmem:[#allocation64_spill] sm:$0xff]  ;;  %v1251_v41 = vpop.permute.xlu1 %1250 }
 0x100   :  { %v1065_v57 = vmul.f32 %v4055_v54, %v4054_v6  ;;  %v1066_v9 = vmul.f32 %v4056_v63, %v4054_v6  ;;  %v1067_v47 = vmul.f32 %v4057_v26, %v4054_v6  ;;  %v4058_v0 = vld [vmem:[#allocation65_spill] sm:$0xff]  ;;  %v4059_v7 = vld [vmem:[#allocation66_spill] sm:$0xff]  ;;  %v4060_v56 = vld [vmem:[#allocation67_spill] sm:$0xff] }
 0x101   :  { %v1068_v55 = vmul.f32 %v4058_v0, %v4054_v6  ;;  %v1069_v46 = vmul.f32 %v4059_v7, %v4054_v6  ;;  %v1070_v37 = vmul.f32 %v4060_v56, %v4054_v6  ;;  %v4061_v33 = vld [vmem:[#allocation68_spill] sm:$0xff]  ;;  %v4062_v61 = vld [vmem:[#allocation69_spill] sm:$0xff]  ;;  %v4063_v24 = vld [vmem:[#allocation70_spill] sm:$0xff] }
 0x102   :  { %v1071_v58 = vmul.f32 %v4061_v33, %v4054_v6  ;;  %v1072_v20 = vmul.f32 %v4062_v61, %v4054_v6  ;;  %v1073_v18 = vmul.f32 %v4063_v24, %v4054_v6  ;;  %v4064_v11 = vld [vmem:[#allocation71_spill] sm:$0xff]  ;;  %v4065_v43 = vld [vmem:[#allocation72_spill] sm:$0xff]  ;;  %v4066_v51 = vld [vmem:[#allocation73_spill] sm:$0xff]  ;;  %v3050_v2 = vadd.f32 %v1065_v57, %v961_v45 }
 0x103   :  { %v1074_v1 = vmul.f32 %v4064_v11, %v4054_v6  ;;  %v1075_v49 = vmul.f32 %v4065_v43, %v4054_v6  ;;  %v1076_v27 = vmul.f32 %v4066_v51, %v4054_v6  ;;  %v4067_v50 = vld [vmem:[#allocation74_spill] sm:$0xff]  ;;  %v4068_v3 = vld [vmem:[#allocation75_spill] sm:$0xff]  ;;  %v4069_v12 = vld [vmem:[#allocation76_spill] sm:$0xff]  ;;  %v3052_v60 = vadd.f32 %v1066_v9, %v962_v23 }
 0x104   :  { %v1077_v17 = vmul.f32 %v4067_v50, %v4054_v6  ;;  %v1078_v4 = vmul.f32 %v4068_v3, %v4054_v6  ;;  %v1079_v32 = vmul.f32 %v4069_v12, %v4054_v6  ;;  %v4070_v31 = vld [vmem:[#allocation77_spill] sm:$0xff]  ;;  %v3054_v53 = vadd.f32 %v1067_v47, %v963_v42  ;;  %v4087_v34 = vld [vmem:[#allocation110_spill] sm:$0xff]  ;;  %v4092_v36 = vld [vmem:[#allocation115_spill] sm:$0xff] }
 0x105   :  { %v1080_v22 = vmul.f32 %v4070_v31, %v4054_v6  ;;  %4071 = vst [vmem:[#allocation79_spill] sm:$0xff] %v3052_v60  ;;  %v3056_v52 = vadd.f32 %v1068_v55, %v964_v5  ;;  %v3058_v29 = vadd.f32 %v1069_v46, %v965_v19  ;;  %v3060_v16 = vadd.f32 %v1070_v37, %v966_v14  ;;  %v4091_v35 = vld [vmem:[#allocation114_spill] sm:$0xff]  ;;  %v4094_v54 = vld [vmem:[#allocation117_spill] sm:$0xff]  ;;  %v4096_v26 = vld [vmem:[#allocation119_spill] sm:$0xff] }
 0x106   :  { %4072 = vst [vmem:[#allocation80_spill] sm:$0xff] %v3054_v53  ;;  %v3062_v62 = vadd.f32 %v1071_v58, %v967_v10  ;;  %v3064_v48 = vadd.f32 %v1072_v20, %v968_v21  ;;  %v3066_v59 = vadd.f32 %v1073_v18, %v969_v15  ;;  %v3068_v40 = vadd.f32 %v1074_v1, %v970_v25  ;;  %v4086_v10 = vld [vmem:[#allocation78_spill] sm:$0xff]  ;;  %v4088_v15 = vld [vmem:[#allocation111_spill] sm:$0xff]  ;;  %v4097_v0 = vld [vmem:[#allocation120_spill] sm:$0xff] }
 0x107   :  { %4073 = vst [vmem:[#allocation81_spill] sm:$0xff] %v3056_v52  ;;  %4074 = vst [vmem:[#allocation82_spill] sm:$0xff] %v3058_v29  ;;  %v3070_v45 = vadd.f32 %v1075_v49, %v971_v13  ;;  %v3072_v23 = vadd.f32 %v1076_v27, %v972_v8  ;;  %v3074_v42 = vadd.f32 %v1077_v17, %v973_v44  ;;  %v4089_v13 = vld [vmem:[#allocation112_spill] sm:$0xff]  ;;  %v4090_v44 = vld [vmem:[#allocation113_spill] sm:$0xff] }
 0x108   :  { %4075 = vst [vmem:[#allocation83_spill] sm:$0xff] %v3060_v16  ;;  %4076 = vst [vmem:[#allocation84_spill] sm:$0xff] %v3062_v62  ;;  %v3076_v5 = vadd.f32 %v1078_v4, %v974_v30  ;;  %v3078_v19 = vadd.f32 %v1079_v32, %v975_v38  ;;  %v3080_v14 = vadd.f32 %v1080_v22, %v976_v28  ;;  %v4093_v28 = vld [vmem:[#allocation116_spill] sm:$0xff]  ;;  %v4095_v63 = vld [vmem:[#allocation118_spill] sm:$0xff] }
 0x109   :  { %4077 = vst [vmem:[#allocation85_spill] sm:$0xff] %v3064_v48  ;;  %4078 = vst [vmem:[#allocation86_spill] sm:$0xff] %v3066_v59  ;;  %v3084_v21 = vmul.f32 %v4087_v34, %v4086_v10  ;;  %v3088_v25 = vmul.f32 %v4088_v15, %v4086_v10  ;;  %v3092_v8 = vmul.f32 %v4089_v13, %v4086_v10  ;;  %v4098_v7 = vld [vmem:[#allocation121_spill] sm:$0xff]  ;;  %v4099_v56 = vld [vmem:[#allocation122_spill] sm:$0xff] }
 0x10a   :  { %4079 = vst [vmem:[#allocation87_spill] sm:$0xff] %v3068_v40  ;;  %4080 = vst [vmem:[#allocation88_spill] sm:$0xff] %v3070_v45  ;;  %v3096_v30 = vmul.f32 %v4090_v44, %v4086_v10  ;;  %v3100_v38 = vmul.f32 %v4091_v35, %v4086_v10  ;;  %v3104_v39 = vmul.f32 %v4092_v36, %v4086_v10  ;;  %v4100_v33 = vld [vmem:[#allocation123_spill] sm:$0xff]  ;;  %v4101_v61 = vld [vmem:[#allocation124_spill] sm:$0xff] }
 0x10b   :  { %4081 = vst [vmem:[#allocation89_spill] sm:$0xff] %v3072_v23  ;;  %4082 = vst [vmem:[#allocation90_spill] sm:$0xff] %v3074_v42  ;;  %v3108_v6 = vmul.f32 %v4093_v28, %v4086_v10  ;;  %v3112_v57 = vmul.f32 %v4094_v54, %v4086_v10  ;;  %v3116_v9 = vmul.f32 %v4095_v63, %v4086_v10  ;;  %v4102_v24 = vld [vmem:[#allocation125_spill] sm:$0xff]  ;;  %v4103_v11 = vld [vmem:[#allocation126_spill] sm:$0xff] }
 0x10c   :  { %4083 = vst [vmem:[#allocation91_spill] sm:$0xff] %v3076_v5  ;;  %4084 = vst [vmem:[#allocation92_spill] sm:$0xff] %v3078_v19  ;;  %v3120_v47 = vmul.f32 %v4096_v26, %v4086_v10  ;;  %v3124_v55 = vmul.f32 %v4097_v0, %v4086_v10  ;;  %v3128_v46 = vmul.f32 %v4098_v7, %v4086_v10  ;;  %v4105_v43 = vld [vmem:[#allocation127_spill] sm:$0xff]  ;;  %v4107_v51 = vld [vmem:[#allocation128_spill] sm:$0xff] }
 0x10d   :  { %4085 = vst [vmem:[#allocation93_spill] sm:$0xff] %v3080_v14  ;;  %v3132_v37 = vmul.f32 %v4099_v56, %v4086_v10  ;;  %v3136_v58 = vmul.f32 %v4100_v33, %v4086_v10  ;;  %v3140_v20 = vmul.f32 %v4101_v61, %v4086_v10  ;;  %v3144_v18 = vmul.f32 %v4102_v24, %v4086_v10  ;;  %v4109_v50 = vld [vmem:[#allocation129_spill] sm:$0xff]  ;;  %v4111_v3 = vld [vmem:[#allocation130_spill] sm:$0xff]  ;;  %v4113_v12 = vld [vmem:[#allocation131_spill] sm:$0xff] }
 0x10e   :  { %v3147_v1 = vmul.f32 %v4103_v11, %v1251_v41  ;;  %v3150_v49 = vmul.f32 %v4105_v43, %v1251_v41  ;;  %v3153_v27 = vmul.f32 %v4107_v51, %v1251_v41  ;;  %v3156_v17 = vmul.f32 %v4109_v50, %v1251_v41  ;;  %v4115_v31 = vld [vmem:[#allocation132_spill] sm:$0xff]  ;;  %v4117_v10 = vld [vmem:[#allocation133_spill] sm:$0xff]  ;;  %v4119_v43 = vld [vmem:[#allocation134_spill] sm:$0xff] }
 0x10f   :  { %v3159_v4 = vmul.f32 %v4111_v3, %v1251_v41  ;;  %v3162_v32 = vmul.f32 %v4113_v12, %v1251_v41  ;;  %v3165_v22 = vmul.f32 %v4115_v31, %v1251_v41  ;;  %v4121_v51 = vld [vmem:[#allocation135_spill] sm:$0xff]  ;;  %v4123_v50 = vld [vmem:[#allocation136_spill] sm:$0xff]  ;;  %v4125_v3 = vld [vmem:[#allocation137_spill] sm:$0xff] }
 0x110   :  { %4104 = vst [vmem:[#allocation13_spill] sm:$0xff] %v3147_v1  ;;  %4106 = vst [vmem:[#allocation156_spill] sm:$0xff] %v3150_v49  ;;  %v3168_v1 = vmul.f32 %v4117_v10, %v1251_v41  ;;  %v3171_v49 = vmul.f32 %v4119_v43, %v1251_v41  ;;  %v4127_v12 = vld [vmem:[#allocation138_spill] sm:$0xff]  ;;  %v4129_v31 = vld [vmem:[#allocation139_spill] sm:$0xff] }
 0x111   :  { %4108 = vst [vmem:[#allocation142_spill] sm:$0xff] %v3153_v27  ;;  %4110 = vst [vmem:[#allocation2_spill] sm:$0xff] %v3156_v17  ;;  %v3174_v27 = vmul.f32 %v4121_v51, %v1251_v41  ;;  %v3177_v17 = vmul.f32 %v4123_v50, %v1251_v41  ;;  %v4131_v10 = vld [vmem:[#allocation140_spill] sm:$0xff]  ;;  %v4133_v43 = vld [vmem:[#allocation141_spill] sm:$0xff] }
 0x112   :  { %4112 = vst [vmem:[#allocation143_spill] sm:$0xff] %v3159_v4  ;;  %4114 = vst [vmem:[#allocation3_spill] sm:$0xff] %v3162_v32  ;;  %v3180_v4 = vmul.f32 %v4125_v3, %v1251_v41  ;;  %v3183_v32 = vmul.f32 %v4127_v12, %v1251_v41  ;;  %v4135_v51 = vld [vmem:[#allocation158_spill] sm:$0xff]  ;;  %v4137_v50 = vld [vmem:[#allocation159_spill] sm:$0xff] }
 0x113   :  { %4116 = vst [vmem:[#allocation144_spill] sm:$0xff] %v3165_v22  ;;  %4118 = vst [vmem:[#allocation4_spill] sm:$0xff] %v3168_v1  ;;  %v3186_v22 = vmul.f32 %v4129_v31, %v1251_v41  ;;  %v3189_v1 = vmul.f32 %v4131_v10, %v1251_v41  ;;  %v4139_v3 = vld [vmem:[#allocation160_spill] sm:$0xff]  ;;  %v4141_v12 = vld [vmem:[#allocation161_spill] sm:$0xff] }
 0x114   :  { %4120 = vst [vmem:[#allocation145_spill] sm:$0xff] %v3171_v49  ;;  %4122 = vst [vmem:[#allocation5_spill] sm:$0xff] %v3174_v27  ;;  %v3192_v49 = vmul.f32 %v4133_v43, %v1251_v41  ;;  %v4136_v27 = vld [vmem:[#allocation46_spill] sm:$0xff]  ;;  %v4145_v10 = vld [vmem:[#allocation163_spill] sm:$0xff] }
 0x115   :  { %4124 = vst [vmem:[#allocation146_spill] sm:$0xff] %v3177_v17  ;;  %4126 = vst [vmem:[#allocation6_spill] sm:$0xff] %v3180_v4  ;;  %v1081_v11 = vadd.f32 %v4136_v27, %v4135_v51  ;;  %v4138_v17 = vld [vmem:[#allocation47_spill] sm:$0xff]  ;;  %v4140_v4 = vld [vmem:[#allocation48_spill] sm:$0xff] }
 0x116   :  { %4128 = vst [vmem:[#allocation94_spill] sm:$0xff] %v3183_v32  ;;  %4130 = vst [vmem:[#allocation95_spill] sm:$0xff] %v3186_v22  ;;  %v1082_v14 = vadd.f32 %v4138_v17, %v4137_v50  ;;  %v1083_v19 = vadd.f32 %v4140_v4, %v4139_v3  ;;  %v4142_v32 = vld [vmem:[#allocation49_spill] sm:$0xff]  ;;  %v4143_v31 = vld [vmem:[#allocation162_spill] sm:$0xff] }
 0x117   :  { %4132 = vst [vmem:[#allocation96_spill] sm:$0xff] %v3189_v1  ;;  %4134 = vst [vmem:[#allocation97_spill] sm:$0xff] %v3192_v49  ;;  %v1084_v5 = vadd.f32 %v4142_v32, %v4141_v12  ;;  %v4144_v22 = vld [vmem:[#allocation50_spill] sm:$0xff]  ;;  %v4146_v1 = vld [vmem:[#allocation51_spill] sm:$0xff] }
 0x118   :  { %v1085_v42 = vadd.f32 %v4144_v22, %v4143_v31  ;;  %v1086_v23 = vadd.f32 %v4146_v1, %v4145_v10  ;;  %v4147_v41 = vld [vmem:[#allocation164_spill] sm:$0xff]  ;;  %v4149_v45 = vld [vmem:[#allocation165_spill] sm:$0xff]  ;;  %v4151_v40 = vld [vmem:[#allocation166_spill] sm:$0xff] }
 0x119   :  { %v4148_v49 = vld [vmem:[#allocation52_spill] sm:$0xff]  ;;  %v4150_v51 = vld [vmem:[#allocation53_spill] sm:$0xff]  ;;  %v4152_v50 = vld [vmem:[#allocation54_spill] sm:$0xff] }
 0x11a   :  { %v1087_v43 = vadd.f32 %v4148_v49, %v4147_v41  ;;  %v1088_v27 = vadd.f32 %v4150_v51, %v4149_v45  ;;  %v1089_v17 = vadd.f32 %v4152_v50, %v4151_v40  ;;  %v4153_v59 = vld [vmem:[#allocation167_spill] sm:$0xff]  ;;  %v4155_v48 = vld [vmem:[#allocation168_spill] sm:$0xff]  ;;  %v4157_v62 = vld [vmem:[#allocation169_spill] sm:$0xff] }
 0x11b   :  { %v4154_v3 = vld [vmem:[#allocation55_spill] sm:$0xff]  ;;  %v4156_v12 = vld [vmem:[#allocation56_spill] sm:$0xff]  ;;  %v4158_v31 = vld [vmem:[#allocation57_spill] sm:$0xff] }
 0x11c   :  { %v1090_v4 = vadd.f32 %v4154_v3, %v4153_v59  ;;  %v1091_v32 = vadd.f32 %v4156_v12, %v4155_v48  ;;  %v1092_v22 = vadd.f32 %v4158_v31, %v4157_v62  ;;  %v4159_v16 = vld [vmem:[#allocation170_spill] sm:$0xff]  ;;  %v4161_v29 = vld [vmem:[#allocation171_spill] sm:$0xff]  ;;  %v4163_v52 = vld [vmem:[#allocation172_spill] sm:$0xff]  ;;  %v1218_v3 = vadd.f32 %v3088_v25, %v1082_v14 }
 0x11d   :  { %v4160_v1 = vld [vmem:[#allocation58_spill] sm:$0xff]  ;;  %v4162_v49 = vld [vmem:[#allocation59_spill] sm:$0xff]  ;;  %v4164_v45 = vld [vmem:[#allocation60_spill] sm:$0xff]  ;;  %v1221_v12 = vadd.f32 %v3100_v38, %v1085_v42  ;;  %v1224_v31 = vadd.f32 %v3112_v57, %v1088_v27 }
 0x11e   :  { %v1093_v10 = vadd.f32 %v4160_v1, %v4159_v16  ;;  %v1094_v41 = vadd.f32 %v4162_v49, %v4161_v29  ;;  %v1095_v51 = vadd.f32 %v4164_v45, %v4163_v52  ;;  %v4165_v53 = vld [vmem:[#allocation173_spill] sm:$0xff]  ;;  %v4167_v60 = vld [vmem:[#allocation147_spill] sm:$0xff]  ;;  %v1228_v14 = vadd.f32 %v3128_v46, %v1092_v22  ;;  %v4169_v38 = vld [vmem:[#allocation80_spill] sm:$0xff] }
 0x11f   :  { %v4166_v40 = vld [vmem:[#allocation61_spill] sm:$0xff]  ;;  %v1201_v59 = vmul.f32 %v4087_v34, %v4167_v60  ;;  %v1202_v48 = vmul.f32 %v4088_v15, %v4167_v60  ;;  %v1203_v62 = vmul.f32 %v4089_v13, %v4167_v60  ;;  %v1204_v16 = vmul.f32 %v4090_v44, %v4167_v60  ;;  %v4172_v46 = vld [vmem:[#allocation83_spill] sm:$0xff]  ;;  %v4180_v1 = vld [vmem:[#allocation90_spill] sm:$0xff] }
 0x120   :  { %v1096_v50 = vadd.f32 %v4166_v40, %v4165_v53  ;;  %v1205_v29 = vmul.f32 %v4091_v35, %v4167_v60  ;;  %v1206_v52 = vmul.f32 %v4092_v36, %v4167_v60  ;;  %v1207_v53 = vmul.f32 %v4093_v28, %v4167_v60  ;;  %v4182_v49 = vld [vmem:[#allocation91_spill] sm:$0xff]  ;;  %v4184_v45 = vld [vmem:[#allocation92_spill] sm:$0xff]  ;;  %v4186_v40 = vld [vmem:[#allocation93_spill] sm:$0xff] }
 0x121   :  { %v1208_v34 = vmul.f32 %v4094_v54, %v4167_v60  ;;  %v1209_v15 = vmul.f32 %v4095_v63, %v4167_v60  ;;  %v1210_v13 = vmul.f32 %v4096_v26, %v4167_v60  ;;  %v1211_v44 = vmul.f32 %v4097_v0, %v4167_v60 }
 0x122   :  { %v1212_v35 = vmul.f32 %v4098_v7, %v4167_v60  ;;  %v1213_v36 = vmul.f32 %v4099_v56, %v4167_v60  ;;  %v1214_v28 = vmul.f32 %v4100_v33, %v4167_v60  ;;  %v1215_v54 = vmul.f32 %v4101_v61, %v4167_v60 }
 0x123   :  { %v1216_v63 = vmul.f32 %v4102_v24, %v4167_v60  ;;  %v1217_v26 = vadd.f32 %v3084_v21, %v1081_v11  ;;  %v1219_v0 = vadd.f32 %v3092_v8, %v1083_v19  ;;  %v1220_v7 = vadd.f32 %v3096_v30, %v1084_v5  ;;  %v4168_v8 = vld [vmem:[#allocation79_spill] sm:$0xff] }
 0x124   :  { %v1222_v56 = vadd.f32 %v3104_v39, %v1086_v23  ;;  %v1223_v33 = vadd.f32 %v3108_v6, %v1087_v43  ;;  %v1225_v61 = vadd.f32 %v3116_v9, %v1089_v17  ;;  %v1226_v60 = vadd.f32 %v3120_v47, %v1090_v4  ;;  %v4170_v6 = vld [vmem:[#allocation81_spill] sm:$0xff]  ;;  %v1255_v9 = vpop.permute.xlu1 %1254  ;;  %v4171_v47 = vld [vmem:[#allocation82_spill] sm:$0xff]  ;;  %v4177_v17 = vld [vmem:[#allocation88_spill] sm:$0xff] }
 0x125   :  { %v1227_v21 = vadd.f32 %v3124_v55, %v1091_v32  ;;  %v1229_v19 = vadd.f32 %v3132_v37, %v1093_v10  ;;  %v1230_v5 = vadd.f32 %v3136_v58, %v1094_v41  ;;  %v1231_v42 = vadd.f32 %v3140_v20, %v1095_v51  ;;  %v4173_v37 = vld [vmem:[#allocation84_spill] sm:$0xff]  ;;  %v4174_v58 = vld [vmem:[#allocation85_spill] sm:$0xff]  ;;  %v4175_v20 = vld [vmem:[#allocation86_spill] sm:$0xff] }
 0x126   :  { %v1232_v23 = vadd.f32 %v3144_v18, %v1096_v50  ;;  %v1233_v25 = vadd.f32 %v1201_v59, %v3050_v2  ;;  %v1234_v30 = vadd.f32 %v1202_v48, %v4168_v8  ;;  %v1235_v39 = vadd.f32 %v1203_v62, %v4169_v38  ;;  %v4176_v18 = vld [vmem:[#allocation87_spill] sm:$0xff]  ;;  %v4178_v32 = vld [vmem:[#allocation89_spill] sm:$0xff]  ;;  %v4188_v59 = vld [vmem:[#allocation126_spill] sm:$0xff] }
 0x127   :  { %v1236_v57 = vadd.f32 %v1204_v16, %v4170_v6  ;;  %v1237_v55 = vadd.f32 %v1205_v29, %v4171_v47  ;;  %v1238_v24 = vadd.f32 %v1206_v52, %v4172_v46  ;;  %v1239_v11 = vadd.f32 %v1207_v53, %v4173_v37  ;;  %v4189_v62 = vld [vmem:[#allocation127_spill] sm:$0xff]  ;;  %v4190_v29 = vld [vmem:[#allocation128_spill] sm:$0xff]  ;;  %v4191_v53 = vld [vmem:[#allocation129_spill] sm:$0xff] }
 0x128   :  { %v1240_v43 = vadd.f32 %v1208_v34, %v4174_v58  ;;  %v3283_v27 = vadd.f32 %v1209_v15, %v4175_v20  ;;  %v3286_v2 = vadd.f32 %v1210_v13, %v4176_v18  ;;  %v3289_v4 = vadd.f32 %v1211_v44, %v4177_v17  ;;  %v4192_v15 = vld [vmem:[#allocation130_spill] sm:$0xff]  ;;  %v4193_v44 = vld [vmem:[#allocation131_spill] sm:$0xff]  ;;  %v4195_v8 = vld [vmem:[#allocation133_spill] sm:$0xff] }
 0x129   :  { %v3292_v22 = vadd.f32 %v1212_v35, %v4178_v32  ;;  %v3295_v10 = vadd.f32 %v1213_v36, %v4180_v1  ;;  %v3298_v41 = vadd.f32 %v1214_v28, %v4182_v49  ;;  %v3301_v51 = vadd.f32 %v1215_v54, %v4184_v45  ;;  %v4194_v36 = vld [vmem:[#allocation132_spill] sm:$0xff]  ;;  %v4196_v38 = vld [vmem:[#allocation134_spill] sm:$0xff]  ;;  %v4199_v58 = vld [vmem:[#allocation137_spill] sm:$0xff] }
 0x12a   :  { %v3304_v50 = vadd.f32 %v1216_v63, %v4186_v40  ;;  %v1337_v48 = vmul.f32 %v4188_v59, %v1255_v9  ;;  %v1338_v16 = vmul.f32 %v4189_v62, %v1255_v9  ;;  %v1339_v52 = vmul.f32 %v4190_v29, %v1255_v9  ;;  %v4197_v63 = vld [vmem:[#allocation135_spill] sm:$0xff]  ;;  %v4198_v46 = vld [vmem:[#allocation136_spill] sm:$0xff]  ;;  %v4200_v18 = vld [vmem:[#allocation138_spill] sm:$0xff] }
 0x12b   :  { %4179 = vst [vmem:[#allocation98_spill] sm:$0xff] %v3292_v22  ;;  %4181 = vst [vmem:[#allocation99_spill] sm:$0xff] %v3295_v10  ;;  %v1340_v34 = vmul.f32 %v4191_v53, %v1255_v9  ;;  %v1341_v13 = vmul.f32 %v4192_v15, %v1255_v9  ;;  %v1342_v35 = vmul.f32 %v4193_v44, %v1255_v9  ;;  %v4201_v32 = vld [vmem:[#allocation139_spill] sm:$0xff]  ;;  %v4202_v49 = vld [vmem:[#allocation140_spill] sm:$0xff] }
 0x12c   :  { %4183 = vst [vmem:[#allocation100_spill] sm:$0xff] %v3298_v41  ;;  %4185 = vst [vmem:[#allocation101_spill] sm:$0xff] %v3301_v51  ;;  %v1343_v28 = vmul.f32 %v4194_v36, %v1255_v9  ;;  %v1344_v54 = vmul.f32 %v4195_v8, %v1255_v9  ;;  %v1345_v6 = vmul.f32 %v4196_v38, %v1255_v9  ;;  %v4203_v40 = vld [vmem:[#allocation141_spill] sm:$0xff]  ;;  %v4205_v53 = vld [vmem:[#allocation156_spill] sm:$0xff] }
 0x12d   :  { %4187 = vst [vmem:[#allocation102_spill] sm:$0xff] %v3304_v50  ;;  %v1346_v47 = vmul.f32 %v4197_v63, %v1255_v9  ;;  %v1347_v37 = vmul.f32 %v4198_v46, %v1255_v9  ;;  %v1348_v20 = vmul.f32 %v4199_v58, %v1255_v9  ;;  %v1349_v17 = vmul.f32 %v4200_v18, %v1255_v9  ;;  %v4204_v62 = vld [vmem:[#allocation13_spill] sm:$0xff]  ;;  %v4206_v44 = vld [vmem:[#allocation142_spill] sm:$0xff]  ;;  %v4208_v63 = vld [vmem:[#allocation143_spill] sm:$0xff] }
 0x12e   :  { %v1350_v1 = vmul.f32 %v4201_v32, %v1255_v9  ;;  %v1351_v45 = vmul.f32 %v4202_v49, %v1255_v9  ;;  %v1352_v59 = vmul.f32 %v4203_v40, %v1255_v9  ;;  %v1353_v29 = vadd.f32 %v4204_v62, %v1217_v26  ;;  %v4207_v8 = vld [vmem:[#allocation2_spill] sm:$0xff]  ;;  %v4209_v50 = vld [vmem:[#allocation3_spill] sm:$0xff]  ;;  %v4210_v51 = vld [vmem:[#allocation144_spill] sm:$0xff] }
 0x12f   :  { %v1354_v15 = vadd.f32 %v4205_v53, %v1218_v3  ;;  %v1355_v36 = vadd.f32 %v4206_v44, %v1219_v0  ;;  %v1356_v38 = vadd.f32 %v4207_v8, %v1220_v7  ;;  %v1357_v46 = vadd.f32 %v4208_v63, %v1221_v12  ;;  %v4211_v41 = vld [vmem:[#allocation4_spill] sm:$0xff]  ;;  %v4212_v10 = vld [vmem:[#allocation145_spill] sm:$0xff]  ;;  %v4214_v40 = vld [vmem:[#allocation146_spill] sm:$0xff] }
 0x130   :  { %v1358_v58 = vadd.f32 %v4209_v50, %v1222_v56  ;;  %v1359_v18 = vadd.f32 %v4210_v51, %v1223_v33  ;;  %v1360_v32 = vadd.f32 %v4211_v41, %v1224_v31  ;;  %v1361_v49 = vadd.f32 %v4212_v10, %v1225_v61  ;;  %v4213_v22 = vld [vmem:[#allocation5_spill] sm:$0xff]  ;;  %v4215_v62 = vld [vmem:[#allocation6_spill] sm:$0xff]  ;;  %1385 = vst [vmem:[%s3446_s4 + $0x100] sm:$0xff] %v1353_v29  ;;  %v4217_v12 = vld [vmem:[#allocation95_spill] sm:$0xff] }
 0x131   :  { %v1362_v9 = vadd.f32 %v4213_v22, %v1226_v60  ;;  %v1363_v26 = vadd.f32 %v4214_v40, %v1227_v21  ;;  %v1364_v3 = vadd.f32 %v4215_v62, %v1228_v14  ;;  %1386 = vst [vmem:[%s3446_s4 + $0x108] sm:$0xff] %v1354_v15  ;;  %1387 = vst [vmem:[%s3446_s4 + $0x110] sm:$0xff] %v1355_v36  ;;  %v4216_v0 = vld [vmem:[#allocation94_spill] sm:$0xff]  ;;  %v4218_v33 = vld [vmem:[#allocation96_spill] sm:$0xff] }
 0x132   :  { %1388 = vst [vmem:[%s3446_s4 + $0x118] sm:$0xff] %v1356_v38  ;;  %v1365_v7 = vadd.f32 %v4216_v0, %v1229_v19  ;;  %v1366_v56 = vadd.f32 %v4217_v12, %v1230_v5  ;;  %v1367_v31 = vadd.f32 %v4218_v33, %v1231_v42  ;;  %v4219_v61 = vld [vmem:[#allocation97_spill] sm:$0xff]  ;;  %1389 = vst [vmem:[%s3446_s4 + $0x120] sm:$0xff] %v1357_v46 }
 0x133   :  { %v1368_v60 = vadd.f32 %v4219_v61, %v1232_v23  ;;  %1390 = vst [vmem:[%s3446_s4 + $0x128] sm:$0xff] %v1358_v58  ;;  %1391 = vst [vmem:[%s3446_s4 + $0x130] sm:$0xff] %v1359_v18  ;;  %v1369_v21 = vadd.f32 %v1337_v48, %v1233_v25  ;;  %v1370_v14 = vadd.f32 %v1338_v16, %v1234_v30  ;;  %v4223_v22 = vld [vmem:[#allocation101_spill] sm:$0xff] }
 0x134   :  { %1392 = vst [vmem:[%s3446_s4 + $0x138] sm:$0xff] %v1360_v32  ;;  %v1371_v19 = vadd.f32 %v1339_v52, %v1235_v39  ;;  %v1372_v5 = vadd.f32 %v1340_v34, %v1236_v57  ;;  %1393 = vst [vmem:[%s3446_s4 + $0x140] sm:$0xff] %v1361_v49  ;;  %v1373_v42 = vadd.f32 %v1341_v13, %v1237_v55  ;;  %v4224_v41 = vld [vmem:[#allocation102_spill] sm:$0xff] }
 0x135   :  { %1394 = vst [vmem:[%s3446_s4 + $0x148] sm:$0xff] %v1362_v9  ;;  %1395 = vst [vmem:[%s3446_s4 + $0x150] sm:$0xff] %v1363_v26  ;;  %v1374_v23 = vadd.f32 %v1342_v35, %v1238_v24  ;;  %v1375_v25 = vadd.f32 %v1343_v28, %v1239_v11  ;;  %v1376_v30 = vadd.f32 %v1344_v54, %v1240_v43  ;;  %v4220_v24 = vld [vmem:[#allocation98_spill] sm:$0xff]  ;;  %v4221_v43 = vld [vmem:[#allocation99_spill] sm:$0xff] }
 0x136   :  { %1396 = vst [vmem:[%s3446_s4 + $0x158] sm:$0xff] %v1364_v3  ;;  %1397 = vst [vmem:[%s3446_s4 + $0x160] sm:$0xff] %v1365_v7  ;;  %v1377_v39 = vadd.f32 %v1345_v6, %v3283_v27  ;;  %v1378_v57 = vadd.f32 %v1346_v47, %v3286_v2  ;;  %v1379_v55 = vadd.f32 %v1347_v37, %v3289_v4  ;;  %v4222_v2 = vld [vmem:[#allocation100_spill] sm:$0xff] }
 0x137   :  { %1398 = vst [vmem:[%s3446_s4 + $0x168] sm:$0xff] %v1366_v56  ;;  %1399 = vst [vmem:[%s3446_s4 + $0x170] sm:$0xff] %v1367_v31  ;;  %v1380_v11 = vadd.f32 %v1348_v20, %v4220_v24  ;;  %v1381_v27 = vadd.f32 %v1349_v17, %v4221_v43  ;;  %v1382_v4 = vadd.f32 %v1350_v1, %v4222_v2 }
 0x138   :  { %1400 = vst [vmem:[%s3446_s4 + $0x178] sm:$0xff] %v1368_v60  ;;  %1401 = vst [vmem:[%s3446_s4 + $0x180] sm:$0xff] %v1369_v21  ;;  %v1383_v10 = vadd.f32 %v1351_v45, %v4223_v22  ;;  %v1384_v51 = vadd.f32 %v1352_v59, %v4224_v41 }
 0x139   :  { %1402 = vst [vmem:[%s3446_s4 + $0x188] sm:$0xff] %v1370_v14  ;;  %1403 = vst [vmem:[%s3446_s4 + $0x190] sm:$0xff] %v1371_v19 }
 0x13a   :  { %1404 = vst [vmem:[%s3446_s4 + $0x198] sm:$0xff] %v1372_v5  ;;  %1405 = vst [vmem:[%s3446_s4 + $0x1a0] sm:$0xff] %v1373_v42 }
 0x13b   :  { %1406 = vst [vmem:[%s3446_s4 + $0x1a8] sm:$0xff] %v1374_v23  ;;  %1407 = vst [vmem:[%s3446_s4 + $0x1b0] sm:$0xff] %v1375_v25 }
 0x13c   :  { %1408 = vst [vmem:[%s3446_s4 + $0x1b8] sm:$0xff] %v1376_v30  ;;  %1409 = vst [vmem:[%s3446_s4 + $0x1c0] sm:$0xff] %v1377_v39 }
 0x13d   :  { %1410 = vst [vmem:[%s3446_s4 + $0x1c8] sm:$0xff] %v1378_v57  ;;  %1411 = vst [vmem:[%s3446_s4 + $0x1d0] sm:$0xff] %v1379_v55 }
 0x13e   :  { %1412 = vst [vmem:[%s3446_s4 + $0x1d8] sm:$0xff] %v1380_v11  ;;  %1413 = vst [vmem:[%s3446_s4 + $0x1e0] sm:$0xff] %v1381_v27 }
 0x13f   :  { %1414 = vst [vmem:[%s3446_s4 + $0x1e8] sm:$0xff] %v1382_v4  ;;  %1415 = vst [vmem:[%s3446_s4 + $0x1f0] sm:$0xff] %v1383_v10 }
 0x140   :  { %1416 = vst [vmem:[%s3446_s4 + $0x1f8] sm:$0xff] %v1384_v51 }

</bundles_post_ra>
